<compile_context>
chip_gen: v5e
topology: v5e:2x2
jax: 0.10.0
libtpu: 0.0.40
codegen_flags: <defaults>
</compile_context>

<pallas_src>
import jax
import jax.numpy as jnp
from jax.experimental import pallas as pl
from jax.experimental.pallas import tpu as pltpu

NUM_HEADING_BIN = 12
NUM_SIZE_CLUSTER = 8
OUT_DIM = 3 + NUM_HEADING_BIN * 2 + NUM_SIZE_CLUSTER * 4   # 59
OUT_PAD = 128                                              # lane-dense output width

_WEIGHT_KEYS = ('w1', 't1', 'w2', 't2', 'w3', 't3', 'w4', 't4',
                'fw1a', 'fw1b', 'ft1', 'fw2', 'ft2', 'fw3', 'fb3')


def _kernel(pts_ref, oh_ref,
            w1, t1, w2, t2, w3, t3, w4, t4,
            fw1a, fw1b, ft1, fw2, ft2, fw3, fb3,
            out_ref, gmax_ref):
    tb, tn, _ = pts_ref.shape
    nc = oh_ref.shape[-1]
    rows = tb * tn
    bf16 = jnp.bfloat16
    p = pl.program_id(1)

    def dot32(a, b):
        return jnp.dot(a, b, preferred_element_type=jnp.float32)

    # ---- conv1 (1x1) + folded bn1 + relu (f32, K=3) ------------------------
    x = pts_ref[...].reshape(rows, 3)                       # free leading-dim merge
    h = jnp.maximum(dot32(x, w1[...]) + t1[...], 0.0).astype(bf16)      # (rows,128)

    # ---- conv2/3/4 + folded bn + relu: bf16 slabs, f32 MXU accumulation ----
    h = jnp.maximum(dot32(h, w2[...]) + t2[...], 0.0).astype(bf16)      # (rows,128)
    h = jnp.maximum(dot32(h, w3[...]) + t3[...], 0.0).astype(bf16)      # (rows,256)
    h = jnp.maximum(dot32(h, w4[...]) + t4[...], 0.0).astype(bf16)      # (rows,512)

    # ---- channel-wise max over this point chunk, accumulated online --------
    gcur = jnp.max(h.reshape(tb, tn, h.shape[-1]), axis=1).astype(jnp.float32)

    @pl.when(p == 0)
    def _():
        gmax_ref[...] = jnp.zeros_like(gmax_ref)            # relu outputs are >= 0

    gmax_ref[...] = jnp.maximum(gmax_ref[...], gcur)

    # ---- FC head: once per batch group, on the last point chunk ------------
    @pl.when(p == pl.num_programs(1) - 1)
    def _():
        g = gmax_ref[...].astype(bf16)                      # (tb, 512)
        f = dot32(g, fw1a[...])                             # (tb, 512) f32
        oh = oh_ref[...].reshape(tb, nc)                    # (tb, nc) f32
        fw1b_v = fw1b[...]                                  # (nc, 512) f32
        for c in range(nc):                                 # K=nc: VPU FMAs, not MXU
            f = f + oh[:, c:c + 1] * fw1b_v[c:c + 1, :]
        f = jnp.maximum(f + ft1[...], 0.0).astype(bf16)
        f = jnp.maximum(dot32(f, fw2[...]) + ft2[...], 0.0).astype(bf16)
        out = dot32(f, fw3[...]) + fb3[...]                 # (tb, OUT_PAD) f32
        out_ref[...] = out.reshape(tb, 1, OUT_PAD)


def _divisors(n):
    return [d for d in range(1, n + 1) if n % d == 0]


def _choose_tiles(batch, n_pts, budget_rows=4096):
    """Pick (tb, tn) with:
      * tn | N and tn % 8 == 0        (sublane-legal point chunk)
      * tb | B, and B//tb >= 2 if B>=2 (>=2 parallel steps -> v7x 2-TC split)
      * tb * tn <= budget_rows         (bounds activation slabs for every gen)
    """
    tn_c = [d for d in _divisors(n_pts) if d % 8 == 0]
    assert tn_c, "number of points must be a multiple of 8"
    fit = [d for d in tn_c if d <= budget_rows]
    tn = max(fit) if fit else min(tn_c)
    tb_c = [d for d in _divisors(batch) if batch < 2 or batch // d >= 2]
    fit_b = [d for d in tb_c if d * tn <= budget_rows]
    tb = max(fit_b) if fit_b else min(tb_c)
    return tb, tn


def pointnet_estimation_forward(pts, one_hot, params, budget_rows=4096):
    """pts: (B, 3, N) f32 in NCW (PyTorch layout); one_hot: (B, n_classes) f32.
    Returns (B, 3 + NUM_HEADING_BIN*2 + NUM_SIZE_CLUSTER*4) f32."""
    B, C, N = pts.shape
    assert C == 3
    nc = one_hot.shape[1]
    tb, tn = _choose_tiles(B, N, budget_rows)

    # Tiny layout prep outside the kernel (O(B*N*3) bytes): NWC points so the
    # in-kernel (tb*tn, 3) view is a free reshape; 3-D one-hot / output so tb is
    # an unconstrained leading block dim (any divisor of B is legal).
    pts_nwc = jnp.transpose(pts.astype(jnp.float32), (0, 2, 1))        # (B, N, 3)
    oh3 = one_hot.astype(jnp.float32).reshape(B, 1, nc)                # (B, 1, nc)
    weights = [params[k] for k in _WEIGHT_KEYS]

    def _const_map(nd):
        return lambda g, p, _nd=nd: (0,) * _nd

    in_specs = [pl.BlockSpec((tb, tn, 3), lambda g, p: (g, p, 0)),     # point chunk
                pl.BlockSpec((tb, 1, nc), lambda g, p: (g, 0, 0))]     # one-hot
    in_specs += [pl.BlockSpec(w.shape, _const_map(w.ndim)) for w in weights]
    # TODO(synk): pipeline_mode=pl.Buffered(1) on the resident-weight specs would
    # drop their second pipeline buffer (~1.4 MiB VMEM); left default for safety.

    flops = (2 * B * N * (3 * 128 + 128 * 128 + 128 * 256 + 256 * 512)
             + 2 * B * ((512 + nc) * 512 + 512 * 256 + 256 * OUT_PAD))
    bytes_accessed = int(pts_nwc.size * 4 + oh3.size * 4 + B * OUT_PAD * 4
                         + sum(int(w.size) * w.dtype.itemsize for w in weights))

    out = pl.pallas_call(
        _kernel,
        grid=(B // tb, N // tn),
        in_specs=in_specs,
        out_specs=pl.BlockSpec((tb, 1, OUT_PAD), lambda g, p: (g, 0, 0)),
        out_shape=jax.ShapeDtypeStruct((B, 1, OUT_PAD), jnp.float32),
        scratch_shapes=[pltpu.VMEM((tb, 512), jnp.float32)],            # online max
        compiler_params=pltpu.CompilerParams(
            dimension_semantics=("parallel", "arbitrary"),
            vmem_limit_bytes=48 * 1024 * 1024),
        cost_estimate=pl.CostEstimate(flops=int(flops), transcendentals=0,
                                      bytes_accessed=bytes_accessed),
    )(pts_nwc, oh3, *weights)
    return out.reshape(B, OUT_PAD)[:, :OUT_DIM]


def init_params(key, n_classes=3, eps=1e-5):
    ks = jax.random.split(key, 20)

    def w(k, shape, scale=0.1):
        return scale * jax.random.normal(k, shape, dtype=jnp.float32)

    def bn(k, c):
        kg, kb, km, kv = jax.random.split(k, 4)
        gamma = 1.0 + 0.1 * jax.random.normal(kg, (c,), dtype=jnp.float32)
        beta = 0.1 * jax.random.normal(kb, (c,), dtype=jnp.float32)
        mean = 0.1 * jax.random.normal(km, (c,), dtype=jnp.float32)
        var = jax.random.uniform(kv, (c,), jnp.float32, 0.5, 1.5)
        return gamma, beta, mean, var

    def fold(w_, bias, gamma, beta, mean, var):
        # eval-mode BN folded into the weight + shift:
        #   relu((x @ W + b - mean) * g/sqrt(v+eps) + beta) == relu(x @ (W*s) + t)
        s = gamma / jnp.sqrt(var + eps)
        return w_ * s[None, :], ((bias - mean) * s + beta)[None, :]

    w1 = w(ks[0], (3, 128));    b1 = w(ks[1], (128,))
    w2 = w(ks[2], (128, 128));  b2 = w(ks[3], (128,))
    w3 = w(ks[4], (128, 256));  b3 = w(ks[5], (256,))
    w4 = w(ks[6], (256, 512));  b4 = w(ks[7], (512,))
    w1, t1 = fold(w1, b1, *bn(ks[8], 128))
    w2, t2 = fold(w2, b2, *bn(ks[9], 128))
    w3, t3 = fold(w3, b3, *bn(ks[10], 256))
    w4, t4 = fold(w4, b4, *bn(ks[11], 512))

    fw1 = w(ks[12], (512 + n_classes, 512)); fb1 = w(ks[13], (512,))
    fw2 = w(ks[14], (512, 256));             fb2 = w(ks[15], (256,))
    fw3 = w(ks[16], (256, OUT_DIM));         fb3 = w(ks[17], (OUT_DIM,))
    fw1, ft1 = fold(fw1, fb1, *bn(ks[18], 512))
    fw2, ft2 = fold(fw2, fb2, *bn(ks[19], 256))

    bf = lambda a: a.astype(jnp.bfloat16)       # MXU weights live in bf16
    fw3p = jnp.pad(fw3, ((0, 0), (0, OUT_PAD - OUT_DIM)))
    fb3p = jnp.pad(fb3, (0, OUT_PAD - OUT_DIM))[None, :]
    return dict(
        w1=w1, t1=t1,                           # conv1 kept f32 (K=3, raw xyz)
        w2=bf(w2), t2=t2, w3=bf(w3), t3=t3, w4=bf(w4), t4=t4,
        fw1a=bf(fw1[:512]), fw1b=fw1[512:],     # one-hot part stays f32 (VPU path)
        ft1=ft1, fw2=bf(fw2), ft2=ft2,
        fw3=bf(fw3p), fb3=fb3p,
    )


def reference(pts, one_hot, p):
    """Pure-JAX eval-mode forward with the same folded-BN weights and the same
    f32-conv1 / bf16-matmul / f32-accumulation precision as the kernel."""
    bf16 = jnp.bfloat16
    hi = jax.lax.Precision.HIGHEST

    def layer(h, w_, t_):
        acc = jnp.dot(h, w_, preferred_element_type=jnp.float32)
        return jnp.maximum(acc + t_, 0.0).astype(bf16)

    x = jnp.transpose(pts, (0, 2, 1)).astype(jnp.float32)               # (B,N,3)
    h = jnp.maximum(jnp.dot(x, p['w1'], precision=hi) + p['t1'], 0.0).astype(bf16)
    h = layer(h, p['w2'], p['t2'])
    h = layer(h, p['w3'], p['t3'])
    h = layer(h, p['w4'], p['t4'])                                       # (B,N,512)
    g = jnp.max(h, axis=1).astype(jnp.float32)                           # (B,512)
    f = jnp.dot(g.astype(bf16), p['fw1a'], preferred_element_type=jnp.float32)
    f = f + jnp.dot(one_hot.astype(jnp.float32), p['fw1b'], precision=hi)
    f = jnp.maximum(f + p['ft1'], 0.0).astype(bf16)
    f = jnp.maximum(jnp.dot(f, p['fw2'], preferred_element_type=jnp.float32)
                    + p['ft2'], 0.0).astype(bf16)
    out = jnp.dot(f, p['fw3'], preferred_element_type=jnp.float32) + p['fb3']
    return out[:, :OUT_DIM]


if __name__ == "__main__":
    key = jax.random.PRNGKey(0)
    kp, kpts, koh = jax.random.split(key, 3)
    B, N, n_classes = 2, 128, 3

    params = init_params(kp, n_classes=n_classes)
    pts = jax.random.normal(kpts, (B, 3, N), dtype=jnp.float32)          # NCW
    labels = jax.random.randint(koh, (B,), 0, n_classes)
    one_hot = jax.nn.one_hot(labels, n_classes, dtype=jnp.float32)

    out = pointnet_estimation_forward(pts, one_hot, params)
    out = jax.block_until_ready(out)
    assert out.shape == (B, OUT_DIM)

    ref = reference(pts, one_hot, params)
    max_err = float(jnp.max(jnp.abs(out - ref)))
    assert bool(jnp.allclose(out, ref, atol=2e-2, rtol=2e-2)), max_err
    print("KERNEL_OK")
</pallas_src>

<mosaic_0001>
module attributes {stable_mosaic.version = 11 : i64} {
  func.func @_kernel(%arg0: i32, %arg1: i32, %arg2: memref<1x128x3xf32, #tpu.memory_space<vmem>>, %arg3: memref<1x1x3xf32, #tpu.memory_space<vmem>>, %arg4: memref<3x128xf32, #tpu.memory_space<vmem>>, %arg5: memref<1x128xf32, #tpu.memory_space<vmem>>, %arg6: memref<128x128xbf16, #tpu.memory_space<vmem>>, %arg7: memref<1x128xf32, #tpu.memory_space<vmem>>, %arg8: memref<128x256xbf16, #tpu.memory_space<vmem>>, %arg9: memref<1x256xf32, #tpu.memory_space<vmem>>, %arg10: memref<256x512xbf16, #tpu.memory_space<vmem>>, %arg11: memref<1x512xf32, #tpu.memory_space<vmem>>, %arg12: memref<512x512xbf16, #tpu.memory_space<vmem>>, %arg13: memref<3x512xf32, #tpu.memory_space<vmem>>, %arg14: memref<1x512xf32, #tpu.memory_space<vmem>>, %arg15: memref<512x256xbf16, #tpu.memory_space<vmem>>, %arg16: memref<1x256xf32, #tpu.memory_space<vmem>>, %arg17: memref<256x128xbf16, #tpu.memory_space<vmem>>, %arg18: memref<1x128xf32, #tpu.memory_space<vmem>>, %arg19: memref<1x1x128xf32, #tpu.memory_space<vmem>>, %arg20: memref<1x512xf32, #tpu.memory_space<vmem>>) attributes {dimension_semantics = [#tpu.dimension_semantics<parallel>, #tpu.dimension_semantics<arbitrary>], iteration_bounds = array<i64: 2, 1>, scalar_prefetch = 0 : i64, scratch_operands = 1 : i64, tpu.core_type = #tpu.core_type<tc>, window_params = [{transform_indices = @transform_0, window_bounds = array<i64: 1, 128, 3>}, {transform_indices = @transform_1, window_bounds = array<i64: 1, 1, 3>}, {pipeline_mode = #tpu.pipeline_mode<synchronous>, transform_indices = @transform_2, window_bounds = array<i64: 3, 128>}, {pipeline_mode = #tpu.pipeline_mode<synchronous>, transform_indices = @transform_3, window_bounds = array<i64: 1, 128>}, {pipeline_mode = #tpu.pipeline_mode<synchronous>, transform_indices = @transform_4, window_bounds = array<i64: 128, 128>}, {pipeline_mode = #tpu.pipeline_mode<synchronous>, transform_indices = @transform_5, window_bounds = array<i64: 1, 128>}, {pipeline_mode = #tpu.pipeline_mode<synchronous>, transform_indices = @transform_6, window_bounds = array<i64: 128, 256>}, {pipeline_mode = #tpu.pipeline_mode<synchronous>, transform_indices = @transform_7, window_bounds = array<i64: 1, 256>}, {pipeline_mode = #tpu.pipeline_mode<synchronous>, transform_indices = @transform_8, window_bounds = array<i64: 256, 512>}, {pipeline_mode = #tpu.pipeline_mode<synchronous>, transform_indices = @transform_9, window_bounds = array<i64: 1, 512>}, {pipeline_mode = #tpu.pipeline_mode<synchronous>, transform_indices = @transform_10, window_bounds = array<i64: 512, 512>}, {pipeline_mode = #tpu.pipeline_mode<synchronous>, transform_indices = @transform_11, window_bounds = array<i64: 3, 512>}, {pipeline_mode = #tpu.pipeline_mode<synchronous>, transform_indices = @transform_12, window_bounds = array<i64: 1, 512>}, {pipeline_mode = #tpu.pipeline_mode<synchronous>, transform_indices = @transform_13, window_bounds = array<i64: 512, 256>}, {pipeline_mode = #tpu.pipeline_mode<synchronous>, transform_indices = @transform_14, window_bounds = array<i64: 1, 256>}, {pipeline_mode = #tpu.pipeline_mode<synchronous>, transform_indices = @transform_15, window_bounds = array<i64: 256, 128>}, {pipeline_mode = #tpu.pipeline_mode<synchronous>, transform_indices = @transform_16, window_bounds = array<i64: 1, 128>}, {transform_indices = @transform_17, window_bounds = array<i64: 1, 1, 128>}]} {
    %c0 = arith.constant 0 : index
    %c0_0 = arith.constant 0 : index
    %c0_1 = arith.constant 0 : index
    %0 = vector.load %arg2[%c0, %c0_0, %c0_1] : memref<1x128x3xf32, #tpu.memory_space<vmem>>, vector<1x128x3xf32>
    %1 = vector.shape_cast %0 : vector<1x128x3xf32> to vector<128x3xf32>
    %c0_2 = arith.constant 0 : index
    %c0_3 = arith.constant 0 : index
    %2 = vector.load %arg4[%c0_2, %c0_3] : memref<3x128xf32, #tpu.memory_space<vmem>>, vector<3x128xf32>
    %cst = arith.constant dense<0.000000e+00> : vector<128x128xf32>
    %3 = tpu.matmul %1, %2, %cst {dimension_numbers = #tpu.dot_dimension_numbers<[1], [0], [0], [1], [0, 0, 1, 1], [], []>} : vector<128x3xf32>, vector<3x128xf32>, vector<128x128xf32> -> vector<128x128xf32>
    %c0_4 = arith.constant 0 : index
    %c0_5 = arith.constant 0 : index
    %4 = vector.load %arg5[%c0_4, %c0_5] : memref<1x128xf32, #tpu.memory_space<vmem>>, vector<1x128xf32>
    %5 = vector.broadcast %4 : vector<1x128xf32> to vector<128x128xf32>
    %6 = arith.addf %3, %5 : vector<128x128xf32>
    %cst_6 = arith.constant 0.000000e+00 : f32
    %7 = vector.broadcast %cst_6 : f32 to vector<128x128xf32>
    %8 = arith.maximumf %6, %7 : vector<128x128xf32>
    %9 = arith.truncf %8 : vector<128x128xf32> to vector<128x128xbf16>
    %c0_7 = arith.constant 0 : index
    %c0_8 = arith.constant 0 : index
    %10 = vector.load %arg6[%c0_7, %c0_8] : memref<128x128xbf16, #tpu.memory_space<vmem>>, vector<128x128xbf16>
    %cst_9 = arith.constant dense<0.000000e+00> : vector<128x128xf32>
    %11 = tpu.matmul %9, %10, %cst_9 {dimension_numbers = #tpu.dot_dimension_numbers<[1], [0], [0], [1], [0, 0, 1, 1], [], []>} : vector<128x128xbf16>, vector<128x128xbf16>, vector<128x128xf32> -> vector<128x128xf32>
    %c0_10 = arith.constant 0 : index
    %c0_11 = arith.constant 0 : index
    %12 = vector.load %arg7[%c0_10, %c0_11] : memref<1x128xf32, #tpu.memory_space<vmem>>, vector<1x128xf32>
    %13 = vector.broadcast %12 : vector<1x128xf32> to vector<128x128xf32>
    %14 = arith.addf %11, %13 : vector<128x128xf32>
    %cst_12 = arith.constant 0.000000e+00 : f32
    %15 = vector.broadcast %cst_12 : f32 to vector<128x128xf32>
    %16 = arith.maximumf %14, %15 : vector<128x128xf32>
    %17 = arith.truncf %16 : vector<128x128xf32> to vector<128x128xbf16>
    %c0_13 = arith.constant 0 : index
    %c0_14 = arith.constant 0 : index
    %18 = vector.load %arg8[%c0_13, %c0_14] : memref<128x256xbf16, #tpu.memory_space<vmem>>, vector<128x256xbf16>
    %cst_15 = arith.constant dense<0.000000e+00> : vector<128x256xf32>
    %19 = tpu.matmul %17, %18, %cst_15 {dimension_numbers = #tpu.dot_dimension_numbers<[1], [0], [0], [1], [0, 0, 1, 1], [], []>} : vector<128x128xbf16>, vector<128x256xbf16>, vector<128x256xf32> -> vector<128x256xf32>
    %c0_16 = arith.constant 0 : index
    %c0_17 = arith.constant 0 : index
    %20 = vector.load %arg9[%c0_16, %c0_17] : memref<1x256xf32, #tpu.memory_space<vmem>>, vector<1x256xf32>
    %21 = vector.broadcast %20 : vector<1x256xf32> to vector<128x256xf32>
    %22 = arith.addf %19, %21 : vector<128x256xf32>
    %cst_18 = arith.constant 0.000000e+00 : f32
    %23 = vector.broadcast %cst_18 : f32 to vector<128x256xf32>
    %24 = arith.maximumf %22, %23 : vector<128x256xf32>
    %25 = arith.truncf %24 : vector<128x256xf32> to vector<128x256xbf16>
    %c0_19 = arith.constant 0 : index
    %c0_20 = arith.constant 0 : index
    %26 = vector.load %arg10[%c0_19, %c0_20] : memref<256x512xbf16, #tpu.memory_space<vmem>>, vector<256x512xbf16>
    %cst_21 = arith.constant dense<0.000000e+00> : vector<128x512xf32>
    %27 = tpu.matmul %25, %26, %cst_21 {dimension_numbers = #tpu.dot_dimension_numbers<[1], [0], [0], [1], [0, 0, 1, 1], [], []>} : vector<128x256xbf16>, vector<256x512xbf16>, vector<128x512xf32> -> vector<128x512xf32>
    %c0_22 = arith.constant 0 : index
    %c0_23 = arith.constant 0 : index
    %28 = vector.load %arg11[%c0_22, %c0_23] : memref<1x512xf32, #tpu.memory_space<vmem>>, vector<1x512xf32>
    %29 = vector.broadcast %28 : vector<1x512xf32> to vector<128x512xf32>
    %30 = arith.addf %27, %29 : vector<128x512xf32>
    %cst_24 = arith.constant 0.000000e+00 : f32
    %31 = vector.broadcast %cst_24 : f32 to vector<128x512xf32>
    %32 = arith.maximumf %30, %31 : vector<128x512xf32>
    %33 = arith.truncf %32 : vector<128x512xf32> to vector<128x512xbf16>
    %34 = vector.shape_cast %33 : vector<128x512xbf16> to vector<1x128x512xbf16>
    %cst_25 = arith.constant dense<0xFF80> : vector<1x512xbf16>
    %35 = vector.multi_reduction <maximumf>, %34, %cst_25 [1] : vector<1x128x512xbf16> to vector<1x512xbf16>
    %36 = arith.extf %35 : vector<1x512xbf16> to vector<1x512xf32>
    %c0_i32 = arith.constant 0 : i32
    %37 = arith.cmpi eq, %arg1, %c0_i32 : i32
    %38 = arith.extui %37 : i1 to i32
    %c0_i32_26 = arith.constant 0 : i32
    %39 = arith.cmpi ne, %38, %c0_i32_26 : i32
    scf.if %39 {
      %cst_33 = arith.constant 0.000000e+00 : f32
      %46 = vector.broadcast %cst_33 : f32 to vector<1x512xf32>
      %c0_34 = arith.constant 0 : index
      %c0_35 = arith.constant 0 : index
      %47 = vector.load %arg20[%c0_34, %c0_35] : memref<1x512xf32, #tpu.memory_space<vmem>>, vector<1x512xf32>
      tpu.vector_store %arg20[%c0_34, %c0_35], %46 {strides = array<i32>} : memref<1x512xf32, #tpu.memory_space<vmem>>, vector<1x512xf32>,
    } else {
    }
    %c0_27 = arith.constant 0 : index
    %c0_28 = arith.constant 0 : index
    %40 = vector.load %arg20[%c0_27, %c0_28] : memref<1x512xf32, #tpu.memory_space<vmem>>, vector<1x512xf32>
    %41 = arith.maximumf %40, %36 : vector<1x512xf32>
    %c0_29 = arith.constant 0 : index
    %c0_30 = arith.constant 0 : index
    %42 = vector.load %arg20[%c0_29, %c0_30] : memref<1x512xf32, #tpu.memory_space<vmem>>, vector<1x512xf32>
    tpu.vector_store %arg20[%c0_29, %c0_30], %41 {strides = array<i32>} : memref<1x512xf32, #tpu.memory_space<vmem>>, vector<1x512xf32>,
    %c0_i32_31 = arith.constant 0 : i32
    %43 = arith.cmpi eq, %arg1, %c0_i32_31 : i32
    %44 = arith.extui %43 : i1 to i32
    %c0_i32_32 = arith.constant 0 : i32
    %45 = arith.cmpi ne, %44, %c0_i32_32 : i32
    scf.if %45 {
      %c0_33 = arith.constant 0 : index
      %c0_34 = arith.constant 0 : index
      %46 = vector.load %arg20[%c0_33, %c0_34] : memref<1x512xf32, #tpu.memory_space<vmem>>, vector<1x512xf32>
      %47 = arith.truncf %46 : vector<1x512xf32> to vector<1x512xbf16>
      %c0_35 = arith.constant 0 : index
      %c0_36 = arith.constant 0 : index
      %48 = vector.load %arg12[%c0_35, %c0_36] : memref<512x512xbf16, #tpu.memory_space<vmem>>, vector<512x512xbf16>
      %cst_37 = arith.constant dense<0.000000e+00> : vector<1x512xf32>
      %49 = tpu.matmul %47, %48, %cst_37 {dimension_numbers = #tpu.dot_dimension_numbers<[1], [0], [0], [1], [0, 0, 1, 1], [], []>} : vector<1x512xbf16>, vector<512x512xbf16>, vector<1x512xf32> -> vector<1x512xf32>
      %c0_38 = arith.constant 0 : index
      %c0_39 = arith.constant 0 : index
      %c0_40 = arith.constant 0 : index
      %50 = vector.load %arg3[%c0_38, %c0_39, %c0_40] : memref<1x1x3xf32, #tpu.memory_space<vmem>>, vector<1x1x3xf32>
      %51 = vector.shape_cast %50 : vector<1x1x3xf32> to vector<1x3xf32>
      %c0_41 = arith.constant 0 : index
      %c0_42 = arith.constant 0 : index
      %52 = vector.load %arg13[%c0_41, %c0_42] : memref<3x512xf32, #tpu.memory_space<vmem>>, vector<3x512xf32>
      %53 = vector.extract_strided_slice %51 {offsets = [0, 0], sizes = [1, 1], strides = [1, 1]} : vector<1x3xf32> to vector<1x1xf32>
      %54 = vector.extract_strided_slice %52 {offsets = [0, 0], sizes = [1, 512], strides = [1, 1]} : vector<3x512xf32> to vector<1x512xf32>
      %55 = vector.broadcast %53 : vector<1x1xf32> to vector<1x512xf32>
      %56 = arith.mulf %55, %54 : vector<1x512xf32>
      %57 = arith.addf %49, %56 : vector<1x512xf32>
      %58 = vector.extract_strided_slice %51 {offsets = [0, 1], sizes = [1, 1], strides = [1, 1]} : vector<1x3xf32> to vector<1x1xf32>
      %59 = vector.extract_strided_slice %52 {offsets = [1, 0], sizes = [1, 512], strides = [1, 1]} : vector<3x512xf32> to vector<1x512xf32>
      %60 = vector.broadcast %58 : vector<1x1xf32> to vector<1x512xf32>
      %61 = arith.mulf %60, %59 : vector<1x512xf32>
      %62 = arith.addf %57, %61 : vector<1x512xf32>
      %63 = vector.extract_strided_slice %51 {offsets = [0, 2], sizes = [1, 1], strides = [1, 1]} : vector<1x3xf32> to vector<1x1xf32>
      %64 = vector.extract_strided_slice %52 {offsets = [2, 0], sizes = [1, 512], strides = [1, 1]} : vector<3x512xf32> to vector<1x512xf32>
      %65 = vector.broadcast %63 : vector<1x1xf32> to vector<1x512xf32>
      %66 = arith.mulf %65, %64 : vector<1x512xf32>
      %67 = arith.addf %62, %66 : vector<1x512xf32>
      %c0_43 = arith.constant 0 : index
      %c0_44 = arith.constant 0 : index
      %68 = vector.load %arg14[%c0_43, %c0_44] : memref<1x512xf32, #tpu.memory_space<vmem>>, vector<1x512xf32>
      %69 = arith.addf %67, %68 : vector<1x512xf32>
      %cst_45 = arith.constant 0.000000e+00 : f32
      %70 = vector.broadcast %cst_45 : f32 to vector<1x512xf32>
      %71 = arith.maximumf %69, %70 : vector<1x512xf32>
      %72 = arith.truncf %71 : vector<1x512xf32> to vector<1x512xbf16>
      %c0_46 = arith.constant 0 : index
      %c0_47 = arith.constant 0 : index
      %73 = vector.load %arg15[%c0_46, %c0_47] : memref<512x256xbf16, #tpu.memory_space<vmem>>, vector<512x256xbf16>
      %cst_48 = arith.constant dense<0.000000e+00> : vector<1x256xf32>
      %74 = tpu.matmul %72, %73, %cst_48 {dimension_numbers = #tpu.dot_dimension_numbers<[1], [0], [0], [1], [0, 0, 1, 1], [], []>} : vector<1x512xbf16>, vector<512x256xbf16>, vector<1x256xf32> -> vector<1x256xf32>
      %c0_49 = arith.constant 0 : index
      %c0_50 = arith.constant 0 : index
      %75 = vector.load %arg16[%c0_49, %c0_50] : memref<1x256xf32, #tpu.memory_space<vmem>>, vector<1x256xf32>
      %76 = arith.addf %74, %75 : vector<1x256xf32>
      %cst_51 = arith.constant 0.000000e+00 : f32
      %77 = vector.broadcast %cst_51 : f32 to vector<1x256xf32>
      %78 = arith.maximumf %76, %77 : vector<1x256xf32>
      %79 = arith.truncf %78 : vector<1x256xf32> to vector<1x256xbf16>
      %c0_52 = arith.constant 0 : index
      %c0_53 = arith.constant 0 : index
      %80 = vector.load %arg17[%c0_52, %c0_53] : memref<256x128xbf16, #tpu.memory_space<vmem>>, vector<256x128xbf16>
      %cst_54 = arith.constant dense<0.000000e+00> : vector<1x128xf32>
      %81 = tpu.matmul %79, %80, %cst_54 {dimension_numbers = #tpu.dot_dimension_numbers<[1], [0], [0], [1], [0, 0, 1, 1], [], []>} : vector<1x256xbf16>, vector<256x128xbf16>, vector<1x128xf32> -> vector<1x128xf32>
      %c0_55 = arith.constant 0 : index
      %c0_56 = arith.constant 0 : index
      %82 = vector.load %arg18[%c0_55, %c0_56] : memref<1x128xf32, #tpu.memory_space<vmem>>, vector<1x128xf32>
      %83 = arith.addf %81, %82 : vector<1x128xf32>
      %84 = vector.shape_cast %83 : vector<1x128xf32> to vector<1x1x128xf32>
      %c0_57 = arith.constant 0 : index
      %c0_58 = arith.constant 0 : index
      %c0_59 = arith.constant 0 : index
      %85 = vector.load %arg19[%c0_57, %c0_58, %c0_59] : memref<1x1x128xf32, #tpu.memory_space<vmem>>, vector<1x1x128xf32>
      tpu.vector_store %arg19[%c0_57, %c0_58, %c0_59], %84 {strides = array<i32>} : memref<1x1x128xf32, #tpu.memory_space<vmem>>, vector<1x1x128xf32>,
    } else {
    }
    return
  }
  func.func @transform_0(%arg0: i32, %arg1: i32) -> (i32, i32, i32) {
    %c0_i32 = arith.constant 0 : i32
    %c0_i32_0 = arith.constant 0 : i32
    return %arg0, %arg1, %c0_i32 : i32, i32, i32
  }
  func.func @transform_1(%arg0: i32, %arg1: i32) -> (i32, i32, i32) {
    %c0_i32 = arith.constant 0 : i32
    %c0_i32_0 = arith.constant 0 : i32
    %c0_i32_1 = arith.constant 0 : i32
    return %arg0, %c0_i32, %c0_i32_0 : i32, i32, i32
  }
  func.func @transform_2(%arg0: i32, %arg1: i32) -> (i32, i32) {
    %c0_i32 = arith.constant 0 : i32
    %c0_i32_0 = arith.constant 0 : i32
    %c0_i32_1 = arith.constant 0 : i32
    return %c0_i32, %c0_i32_0 : i32, i32
  }
  func.func @transform_3(%arg0: i32, %arg1: i32) -> (i32, i32) {
    %c0_i32 = arith.constant 0 : i32
    %c0_i32_0 = arith.constant 0 : i32
    %c0_i32_1 = arith.constant 0 : i32
    return %c0_i32, %c0_i32_0 : i32, i32
  }
  func.func @transform_4(%arg0: i32, %arg1: i32) -> (i32, i32) {
    %c0_i32 = arith.constant 0 : i32
    %c0_i32_0 = arith.constant 0 : i32
    %c0_i32_1 = arith.constant 0 : i32
    return %c0_i32, %c0_i32_0 : i32, i32
  }
  func.func @transform_5(%arg0: i32, %arg1: i32) -> (i32, i32) {
    %c0_i32 = arith.constant 0 : i32
    %c0_i32_0 = arith.constant 0 : i32
    %c0_i32_1 = arith.constant 0 : i32
    return %c0_i32, %c0_i32_0 : i32, i32
  }
  func.func @transform_6(%arg0: i32, %arg1: i32) -> (i32, i32) {
    %c0_i32 = arith.constant 0 : i32
    %c0_i32_0 = arith.constant 0 : i32
    %c0_i32_1 = arith.constant 0 : i32
    return %c0_i32, %c0_i32_0 : i32, i32
  }
  func.func @transform_7(%arg0: i32, %arg1: i32) -> (i32, i32) {
    %c0_i32 = arith.constant 0 : i32
    %c0_i32_0 = arith.constant 0 : i32
    %c0_i32_1 = arith.constant 0 : i32
    return %c0_i32, %c0_i32_0 : i32, i32
  }
  func.func @transform_8(%arg0: i32, %arg1: i32) -> (i32, i32) {
    %c0_i32 = arith.constant 0 : i32
    %c0_i32_0 = arith.constant 0 : i32
    %c0_i32_1 = arith.constant 0 : i32
    return %c0_i32, %c0_i32_0 : i32, i32
  }
  func.func @transform_9(%arg0: i32, %arg1: i32) -> (i32, i32) {
    %c0_i32 = arith.constant 0 : i32
    %c0_i32_0 = arith.constant 0 : i32
    %c0_i32_1 = arith.constant 0 : i32
    return %c0_i32, %c0_i32_0 : i32, i32
  }
  func.func @transform_10(%arg0: i32, %arg1: i32) -> (i32, i32) {
    %c0_i32 = arith.constant 0 : i32
    %c0_i32_0 = arith.constant 0 : i32
    %c0_i32_1 = arith.constant 0 : i32
    return %c0_i32, %c0_i32_0 : i32, i32
  }
  func.func @transform_11(%arg0: i32, %arg1: i32) -> (i32, i32) {
    %c0_i32 = arith.constant 0 : i32
    %c0_i32_0 = arith.constant 0 : i32
    %c0_i32_1 = arith.constant 0 : i32
    return %c0_i32, %c0_i32_0 : i32, i32
  }
  func.func @transform_12(%arg0: i32, %arg1: i32) -> (i32, i32) {
    %c0_i32 = arith.constant 0 : i32
    %c0_i32_0 = arith.constant 0 : i32
    %c0_i32_1 = arith.constant 0 : i32
    return %c0_i32, %c0_i32_0 : i32, i32
  }
  func.func @transform_13(%arg0: i32, %arg1: i32) -> (i32, i32) {
    %c0_i32 = arith.constant 0 : i32
    %c0_i32_0 = arith.constant 0 : i32
    %c0_i32_1 = arith.constant 0 : i32
    return %c0_i32, %c0_i32_0 : i32, i32
  }
  func.func @transform_14(%arg0: i32, %arg1: i32) -> (i32, i32) {
    %c0_i32 = arith.constant 0 : i32
    %c0_i32_0 = arith.constant 0 : i32
    %c0_i32_1 = arith.constant 0 : i32
    return %c0_i32, %c0_i32_0 : i32, i32
  }
  func.func @transform_15(%arg0: i32, %arg1: i32) -> (i32, i32) {
    %c0_i32 = arith.constant 0 : i32
    %c0_i32_0 = arith.constant 0 : i32
    %c0_i32_1 = arith.constant 0 : i32
    return %c0_i32, %c0_i32_0 : i32, i32
  }
  func.func @transform_16(%arg0: i32, %arg1: i32) -> (i32, i32) {
    %c0_i32 = arith.constant 0 : i32
    %c0_i32_0 = arith.constant 0 : i32
    %c0_i32_1 = arith.constant 0 : i32
    return %c0_i32, %c0_i32_0 : i32, i32
  }
  func.func @transform_17(%arg0: i32, %arg1: i32) -> (i32, i32, i32) {
    %c0_i32 = arith.constant 0 : i32
    %c0_i32_0 = arith.constant 0 : i32
    %c0_i32_1 = arith.constant 0 : i32
    return %arg0, %c0_i32, %c0_i32_0 : i32, i32, i32
  }
}

</mosaic_0001>

<bundles_post_ra>
// kernel: tpu_custom_call.1
= control target key start
LH: loop header
LB: loop body
LE: loop exit
PB: predicated region body
PF: predicated region fallthrough
CT: control target
= control target key end

     0   :  { %s7208_s0 = inlined_call_operand.vmem [shape: f32[2,128,3], index: 0, kind: input, shape index: {}]   ;;  %s7209_s1 = inlined_call_operand.hbm [shape: f32[2,1,3], index: 1, kind: input, shape index: {}]   ;;  %s7210_s2 = inlined_call_operand.vmem [shape: f32[3,128], index: 2, kind: input, shape index: {}]   ;;  %s7211_s3 = inlined_call_operand.hbm [shape: f32[1,128], index: 3, kind: input, shape index: {}]   ;;  %s7212_s4 = inlined_call_operand.hbm [shape: bf16[128,128], index: 4, kind: input, shape index: {}]   ;;  %s7213_s5 = inlined_call_operand.hbm [shape: f32[1,128], index: 5, kind: input, shape index: {}]   ;;  %s7214_s6 = inlined_call_operand.vmem [shape: bf16[128,256], index: 6, kind: input, shape index: {}]   ;;  %s7215_s7 = inlined_call_operand.vmem [shape: f32[1,256], index: 7, kind: input, shape index: {}]   ;;  %s7216_s8 = inlined_call_operand.hbm [shape: bf16[256,512], index: 8, kind: input, shape index: {}]   ;;  %s7217_s9 = inlined_call_operand.vmem [shape: f32[1,512], index: 9, kind: input, shape index: {}]   ;;  %s7218_s10 = inlined_call_operand.hbm [shape: bf16[512,512], index: 10, kind: input, shape index: {}]   ;;  %s7219_s11 = inlined_call_operand.hbm [shape: f32[3,512], index: 11, kind: input, shape index: {}]   ;;  %s7220_s12 = inlined_call_operand.vmem [shape: f32[1,512], index: 12, kind: input, shape index: {}]   ;;  %s7221_s13 = inlined_call_operand.hbm [shape: bf16[512,256], index: 13, kind: input, shape index: {}]   ;;  %s7222_s14 = inlined_call_operand.vmem [shape: f32[1,256], index: 14, kind: input, shape index: {}]   ;;  %s7223_s15 = inlined_call_operand.vmem [shape: bf16[256,128], index: 15, kind: input, shape index: {}]   ;;  %s7224_s16 = inlined_call_operand.vmem [shape: f32[1,128], index: 16, kind: input, shape index: {}]   ;;  %s7225_s17 = inlined_call_operand.hbm [shape: f32[2,1,128], index: 17, kind: output, shape index: {}]  }
   0x1   :  { %7229 = sst [smem:[#allocation24_spill]] %s7208_s0 }
   0x2   :  { %7230 = sst [smem:[#allocation25_spill]] %s7209_s1 }
   0x3   :  { %7231 = sst [smem:[#allocation26_spill]] %s7210_s2 }
   0x4   :  { %7232 = sst [smem:[#allocation27_spill]] %s7211_s3 }
   0x5   :  { %7233 = sst [smem:[#allocation28_spill]] %s7212_s4 }
   0x6   :  { %7234 = sst [smem:[#allocation29_spill]] %s7213_s5 }
   0x7   :  { %7235 = sst [smem:[#allocation30_spill]] %s7217_s9 }
   0x8   :  { %7236 = sst [smem:[#allocation31_spill]] %s7220_s12 }
   0x9   :  { %7237 = sst [smem:[#allocation32_spill]] %s7222_s14 }
   0xa   :  { %7238 = sst [smem:[#allocation33_spill]] %s7223_s15 }
   0xb   :  { %7239 = sst [smem:[#allocation34_spill]] %s7224_s16 }
   0xc   :  { %7240 = sst [smem:[#allocation35_spill]] %s7225_s17 }
   0xd   :  { %22 = vsyncpa [#allocation4], 0 }
   0xe   :  { %24 = vsyncpa [#allocation4 + $0x1], 0 }
   0xf   :  { %25 = vsyncpa [#allocation7], 0 }
  0x10   :  { %26 = vsyncpa [#allocation10], 0 }
  0x11   :  { %27 = vsyncpa [#allocation13], 0 }
  0x12   :  { %28 = vsyncpa [#allocation16], 0 }
  0x13   :  { %29 = vsyncpa [#allocation5], 0 }
  0x14   :  { %31 = vsyncpa [#allocation5 + $0x1], 0  ;;  %s6354_s24 = smov 0   ;;  %s6356_s25 = smov 0  }
  0x15   :  { %s6358_s26 = smov 0   ;;  %s6360_s27 = smov 0  }
  0x16   :  { %s6362_s28 = smov 0   ;;  %s6364_s29 = smov 0  }
  0x17 LB: > { %s7226_s0 = sadd.s32 4294967295, %s6245_s29   ;;  %p4239_p0 = scmp.ge.s32.totalorder %s6245_s29, 1  ;;  %s6245_s29 = sphi %s6364_s29, %s37_s29   ;;  %s6241_s28 = sphi %s6362_s28, %s7267_s28   ;;  %s6237_s27 = sphi %s6360_s27, %s7266_s27   ;;  %s6233_s26 = sphi %s6358_s26, %s7265_s26   ;;  %s6229_s25 = sphi %s6356_s25, %s7264_s25   ;;  %s6225_s24 = sphi %s6354_s24, %s7263_s24  }
  0x18   : > { %p6388_p1 = scmp.eq.s32.totalorder %s7226_s0, 0  ;;  %p449_p2 = scmp.lt.s32.totalorder %s6245_s29, 3 }
  0x19   : > { %s7242_s3 = sld [smem:[#allocation27_spill]]  ;;  %p4247_p4 = scmp.ge.s32.totalorder %s6245_s29, 2 }
  0x1a   : > { %p6396_p3 = pnand %p4239_p0, %p449_p2  ;;  %s6247_s21 = smov [#allocation6]  }
  0x1b   : > { %s466_s22 = sshll.u32 %s6247_s21, 4  ;;  %s7244_s5 = sld [smem:[#allocation29_spill]]  ;;  %s467_s22 = int_to_ptr.vmem [resolvable:$true] %s466_s22 }
  0x1c   : > { %p5790_p5 = pneg %p6396_p3  ;;  %s6248_s19 = smov [#allocation9]  }
  0x1d   : > { %s524_s0 = sshll.u32 %s7218_s10, 4  ;;  %s6249_s23 = smov [#allocation12]   ;;  %s525_s0 = int_to_ptr.hbm [resolvable:$true] %s524_s0 }
  0x1e   : > { %p6408_p6 = pnand %p5790_p5, %p6388_p1  ;;  %s7246_s4 = sld [smem:[#allocation28_spill]] }
  0x1f   : > { %s464_s1 = sshll.u32 %s7242_s3, 4  ;;  %s492_s3 = sshll.u32 %s6248_s19, 4  ;;  %s465_s1 = int_to_ptr.hbm [resolvable:$true] %s464_s1  ;;  %s493_s3 = int_to_ptr.vmem [resolvable:$true] %s492_s3 }
  0x20   : > { %5793 = dma.hbm_to_vmem [thread:$0]  (!%p6408_p6), %s465_s1, 16, %s467_s22, [#allocation7]  }
  0x21   : > { %s490_s16 = sshll.u32 %s7244_s5, 4  ;;  %s526_s5 = sshll.u32 %s6249_s23, 4  ;;  %s491_s16 = int_to_ptr.hbm [resolvable:$true] %s490_s16  ;;  %s527_s5 = int_to_ptr.vmem [resolvable:$true] %s526_s5 }
  0x22   : > { %5799 = dma.hbm_to_vmem [thread:$0]  (!%p6408_p6), %s491_s16, 16, %s493_s3, [#allocation10]  }
  0x23   : > { %s6250_s9 = smov 256   ;;  %s6251_s19 = smov 16  }
  0x24   : > { %s475_s12 = sshll.u32 %s7246_s4, 4  ;;  %s6252_s3 = smov [#allocation8]   ;;  %s476_s12 = int_to_ptr.hbm [resolvable:$true] %s475_s12 }
  0x25   : > { %5805 = dma.hbm_to_vmem [thread:$0]  (!%p6408_p6), %s525_s0, 16384, %s527_s5, [#allocation13], %s6250_s9, %s6250_s9, %s6251_s19  }
  0x26   : > { %s477_s16 = sshll.u32 %s6252_s3, 4  ;;  %s6253_s17 = smov 64   ;;  %s478_s16 = int_to_ptr.vmem [resolvable:$true] %s477_s16 }
  0x27   : > { %s6254_s1 = smov 4   ;;  %s507_s23 = sshll.u32 %s7216_s8, 4  ;;  %s508_s23 = int_to_ptr.hbm [resolvable:$true] %s507_s23 }
  0x28   : > { %5796 = dma.hbm_to_vmem [thread:$0]  (!%p6408_p6), %s476_s12, 1024, %s478_s16, [#allocation7], %s6253_s17, %s6253_s17, %s6254_s1  }
  0x29   : > { %s6255_s14 = smov [#allocation11]   ;;  %s539_s0 = sshll.u32 %s7219_s11, 4  ;;  %s540_s0 = int_to_ptr.hbm [resolvable:$true] %s539_s0 }
  0x2a   : > { %s509_s15 = sshll.u32 %s6255_s14, 4  ;;  %s6256_s12 = smov [#allocation14]   ;;  %s510_s15 = int_to_ptr.vmem [resolvable:$true] %s509_s15 }
  0x2b   : > { %5802 = dma.hbm_to_vmem [thread:$0]  (!%p6408_p6), %s508_s23, 8192, %s510_s15, [#allocation10], %s6250_s9, %s6250_s9, %s6251_s19  }
  0x2c   : > { %s541_s3 = sshll.u32 %s6256_s12, 4  ;;  %s553_s1 = sshll.u32 %s7221_s13, 4  ;;  %s542_s3 = int_to_ptr.vmem [resolvable:$true] %s541_s3  ;;  %s554_s1 = int_to_ptr.hbm [resolvable:$true] %s553_s1 }
  0x2d   : > { %5808 = dma.hbm_to_vmem [thread:$0]  (!%p6408_p6), %s540_s0, 256, %s542_s3, [#allocation13]  }
  0x2e   : > { %s6257_s4 = smov [#allocation15]   ;;  %s6258_s19 = smov 128  }
  0x2f   : > { %s555_s9 = sshll.u32 %s6257_s4, 4  ;;  %s6259_s22 = smov 8   ;;  %s556_s9 = int_to_ptr.vmem [resolvable:$true] %s555_s9 }
  0x30   : > { %5811 = dma.hbm_to_vmem [thread:$0]  (!%p6408_p6), %s554_s1, 8192, %s556_s9, [#allocation16], %s6258_s19, %s6258_s19, %s6259_s22  }
  0x31   : > { %s4238_s21 = sadd.s32 4294967294, %s6245_s29   ;;  %s49_s23 = sadd.s32 1, %s6241_s28 }
  0x32   : > { %s84_s14 = sadd.s32 1, %s6233_s26  ;;  %p51_p7 = scmp.ge.s32.totalorder %s49_s23, 2 }
  0x33   : > { %p91_p8 = scmp.ne.s32.totalorder %s6233_s26, %s6229_s25  ;;  %p92_p9 = scmp.eq.s32.totalorder %s6245_s29, 0 }
  0x34   : > { %p97_p10 = scmp.ne.s32.totalorder %s6229_s25, %s6225_s24  ;;  %s7269_s23 = smov (%p51_p7, %s49_s23), 0 }
  0x35   : > { %p6451_p11 = por %p92_p9, %p91_p8  ;;  %s81_s5 = ssub.s32 %s6241_s28, %s7269_s23 }
  0x36   : > { %p6457_p12 = por %p6388_p1, %p97_p10  ;;  %s7249_s0 = sadd.s32 4294967295, %s6245_s29  }
  0x37   : > { %p436_p13 = scmp.eq.s32.totalorder %s7249_s0, 1  ;;  %p82_p0 = scmp.eq.s32.totalorder %s81_s5, 0 }
  0x38   : > { %p442_p2 = scmp.eq.s32.totalorder %s4238_s21, 1  ;;  %p5827_p6 = scmp.lt.s32.totalorder %s6245_s29, 2 }
  0x39   : > { %p6465_p5 = por %p436_p13, %p91_p8  ;;  %s591_s17 = sand.u32 1, %s6233_s26  }
  0x3a   : > { %s6471_s3 = scalar_select %p82_p0, %s6233_s26, %s84_s14  }
  0x3b   : > { %p6473_p7 = por %p442_p2, %p97_p10  ;;  %s7252_s9 = sld [smem:[#allocation25_spill]] }
  0x3c   : > { %s594_s22 = scalar_lea.vmem [#allocation3], %s591_s17  ;;  %p5813_p8 = pnand %p5827_p6, %p6451_p11 }
  0x3d   : > { %s601_s0 = sshll.u32 %s594_s22, 4  ;;  %s592_s21 = scalar_lea.sflag [#allocation4], %s591_s17  ;;  %s602_s0 = int_to_ptr.vmem [resolvable:$true] %s601_s0 }
  0x3e   : > { %s6487_s14 = sand.u32 (!%p6396_p3), 1, %s6229_s25  }
  0x3f   : > { %610 = sbr.rel (%p6396_p3) target bundleno = 1440 (0x5a0), region = 88  ;;  %s613_s1 = scalar_lea.sflag (!%p6396_p3), [#allocation4], %s6487_s14 }
  0x40   : > { %s615_s4 = scalar_lea.vmem (!%p6396_p3), [#allocation3], %s6487_s14 }
  0x41   : > { %s597_s19 = scalar_lea.hbm %s7252_s9, %s6241_s28 }
  0x42   : > { %s599_s5 = sshll.u32 %s597_s19, 4  ;;  %s600_s5 = int_to_ptr.hbm [resolvable:$true] %s599_s5 }
  0x43   : > { %5815 = dma.hbm_to_vmem [thread:$0]  (!%p5813_p8), %s600_s5, 16, %s602_s0, %s592_s21  }
  0x44   : > { %6200 = dma.done.wait (%p6457_p12), %s613_s1, 16  }
  0x45   : > { %6202 = vsyncadd (%p6457_p12), %s613_s1, 4294967280 }
  0x46   : > { %6204 = dma.done.wait (%p6388_p1), [#allocation7], 1040  }
  0x47   : > { %6206 = vsyncadd (%p6388_p1), [#allocation7], 4294966256 }
  0x48   : > { %6208 = dma.done.wait (%p6388_p1), [#allocation10], 8208  }
  0x49   : > { %6210 = vsyncadd (%p6388_p1), [#allocation10], 4294959088 }
  0x4a   : > { %6212 = dma.done.wait (%p6388_p1), [#allocation13], 16640  }
  0x4b   : > { %6214 = vsyncadd (%p6388_p1), [#allocation13], 4294950656 }
  0x4c   : > { %6216 = dma.done.wait (%p6388_p1), [#allocation16], 8192  }
  0x4d   : > { %6218 = vsyncadd (%p6388_p1), [#allocation16], 4294959104  ;;  %p710_p3 = scmp.lt.s32.totalorder %s6237_s27, 1  ;;  %vm789_vm0 = vcmask 1042432   ;;  %s7253_s9 = sld [smem:[#allocation24_spill]]  ;;  %vm740_vm1 = vcmask 23552  }
  0x4e   : > { %s7254_s2 = sld [smem:[#allocation26_spill]]  ;;  %v5469_v11 = vld [vmem:[#allocation8 + $0x38] sm:$0xff]  ;;  %v5468_v13 = vld [vmem:[#allocation8 + $0x30] sm:$0xff]  ;;  %v5467_v14 = vld [vmem:[#allocation8 + $0x28] sm:$0xff]  ;;  %vm2324_vm3 = vcmask 1040384   ;;  %vm2326_vm4 = vcmask 1042434  }
  0x4f   : > { %s711_s20 = scalar_select %p710_p3, %s6237_s27, 1  ;;  %950 = vmatpush.bf16.msra.mxu1 %v5469_v11  ;;  %v5466_v16 = vld [vmem:[#allocation8 + $0x20] sm:$0xff]  ;;  %v5465_v17 = vld [vmem:[#allocation8 + $0x18] sm:$0xff]  ;;  %v5464_v19 = vld [vmem:[#allocation8 + $0x10] sm:$0xff]  ;;  %vm2328_vm5 = vcmask 1041408  }
  0x50   : > { %v5463_v20 = vld [vmem:[#allocation8 + $0x8] sm:$0xff]  ;;  %v5462_v22 = vld [vmem:[#allocation8] sm:$0xff]  ;;  %v6553_v26 = vld [vmem:[#allocation6] ss:$0 sm:$0xff]  ;;  %s7258_s30 = sld [smem:[#allocation31_spill]]  ;;  %s708_s18 = scalar_lea.vmem [#allocation17], %s6487_s14 }
  0x51   : > { %s5461_s15 = sshll.u32 %s711_s20, 7  ;;  %v5483_v11 = vld [vmem:[%s7214_s6 + $0x64] sm:$0xf0]  ;;  %s7259_s5 = sld [smem:[#allocation33_spill]] }
  0x52   : > { %s7261_s0 = sld [smem:[#allocation35_spill]]  ;;  %s4080_s17 = sshll.u32 %s708_s18, 4  ;;  %s4081_s17 = int_to_ptr.vmem [resolvable:$true] %s4080_s17 }
  0x53   : > { %s6516_s19 = scalar_lea.vmem %s7253_s9, %s5461_s15  ;;  %951 = vmatpush.bf16.msra.mxu1 %v5468_v13  ;;  %s7255_s9 = sld [smem:[#allocation30_spill]] }
  0x54   : > { %v735_v0 = vld [vmem:[%s7254_s2] sm:$0x7]  ;;  %v720_v2 = vld [vmem:[%s6516_s19 + $0x8] sm:$0xff]  ;;  %v721_v3 = vld [vmem:[%s6516_s19 + $0x10] sm:$0xff]  ;;  %s7262_s15 = sld [smem:[#allocation34_spill]] }
  0x55   : > { %v719_v1 = vld [vmem:[%s6516_s19] sm:$0xff]  ;;  %4258 = vmatpush.msk.msra.mxu0 %vm789_vm0, %v735_v0  ;;  %v722_v4 = vld [vmem:[%s6516_s19 + $0x18] sm:$0xff]  ;;  %v724_v6 = vld [vmem:[%s6516_s19 + $0x28] sm:$0xff] }
  0x56   : > { %4259 = vmatmul.msk.f32.vlgmr.msra.gmra.mxu0 %vm740_vm1, %v719_v1  ;;  %v723_v5 = vld [vmem:[%s6516_s19 + $0x20] sm:$0xff]  ;;  %v725_v7 = vld [vmem:[%s6516_s19 + $0x30] sm:$0xff]  ;;  %v726_v8 = vld [vmem:[%s6516_s19 + $0x38] sm:$0xff] }
  0x57   : > { %v727_v9 = vld [vmem:[%s6516_s19 + $0x40] sm:$0xff]  ;;  %v728_v10 = vld [vmem:[%s6516_s19 + $0x48] sm:$0xff]  ;;  %v729_v12 = vld [vmem:[%s6516_s19 + $0x50] sm:$0xff]  ;;  %952 = vmatpush.bf16.msra.mxu1 %v5467_v14 }
  0x58   : > { %v730_v15 = vld [vmem:[%s6516_s19 + $0x58] sm:$0xff]  ;;  %v731_v18 = vld [vmem:[%s6516_s19 + $0x60] sm:$0xff]  ;;  %v732_v21 = vld [vmem:[%s6516_s19 + $0x68] sm:$0xff]  ;;  %s4078_s21 = scalar_lea.hbm %s7261_s0, %s6237_s27  ;;  %s6167_s22 = scalar_lea.hbm %s7261_s0, 2 }
  0x59   : > { %v733_v23 = vld [vmem:[%s6516_s19 + $0x70] sm:$0xff]  ;;  %v734_v24 = vld [vmem:[%s6516_s19 + $0x78] sm:$0xff]  ;;  %v4359_v14 = vld [vmem:[%s7214_s6 + $0x68] sm:$0xf0]  ;;  %s7260_s19 = sld [smem:[#allocation32_spill]] }
  0x5a   : > { %v4365_v1 = vld [vmem:[%s7214_s6 + $0x70] sm:$0xf] }
  0x5b   : > { %953 = vmatpush.bf16.msra.mxu1 %v5466_v16  ;;  %v4349_v16 = vld [vmem:[%s7214_s6 + $0x50] sm:$0xf] }
  0x5e   : > { %4260 = vmatmul.msk.f32.gmra.mxu0 %vm740_vm1, %v720_v2  ;;  %v5485_v2 = vld [vmem:[%s7214_s6 + $0x74] sm:$0xf0] }
  0x5f   : > { %954 = vmatpush.bf16.msra.mxu1 %v5465_v17  ;;  %v5481_v17 = vld [vmem:[%s7214_s6 + $0x54] sm:$0xf0] }
  0x63   : > { %955 = vmatpush.bf16.msra.mxu1 %v5464_v19 }
  0x66   : > { %4261 = vmatmul.msk.f32.gmra.mxu0 %vm740_vm1, %v721_v3  ;;  %v5484_v3 = vld [vmem:[%s7214_s6 + $0x74] sm:$0xf] }
  0x67   : > { %956 = vmatpush.bf16.msra.mxu1 %v5463_v20  ;;  %v4350_v20 = vor.u32 %v5481_v17, %v4349_v16  ;;  %v4485_v17 = vld [vmem:[#allocation11 + $0xe0] sm:$0xf] }
  0x6b   : > { %957 = vmatpush.bf16.msra.mxu1 %v5462_v22 }
  0x6e   : > { %4262 = vmatmul.msk.f32.gmra.mxu0 %vm740_vm1, %v722_v4  ;;  %v4366_v4 = vor.u32 %v5485_v2, %v4365_v1 }
  0x70   : > { %1125 = vmatpush.bf16.msra.mxu2 %v4366_v4  ;;  %v6667_v4 = vld [vmem:[#allocation9] ss:$0 sm:$0xff] }
  0x76   : > { %4263 = vmatmul.msk.f32.gmra.mxu0 %vm740_vm1, %v723_v5  ;;  %v4367_v5 = vld [vmem:[%s7214_s6 + $0x78] sm:$0xf0] }
  0x7e   : > { %4264 = vmatmul.msk.f32.gmra.mxu0 %vm740_vm1, %v724_v6 }
  0x86   : > { %4265 = vmatmul.msk.f32.gmra.mxu0 %vm740_vm1, %v725_v7 }
  0x8e   : > { %4266 = vmatmul.msk.f32.gmra.mxu0 %vm740_vm1, %v726_v8  ;;  %v4370_v8 = vor.u32 %v5484_v3, %v4367_v5 }
  0x90   : > { %1174 = vmatpush.bf16.msra.mxu3 %v4370_v8 }
  0x96   : > { %4267 = vmatmul.msk.f32.gmra.mxu0 %vm740_vm1, %v727_v9 }
  0x9e   : > { %4268 = vmatmul.msk.f32.gmra.mxu0 %vm740_vm1, %v728_v10  ;;  %v4357_v10 = vld [vmem:[%s7214_s6 + $0x60] sm:$0xf] }
  0x9f   : > { %v4358_v13 = vor.u32 %v5483_v11, %v4357_v10  ;;  %v5514_v10 = vld [vmem:[#allocation11 + $0xe4] sm:$0xf]  ;;  %v4487_v11 = vld [vmem:[#allocation11 + $0xf0] sm:$0xf0] }
  0xa1   : > { %1126 = vmatpush.bf16.msra.mxu2 %v4358_v13 }
  0xa5   : > { %1127 = vmatpush.bf16.msra.mxu2 %v4350_v20  ;;  %v4613_v20 = vld [vmem:[#allocation11 + $0x1e0] sm:$0xf] }
  0xa6   : > { %4269 = vmatmul.msk.f32.gmra.mxu0 %vm740_vm1, %v729_v12  ;;  %v5482_v12 = vld [vmem:[%s7214_s6 + $0x64] sm:$0xf] }
  0xae   : > { %4270 = vmatmul.msk.f32.gmra.mxu0 %vm740_vm1, %v730_v15  ;;  %v4362_v15 = vor.u32 %v5482_v12, %v4359_v14  ;;  %v4490_v12 = vor.u32 %v5514_v10, %v4487_v11  ;;  %v4615_v14 = vld [vmem:[#allocation11 + $0x1f0] sm:$0xf0] }
  0xb0   : > { %1175 = vmatpush.bf16.msra.mxu3 %v4362_v15 }
  0xb6   : > { %4271 = vmatmul.msk.f32.gmra.mxu0 %vm740_vm1, %v731_v18  ;;  %v5480_v18 = vld [vmem:[%s7214_s6 + $0x54] sm:$0xf] }
  0xbe   : > { %4272 = vmatmul.msk.f32.gmra.mxu0 %vm740_vm1, %v732_v21  ;;  %v4351_v21 = vld [vmem:[%s7214_s6 + $0x58] sm:$0xf0] }
  0xbf   : > { %v4354_v22 = vor.u32 %v5480_v18, %v4351_v21  ;;  %v5516_v18 = vld [vmem:[#allocation11 + $0xec] sm:$0xf0] }
  0xc0   : > { %v5548_v21 = vld [vmem:[#allocation11 + $0x1ec] sm:$0xf0] }
  0xc1   : > { %1176 = vmatpush.bf16.msra.mxu3 %v4354_v22  ;;  %v4614_v22 = vor.u32 %v5548_v21, %v4613_v20 }
  0xc3   : > { %1714 = vmatpush.bf16.msrb.mxu1 %v4614_v22  ;;  %v5498_v22 = vld [vmem:[#allocation11 + $0x64] sm:$0xf] }
  0xc6   : > { %4273 = vmatmul.msk.f32.gmra.mxu0 %vm740_vm1, %v733_v23  ;;  %v4341_v23 = vld [vmem:[%s7214_s6 + $0x40] sm:$0xf] }
  0xce   : > { %4274 = vmatmul.msk.f32.gmra.mxu0 %vm740_vm1, %v734_v24  ;;  %v5479_v24 = vld [vmem:[%s7214_s6 + $0x44] sm:$0xf0] }
  0xd3   : > { %v810_v25 = vpop.f32.mrf.mxu0 }
  0xd4   : > { %v811_v27 = vadd.f32 %v6553_v26, %v810_v25  ;;  %v5478_v25 = vld [vmem:[%s7214_s6 + $0x44] sm:$0xf] }
  0xd6   : > { %v858_v30 = vmax.f32 %v811_v27, 0.0  ;;  %v4343_v27 = vld [vmem:[%s7214_s6 + $0x48] sm:$0xf0] }
  0xdb   : > { %v813_v28 = vpop.f32.mrf.mxu0 }
  0xdc   : > { %v814_v29 = vadd.f32 %v6553_v26, %v813_v28  ;;  %v4342_v28 = vor.u32 %v5479_v24, %v4341_v23 }
  0xde   : > { %v859_v31 = vmax.f32 %v814_v29, 0.0  ;;  %v4346_v29 = vor.u32 %v5478_v25, %v4343_v27  ;;  %1128 = vmatpush.bf16.msra.mxu2 %v4342_v28 }
  0xe0   : > { %v874_v32 = vpack.c.bf16 %v859_v31, %v858_v30  ;;  %1177 = vmatpush.bf16.msra.mxu3 %v4346_v29  ;;  %v5510_v29 = vld [vmem:[#allocation11 + $0xc4] sm:$0xf] }
  0xe2   : > { %958 = vmatmul.bf16.vlgmr.msra.gmra.mxu1 %v874_v32 }
  0xe3   : > { %v816_v33 = vpop.f32.mrf.mxu0 }
  0xe4   : > { %v817_v34 = vadd.f32 %v6553_v26, %v816_v33  ;;  %v4333_v33 = vld [vmem:[%s7214_s6 + $0x30] sm:$0xf] }
  0xe6   : > { %v860_v37 = vmax.f32 %v817_v34, 0.0  ;;  %v5477_v34 = vld [vmem:[%s7214_s6 + $0x34] sm:$0xf0] }
  0xeb   : > { %v819_v35 = vpop.f32.mrf.mxu0 }
  0xec   : > { %v820_v36 = vadd.f32 %v6553_v26, %v819_v35  ;;  %v5476_v35 = vld [vmem:[%s7214_s6 + $0x34] sm:$0xf] }
  0xee   : > { %v861_v38 = vmax.f32 %v820_v36, 0.0  ;;  %v4334_v36 = vor.u32 %v5477_v34, %v4333_v33  ;;  %v5542_v33 = vld [vmem:[#allocation11 + $0x1c4] sm:$0xf]  ;;  %v4599_v34 = vld [vmem:[#allocation11 + $0x1d0] sm:$0xf0] }
  0xf0   : > { %v875_v39 = vpack.c.bf16 %v861_v38, %v860_v37  ;;  %v4335_v37 = vld [vmem:[%s7214_s6 + $0x38] sm:$0xf0]  ;;  %1129 = vmatpush.bf16.msra.mxu2 %v4334_v36  ;;  %v4602_v36 = vor.u32 %v5542_v33, %v4599_v34  ;;  %v4549_v34 = vld [vmem:[#allocation11 + $0x160] sm:$0xf] }
  0xf2   : > { %963 = vmatmul.bf16.gmra.mxu1 %v875_v39 }
  0xf3   : > { %v822_v40 = vpop.f32.mrf.mxu0 }
  0xf4   : > { %v823_v41 = vadd.f32 %v6553_v26, %v822_v40  ;;  %v4338_v40 = vor.u32 %v5476_v35, %v4335_v37  ;;  %v4469_v37 = vld [vmem:[#allocation11 + $0xc0] sm:$0xf] }
  0xf6   : > { %v862_v44 = vmax.f32 %v823_v41, 0.0  ;;  %1178 = vmatpush.bf16.msra.mxu3 %v4338_v40  ;;  %v4597_v40 = vld [vmem:[#allocation11 + $0x1c0] sm:$0xf] }
  0xfb   : > { %v825_v42 = vpop.f32.mrf.mxu0 }
  0xfc   : > { %v826_v43 = vadd.f32 %v6553_v26, %v825_v42  ;;  %v4325_v42 = vld [vmem:[%s7214_s6 + $0x20] sm:$0xf] }
  0xfe   : > { %v863_v45 = vmax.f32 %v826_v43, 0.0  ;;  %v5475_v43 = vld [vmem:[%s7214_s6 + $0x24] sm:$0xf0] }
 0x100   : > { %v876_v46 = vpack.c.bf16 %v863_v45, %v862_v44  ;;  %v5474_v44 = vld [vmem:[%s7214_s6 + $0x24] sm:$0xf]  ;;  %v4326_v45 = vor.u32 %v5475_v43, %v4325_v42 }
 0x102   : > { %968 = vmatmul.bf16.gmra.mxu1 %v876_v46  ;;  %v4327_v46 = vld [vmem:[%s7214_s6 + $0x28] sm:$0xf0]  ;;  %1130 = vmatpush.bf16.msra.mxu2 %v4326_v45 }
 0x103   : > { %v828_v47 = vpop.f32.mrf.mxu0 }
 0x104   : > { %v829_v48 = vadd.f32 %v6553_v26, %v828_v47  ;;  %v4330_v47 = vor.u32 %v5474_v44, %v4327_v46 }
 0x106   : > { %v864_v51 = vmax.f32 %v829_v48, 0.0  ;;  %1179 = vmatpush.bf16.msra.mxu3 %v4330_v47 }
 0x10b   : > { %v831_v49 = vpop.f32.mrf.mxu0 }
 0x10c   : > { %v832_v50 = vadd.f32 %v6553_v26, %v831_v49  ;;  %v4317_v49 = vld [vmem:[%s7214_s6 + $0x10] sm:$0xf] }
 0x10e   : > { %v865_v52 = vmax.f32 %v832_v50, 0.0  ;;  %v5473_v50 = vld [vmem:[%s7214_s6 + $0x14] sm:$0xf0] }
 0x110   : > { %v877_v53 = vpack.c.bf16 %v865_v52, %v864_v51  ;;  %v5472_v51 = vld [vmem:[%s7214_s6 + $0x14] sm:$0xf]  ;;  %v4318_v52 = vor.u32 %v5473_v50, %v4317_v49  ;;  %v4455_v49 = vld [vmem:[#allocation11 + $0xb0] sm:$0xf0] }
 0x112   : > { %973 = vmatmul.bf16.gmra.mxu1 %v877_v53  ;;  %v4319_v53 = vld [vmem:[%s7214_s6 + $0x18] sm:$0xf0]  ;;  %1131 = vmatpush.bf16.msra.mxu2 %v4318_v52  ;;  %v5538_v52 = vld [vmem:[#allocation11 + $0x1a4] sm:$0xf] }
 0x113   : > { %v834_v54 = vpop.f32.mrf.mxu0 }
 0x114   : > { %v835_v55 = vadd.f32 %v6553_v26, %v834_v54  ;;  %v4322_v54 = vor.u32 %v5472_v51, %v4319_v53  ;;  %v4583_v53 = vld [vmem:[#allocation11 + $0x1b0] sm:$0xf0] }
 0x116   : > { %v866_v58 = vmax.f32 %v835_v55, 0.0  ;;  %1180 = vmatpush.bf16.msra.mxu3 %v4322_v54  ;;  %v4309_v55 = vld [vmem:[%s7214_s6] sm:$0xf] }
 0x11b   : > { %v837_v56 = vpop.f32.mrf.mxu0 }
 0x11c   : > { %v838_v57 = vadd.f32 %v6553_v26, %v837_v56  ;;  %v5471_v56 = vld [vmem:[%s7214_s6 + $0x4] sm:$0xf0] }
 0x11e   : > { %v867_v59 = vmax.f32 %v838_v57, 0.0  ;;  %v5470_v57 = vld [vmem:[%s7214_s6 + $0x4] sm:$0xf] }
 0x120   : > { %v878_v60 = vpack.c.bf16 %v867_v59, %v866_v58  ;;  %v4310_v58 = vor.u32 %v5471_v56, %v4309_v55  ;;  %v4311_v59 = vld [vmem:[%s7214_s6 + $0x8] sm:$0xf0]  ;;  %v4586_v55 = vor.u32 %v5538_v52, %v4583_v53  ;;  %v5528_v53 = vld [vmem:[#allocation11 + $0x14c] sm:$0xf0] }
 0x121   : > { %v4453_v56 = vld [vmem:[#allocation11 + $0xa0] sm:$0xf] }
 0x122   : > { %978 = vmatmul.bf16.gmra.mxu1 %v878_v60  ;;  %1132 = vmatpush.bf16.msra.mxu2 %v4310_v58  ;;  %v4533_v52 = vld [vmem:[#allocation11 + $0x140] sm:$0xf] }
 0x123   : > { %v840_v61 = vpop.f32.mrf.mxu0 }
 0x124   : > { %v841_v62 = vadd.f32 %v6553_v26, %v840_v61  ;;  %v4314_v61 = vor.u32 %v5470_v57, %v4311_v59  ;;  %v5508_v57 = vld [vmem:[#allocation11 + $0xac] sm:$0xf0]  ;;  %v4581_v59 = vld [vmem:[#allocation11 + $0x1a0] sm:$0xf] }
 0x125   : > { %v4454_v58 = vor.u32 %v5508_v57, %v4453_v56  ;;  %v5490_v56 = vld [vmem:[#allocation11 + $0x24] sm:$0xf]  ;;  %v4391_v57 = vld [vmem:[#allocation11 + $0x30] sm:$0xf0] }
 0x126   : > { %v868_v6 = vmax.f32 %v841_v62, 0.0  ;;  %1181 = vmatpush.bf16.msra.mxu3 %v4314_v61  ;;  %1763 = vmatpush.bf16.msrb.mxu2 %v4490_v12  ;;  %v4437_v12 = vld [vmem:[#allocation11 + $0x80] sm:$0xf] }
 0x12b   : > { %v843_v63 = vpop.f32.mrf.mxu0 }
 0x12c   : > { %v844_v0 = vadd.f32 %v6553_v26, %v843_v63 }
 0x12e   : > { %v869_v7 = vmax.f32 %v844_v0, 0.0 }
 0x130   : > { %v879_v9 = vpack.c.bf16 %v869_v7, %v868_v6 }
 0x132   : > { %983 = vmatmul.bf16.gmra.mxu1 %v879_v9 }
 0x133   : > { %v846_v19 = vpop.f32.mrf.mxu0 }
 0x134   : > { %v847_v30 = vadd.f32 %v6553_v26, %v846_v19  ;;  %v4486_v19 = vor.u32 %v5516_v18, %v4485_v17 }
 0x136   : > { %v870_v38 = vmax.f32 %v847_v30, 0.0  ;;  %1665 = vmatpush.bf16.msrb.mxu0 %v4486_v19  ;;  %v4471_v30 = vld [vmem:[#allocation11 + $0xd0] sm:$0xf0] }
 0x13b   : > { %v849_v31 = vpop.f32.mrf.mxu0 }
 0x13c   : > { %v850_v32 = vadd.f32 %v6553_v26, %v849_v31  ;;  %v4474_v31 = vor.u32 %v5510_v29, %v4471_v30 }
 0x13e   : > { %v871_v39 = vmax.f32 %v850_v32, 0.0  ;;  %1764 = vmatpush.bf16.msrb.mxu2 %v4474_v31  ;;  %v4421_v31 = vld [vmem:[#allocation11 + $0x60] sm:$0xf] }
 0x140   : > { %v880_v41 = vpack.c.bf16 %v871_v39, %v870_v38  ;;  %v5512_v38 = vld [vmem:[#allocation11 + $0xcc] sm:$0xf0] }
 0x141   : > { %v4470_v39 = vor.u32 %v5512_v38, %v4469_v37 }
 0x142   : > { %988 = vmatmul.bf16.gmra.mxu1 %v880_v41  ;;  %v5544_v41 = vld [vmem:[#allocation11 + $0x1cc] sm:$0xf0] }
 0x143   : > { %v852_v48 = vpop.f32.mrf.mxu0  ;;  %v4598_v42 = vor.u32 %v5544_v41, %v4597_v40  ;;  %1666 = vmatpush.bf16.msrb.mxu0 %v4470_v39 }
 0x144   : > { %v853_v60 = vadd.f32 %v6553_v26, %v852_v48  ;;  %v5506_v48 = vld [vmem:[#allocation11 + $0xa4] sm:$0xf] }
 0x145   : > { %1715 = vmatpush.bf16.msrb.mxu1 %v4598_v42  ;;  %v4458_v50 = vor.u32 %v5506_v48, %v4455_v49  ;;  %v5494_v42 = vld [vmem:[#allocation11 + $0x44] sm:$0xf]  ;;  %v4405_v48 = vld [vmem:[#allocation11 + $0x40] sm:$0xf] }
 0x146   : > { %v872_v0 = vmax.f32 %v853_v60, 0.0  ;;  %v5540_v60 = vld [vmem:[#allocation11 + $0x1ac] sm:$0xf0] }
 0x147   : > { %1765 = vmatpush.bf16.msrb.mxu2 %v4458_v50  ;;  %v4582_v61 = vor.u32 %v5540_v60, %v4581_v59  ;;  %1667 = vmatpush.bf16.msrb.mxu0 %v4454_v58  ;;  %v5522_v58 = vld [vmem:[#allocation11 + $0x124] sm:$0xf]  ;;  %v4394_v59 = vor.u32 %v5490_v56, %v4391_v57  ;;  %v4519_v60 = vld [vmem:[#allocation11 + $0x130] sm:$0xf0] }
 0x149   : > { %1716 = vmatpush.bf16.msrb.mxu1 %v4582_v61  ;;  %v4522_v61 = vor.u32 %v5522_v58, %v4519_v60  ;;  %v5511_v58 = vld [vmem:[#allocation11 + $0xcc] sm:$0xf] }
 0x14a   : > { %v5543_v60 = vld [vmem:[#allocation11 + $0x1cc] sm:$0xf] }
 0x14b   : > { %v855_v62 = vpop.f32.mrf.mxu0 }
 0x14c   : > { %v856_v63 = vadd.f32 %v6553_v26, %v855_v62  ;;  %v5546_v26 = vld [vmem:[#allocation11 + $0x1e4] sm:$0xf] }
 0x14d   : > { %v4618_v16 = vor.u32 %v5546_v26, %v4615_v14  ;;  %v4565_v14 = vld [vmem:[#allocation11 + $0x180] sm:$0xf] }
 0x14e   : > { %v873_v1 = vmax.f32 %v856_v63, 0.0 }
 0x14f   : > { %1812 = vmatpush.bf16.msrb.mxu3 %v4618_v16 }
 0x150   : > { %v881_v2 = vpack.c.bf16 %v873_v1, %v872_v0 }
 0x152   : > { %993 = vmatmul.bf16.gmra.mxu1 %v881_v2 }
 0x153   : > { %1813 = vmatpush.bf16.msrb.mxu3 %v4602_v36 }
 0x157   : > { %1814 = vmatpush.bf16.msrb.mxu3 %v4586_v55  ;;  %v4534_v55 = vor.u32 %v5528_v53, %v4533_v52 }
 0x15f   : > { %v959_v3 = vpop.f32.mrf.mxu1 }
 0x160   : > { %v960_v5 = vadd.f32 %v6667_v4, %v959_v3  ;;  %v5502_v3 = vld [vmem:[#allocation11 + $0x84] sm:$0xf] }
 0x162   : > { %v999_v8 = vmax.f32 %v960_v5, 0.0  ;;  %v4439_v5 = vld [vmem:[#allocation11 + $0x90] sm:$0xf0] }
 0x167   : > { %v961_v6 = vpop.f32.mrf.mxu1 }
 0x168   : > { %v962_v7 = vadd.f32 %v6667_v4, %v961_v6  ;;  %v4442_v6 = vor.u32 %v5502_v3, %v4439_v5 }
 0x16a   : > { %v1000_v9 = vmax.f32 %v962_v7, 0.0  ;;  %1766 = vmatpush.bf16.msrb.mxu2 %v4442_v6  ;;  %v4389_v6 = vld [vmem:[#allocation11 + $0x20] sm:$0xf] }
 0x16c   : > { %v1015_v13 = vpack.c.bf16 %v1000_v9, %v999_v8  ;;  %v5534_v8 = vld [vmem:[#allocation11 + $0x184] sm:$0xf]  ;;  %v4567_v9 = vld [vmem:[#allocation11 + $0x190] sm:$0xf0] }
 0x16d   : > { %v4570_v11 = vor.u32 %v5534_v8, %v4567_v9  ;;  %v4517_v8 = vld [vmem:[#allocation11 + $0x120] sm:$0xf] }
 0x16e   : > { %1133 = vmatmul.bf16.vlgmr.msra.gmra.mxu2 %v1015_v13  ;;  %1182 = vmatmul.bf16.vlgmr.msra.gmra.mxu3 %v1015_v13  ;;  %v5504_v13 = vld [vmem:[#allocation11 + $0x8c] sm:$0xf0] }
 0x16f   : > { %v964_v15 = vpop.f32.mrf.mxu1  ;;  %1815 = vmatpush.bf16.msrb.mxu3 %v4570_v11  ;;  %v4438_v26 = vor.u32 %v5504_v13, %v4437_v12 }
 0x170   : > { %v965_v23 = vadd.f32 %v6667_v4, %v964_v15  ;;  %v5536_v15 = vld [vmem:[#allocation11 + $0x18c] sm:$0xf0] }
 0x171   : > { %v4566_v16 = vor.u32 %v5536_v15, %v4565_v14  ;;  %1668 = vmatpush.bf16.msrb.mxu0 %v4438_v26 }
 0x172   : > { %v1001_v27 = vmax.f32 %v965_v23, 0.0  ;;  %v4423_v23 = vld [vmem:[#allocation11 + $0x70] sm:$0xf0] }
 0x173   : > { %1717 = vmatpush.bf16.msrb.mxu1 %v4566_v16  ;;  %v5486_v16 = vld [vmem:[#allocation11 + $0x4] sm:$0xf] }
 0x177   : > { %v966_v24 = vpop.f32.mrf.mxu1 }
 0x178   : > { %v967_v25 = vadd.f32 %v6667_v4, %v966_v24  ;;  %v4426_v24 = vor.u32 %v5498_v22, %v4423_v23 }
 0x17a   : > { %v1002_v28 = vmax.f32 %v967_v25, 0.0  ;;  %1767 = vmatpush.bf16.msrb.mxu2 %v4426_v24  ;;  %v5520_v24 = vld [vmem:[#allocation11 + $0x10c] sm:$0xf0] }
 0x17c   : > { %v1016_v32 = vpack.c.bf16 %v1002_v28, %v1001_v27  ;;  %v5530_v27 = vld [vmem:[#allocation11 + $0x164] sm:$0xf]  ;;  %v4551_v28 = vld [vmem:[#allocation11 + $0x170] sm:$0xf0] }
 0x17d   : > { %v4554_v30 = vor.u32 %v5530_v27, %v4551_v28  ;;  %v4503_v27 = vld [vmem:[#allocation11 + $0x110] sm:$0xf0] }
 0x17e   : > { %1138 = vmatmul.bf16.gmra.mxu2 %v1016_v32  ;;  %1187 = vmatmul.bf16.gmra.mxu3 %v1016_v32  ;;  %v5500_v32 = vld [vmem:[#allocation11 + $0x6c] sm:$0xf0] }
 0x17f   : > { %v969_v35 = vpop.f32.mrf.mxu1  ;;  %1816 = vmatpush.bf16.msrb.mxu3 %v4554_v30  ;;  %v4422_v33 = vor.u32 %v5500_v32, %v4421_v31  ;;  %v4495_v30 = vld [vmem:[#allocation11 + $0xf8] sm:$0xf0]  ;;  %v5547_v31 = vld [vmem:[#allocation11 + $0x1ec] sm:$0xf] }
 0x180   : > { %v970_v43 = vadd.f32 %v6667_v4, %v969_v35  ;;  %v5532_v35 = vld [vmem:[#allocation11 + $0x16c] sm:$0xf0] }
 0x181   : > { %v4550_v36 = vor.u32 %v5532_v35, %v4549_v34  ;;  %1669 = vmatpush.bf16.msrb.mxu0 %v4422_v33  ;;  %v4623_v33 = vld [vmem:[#allocation11 + $0x1f8] sm:$0xf0]  ;;  %v1039_v35 = vld [vmem:[%s7215_s7] sm:$0x3] }
 0x182   : > { %v1003_v46 = vmax.f32 %v970_v43, 0.0  ;;  %v4407_v43 = vld [vmem:[#allocation11 + $0x50] sm:$0xf0]  ;;  %v4626_v34 = vor.u32 %v5547_v31, %v4623_v33  ;;  %v4589_v31 = vld [vmem:[#allocation11 + $0x1a8] sm:$0xf] }
 0x183   : > { %1718 = vmatpush.bf16.msrb.mxu1 %v4550_v36 }
 0x187   : > { %v971_v44 = vpop.f32.mrf.mxu1  ;;  %1719 = vmatpush.bf16.msrb.mxu1 %v4534_v55 }
 0x188   : > { %v972_v45 = vadd.f32 %v6667_v4, %v971_v44  ;;  %v4410_v44 = vor.u32 %v5494_v42, %v4407_v43  ;;  %v4621_v43 = vld [vmem:[#allocation11 + $0x1e8] sm:$0xf] }
 0x18a   : > { %v1004_v47 = vmax.f32 %v972_v45, 0.0  ;;  %1768 = vmatpush.bf16.msrb.mxu2 %v4410_v44  ;;  %v5549_v44 = vld [vmem:[#allocation11 + $0x1f4] sm:$0xf0] }
 0x18c   : > { %v1017_v51 = vpack.c.bf16 %v1004_v47, %v1003_v46  ;;  %v5526_v46 = vld [vmem:[#allocation11 + $0x144] sm:$0xf]  ;;  %v4535_v47 = vld [vmem:[#allocation11 + $0x150] sm:$0xf0] }
 0x18d   : > { %v4538_v50 = vor.u32 %v5526_v46, %v4535_v47 }
 0x18e   : > { %1143 = vmatmul.bf16.gmra.mxu2 %v1017_v51  ;;  %1192 = vmatmul.bf16.gmra.mxu3 %v1017_v51  ;;  %v5496_v51 = vld [vmem:[#allocation11 + $0x4c] sm:$0xf0] }
 0x18f   : > { %v974_v54 = vpop.f32.mrf.mxu1  ;;  %1817 = vmatpush.bf16.msrb.mxu3 %v4538_v50  ;;  %1769 = vmatpush.bf16.msrb.mxu2 %v4394_v59  ;;  %v4479_v59 = vld [vmem:[#allocation11 + $0xd8] sm:$0xf0] }
 0x190   : > { %v975_v62 = vadd.f32 %v6667_v4, %v974_v54  ;;  %v4406_v54 = vor.u32 %v5496_v51, %v4405_v48 }
 0x192   : > { %v1005_v1 = vmax.f32 %v975_v62, 0.0  ;;  %1670 = vmatpush.bf16.msrb.mxu0 %v4406_v54 }
 0x193   : > { %1818 = vmatpush.bf16.msrb.mxu3 %v4522_v61  ;;  %v4482_v61 = vor.u32 %v5511_v58, %v4479_v59  ;;  %v4445_v58 = vld [vmem:[#allocation11 + $0x88] sm:$0xf]  ;;  %v5505_v59 = vld [vmem:[#allocation11 + $0x94] sm:$0xf0] }
 0x197   : > { %v976_v63 = vpop.f32.mrf.mxu1 }
 0x198   : > { %v977_v0 = vadd.f32 %v6667_v4, %v976_v63 }
 0x19a   : > { %v1006_v2 = vmax.f32 %v977_v0, 0.0 }
 0x19c   : > { %v1018_v7 = vpack.c.bf16 %v1006_v2, %v1005_v1 }
 0x19e   : > { %1148 = vmatmul.bf16.gmra.mxu2 %v1018_v7  ;;  %1197 = vmatmul.bf16.gmra.mxu3 %v1018_v7  ;;  %v5492_v7 = vld [vmem:[#allocation11 + $0x2c] sm:$0xf0] }
 0x19f   : > { %v979_v10 = vpop.f32.mrf.mxu1  ;;  %v4390_v9 = vor.u32 %v5492_v7, %v4389_v6  ;;  %v4605_v6 = vld [vmem:[#allocation11 + $0x1c8] sm:$0xf]  ;;  %v5545_v7 = vld [vmem:[#allocation11 + $0x1d4] sm:$0xf0] }
 0x1a0   : > { %v980_v17 = vadd.f32 %v6667_v4, %v979_v10  ;;  %v5524_v10 = vld [vmem:[#allocation11 + $0x12c] sm:$0xf0] }
 0x1a1   : > { %v4518_v12 = vor.u32 %v5524_v10, %v4517_v8  ;;  %1671 = vmatpush.bf16.msrb.mxu0 %v4390_v9  ;;  %v4606_v8 = vor.u32 %v5545_v7, %v4605_v6 }
 0x1a2   : > { %v1007_v20 = vmax.f32 %v980_v17, 0.0  ;;  %v4375_v17 = vld [vmem:[#allocation11 + $0x10] sm:$0xf0] }
 0x1a3   : > { %1720 = vmatpush.bf16.msrb.mxu1 %v4518_v12 }
 0x1a7   : > { %v981_v18 = vpop.f32.mrf.mxu1 }
 0x1a8   : > { %v982_v19 = vadd.f32 %v6667_v4, %v981_v18  ;;  %v4378_v18 = vor.u32 %v5486_v16, %v4375_v17 }
 0x1aa   : > { %v1008_v21 = vmax.f32 %v982_v19, 0.0  ;;  %v4373_v19 = vld [vmem:[#allocation11] sm:$0xf]  ;;  %1770 = vmatpush.bf16.msrb.mxu2 %v4378_v18 }
 0x1ac   : > { %v1019_v25 = vpack.c.bf16 %v1008_v21, %v1007_v20  ;;  %v5488_v20 = vld [vmem:[#allocation11 + $0xc] sm:$0xf0]  ;;  %v4501_v21 = vld [vmem:[#allocation11 + $0x100] sm:$0xf] }
 0x1ad   : > { %v4374_v23 = vor.u32 %v5488_v20, %v4373_v19  ;;  %v4502_v28 = vor.u32 %v5520_v24, %v4501_v21  ;;  %v5507_v20 = vld [vmem:[#allocation11 + $0xac] sm:$0xf]  ;;  %v4463_v21 = vld [vmem:[#allocation11 + $0xb8] sm:$0xf0] }
 0x1ae   : > { %1153 = vmatmul.bf16.gmra.mxu2 %v1019_v25  ;;  %1202 = vmatmul.bf16.gmra.mxu3 %v1019_v25  ;;  %v5518_v25 = vld [vmem:[#allocation11 + $0x104] sm:$0xf]  ;;  %v4591_v24 = vld [vmem:[#allocation11 + $0x1b8] sm:$0xf0] }
 0x1af   : > { %v984_v29 = vpop.f32.mrf.mxu1  ;;  %1672 = vmatpush.bf16.msrb.mxu0 %v4374_v23  ;;  %1721 = vmatpush.bf16.msrb.mxu1 %v4502_v28  ;;  %v4466_v23 = vor.u32 %v5507_v20, %v4463_v21 }
 0x1b0   : > { %v985_v37 = vadd.f32 %v6667_v4, %v984_v29  ;;  %v4506_v29 = vor.u32 %v5518_v25, %v4503_v27 }
 0x1b2   : > { %v1009_v40 = vmax.f32 %v985_v37, 0.0  ;;  %1819 = vmatpush.bf16.msrb.mxu3 %v4506_v29  ;;  %v4461_v29 = vld [vmem:[#allocation11 + $0xa8] sm:$0xf] }
 0x1b6   : > { %2008 = vmatpush.bf16.msra.mxu3 %v4626_v34 }
 0x1b7   : > { %v986_v38 = vpop.f32.mrf.mxu1 }
 0x1b8   : > { %v987_v39 = vadd.f32 %v6667_v4, %v986_v38  ;;  %v6688_v38 = vperm.slane %v1039_v35, 0 }
 0x1ba   : > { %v1010_v41 = vmax.f32 %v987_v39, 0.0  ;;  %v6690_v39 = vperm.slane %v1039_v35, 1 }
 0x1bc   : > { %v1020_v45 = vpack.c.bf16 %v1010_v41, %v1009_v40  ;;  %v4493_v40 = vld [vmem:[#allocation11 + $0xe8] sm:$0xf]  ;;  %v5517_v41 = vld [vmem:[#allocation11 + $0xf4] sm:$0xf0] }
 0x1bd   : > { %v4494_v42 = vor.u32 %v5517_v41, %v4493_v40 }
 0x1be   : > { %1158 = vmatmul.bf16.gmra.mxu2 %v1020_v45  ;;  %1207 = vmatmul.bf16.gmra.mxu3 %v1020_v45  ;;  %v4622_v45 = vor.u32 %v5549_v44, %v4621_v43 }
 0x1bf   : > { %v989_v49 = vpop.f32.mrf.mxu1  ;;  %1861 = vmatpush.bf16.msra.mxu0 %v4494_v42 }
 0x1c0   : > { %v990_v62 = vadd.f32 %v6667_v4, %v989_v49  ;;  %1910 = vmatpush.bf16.msra.mxu1 %v4622_v45 }
 0x1c2   : > { %v1011_v1 = vmax.f32 %v990_v62, 0.0  ;;  %v4607_v62 = vld [vmem:[#allocation11 + $0x1d8] sm:$0xf0] }
 0x1c4   : > { %1911 = vmatpush.bf16.msra.mxu1 %v4606_v8 }
 0x1c7   : > { %v991_v63 = vpop.f32.mrf.mxu1 }
 0x1c8   : > { %v992_v0 = vadd.f32 %v6667_v4, %v991_v63  ;;  %v4610_v63 = vor.u32 %v5543_v60, %v4607_v62  ;;  %v4446_v60 = vor.u32 %v5505_v59, %v4445_v58  ;;  %v5537_v62 = vld [vmem:[#allocation11 + $0x194] sm:$0xf0] }
 0x1c9   : > { %v5529_v58 = vld [vmem:[#allocation11 + $0x154] sm:$0xf0] }
 0x1ca   : > { %v1012_v2 = vmax.f32 %v992_v0, 0.0  ;;  %2009 = vmatpush.bf16.msra.mxu3 %v4610_v63 }
 0x1cc   : > { %v1021_v3 = vpack.c.bf16 %v1012_v2, %v1011_v1  ;;  %v4477_v2 = vld [vmem:[#allocation11 + $0xc8] sm:$0xf] }
 0x1ce   : > { %1163 = vmatmul.bf16.gmra.mxu2 %v1021_v3  ;;  %1212 = vmatmul.bf16.gmra.mxu3 %v1021_v3  ;;  %v5513_v3 = vld [vmem:[#allocation11 + $0xd4] sm:$0xf0] }
 0x1cf   : > { %v994_v5 = vpop.f32.mrf.mxu1 }
 0x1d0   : > { %v995_v11 = vadd.f32 %v6667_v4, %v994_v5  ;;  %v4478_v5 = vor.u32 %v5513_v3, %v4477_v2 }
 0x1d2   : > { %v1013_v14 = vmax.f32 %v995_v11, 0.0  ;;  %1862 = vmatpush.bf16.msra.mxu0 %v4478_v5 }
 0x1d7   : > { %v996_v13 = vpop.f32.mrf.mxu1 }
 0x1d8   : > { %v997_v26 = vadd.f32 %v6667_v4, %v996_v13  ;;  %v5515_v4 = vld [vmem:[#allocation11 + $0xec] sm:$0xf] }
 0x1d9   : > { %v4498_v32 = vor.u32 %v5515_v4, %v4495_v30  ;;  %v5509_v4 = vld [vmem:[#allocation11 + $0xb4] sm:$0xf0] }
 0x1da   : > { %v1014_v15 = vmax.f32 %v997_v26, 0.0  ;;  %v4462_v30 = vor.u32 %v5509_v4, %v4461_v29 }
 0x1db   : > { %1959 = vmatpush.bf16.msra.mxu2 %v4498_v32  ;;  %v5541_v32 = vld [vmem:[#allocation11 + $0x1b4] sm:$0xf0] }
 0x1dc   : > { %v1022_v22 = vpack.c.bf16 %v1014_v15, %v1013_v14  ;;  %v4590_v33 = vor.u32 %v5541_v32, %v4589_v31  ;;  %1863 = vmatpush.bf16.msra.mxu0 %v4462_v30 }
 0x1de   : > { %1168 = vmatmul.bf16.gmra.mxu2 %v1022_v22  ;;  %1217 = vmatmul.bf16.gmra.mxu3 %v1022_v22  ;;  %v5539_v22 = vld [vmem:[#allocation11 + $0x1ac] sm:$0xf] }
 0x1df   : > { %1960 = vmatpush.bf16.msra.mxu2 %v4482_v61  ;;  %v4594_v25 = vor.u32 %v5539_v22, %v4591_v24  ;;  %1912 = vmatpush.bf16.msra.mxu1 %v4590_v33  ;;  %v4573_v61 = vld [vmem:[#allocation11 + $0x188] sm:$0xf] }
 0x1e0   : > { %v4574_v63 = vor.u32 %v5537_v62, %v4573_v61  ;;  %1864 = vmatpush.bf16.msra.mxu0 %v4446_v60  ;;  %v4429_v22 = vld [vmem:[#allocation11 + $0x68] sm:$0xf] }
 0x1e1   : > { %2010 = vmatpush.bf16.msra.mxu3 %v4594_v25  ;;  %v4557_v25 = vld [vmem:[#allocation11 + $0x168] sm:$0xf] }
 0x1e3   : > { %1961 = vmatpush.bf16.msra.mxu2 %v4466_v23  ;;  %1913 = vmatpush.bf16.msra.mxu1 %v4574_v63  ;;  %v5501_v23 = vld [vmem:[#allocation11 + $0x74] sm:$0xf0] }
 0x1e4   : > { %v4430_v24 = vor.u32 %v5501_v23, %v4429_v22  ;;  %v4525_v22 = vld [vmem:[#allocation11 + $0x128] sm:$0xf] }
 0x1e6   : > { %1865 = vmatpush.bf16.msra.mxu0 %v4430_v24  ;;  %v5525_v24 = vld [vmem:[#allocation11 + $0x134] sm:$0xf0] }
 0x1f1   : > { %v1134_v36 = vpop.f32.mrf.mxu2  ;;  %v1183_v37 = vpop.f32.mrf.mxu3 }
 0x1f2   : > { %v1135_v46 = vadd.f32 %v1134_v36, %v6688_v38  ;;  %v1184_v47 = vadd.f32 %v1183_v37, %v6690_v39 }
 0x1f4   : > { %v1223_v52 = vmax.f32 %v1135_v46, 0.0  ;;  %v1224_v53 = vmax.f32 %v1184_v47, 0.0 }
 0x1f9   : > { %v1136_v48 = vpop.f32.mrf.mxu2  ;;  %v1185_v49 = vpop.f32.mrf.mxu3 }
 0x1fa   : > { %v1137_v50 = vadd.f32 %v1136_v48, %v6688_v38  ;;  %v1186_v51 = vadd.f32 %v1185_v49, %v6690_v39  ;;  %v5503_v48 = vld [vmem:[#allocation11 + $0x8c] sm:$0xf]  ;;  %v4447_v49 = vld [vmem:[#allocation11 + $0x98] sm:$0xf0] }
 0x1fc   : > { %v1225_v54 = vmax.f32 %v1137_v50, 0.0  ;;  %v1226_v55 = vmax.f32 %v1186_v51, 0.0  ;;  %v5535_v50 = vld [vmem:[#allocation11 + $0x18c] sm:$0xf]  ;;  %v4450_v51 = vor.u32 %v5503_v48, %v4447_v49  ;;  %v4543_v48 = vld [vmem:[#allocation11 + $0x158] sm:$0xf0] }
 0x1fe   : > { %v6696_v56 = vpack.c.bf16 %v1225_v54, %v1223_v52  ;;  %v6698_v57 = vpack.c.bf16 %v1226_v55, %v1224_v53  ;;  %v4575_v52 = vld [vmem:[#allocation11 + $0x198] sm:$0xf0]  ;;  %1962 = vmatpush.bf16.msra.mxu2 %v4450_v51 }
 0x1ff   : > { %v4578_v53 = vor.u32 %v5535_v50, %v4575_v52  ;;  %v4413_v52 = vld [vmem:[#allocation11 + $0x48] sm:$0xf] }
 0x200   : > { %1673 = vmatmul.bf16.vlgmr.msrb.gmra.mxu0 %v6696_v56  ;;  %1722 = vmatmul.bf16.vlgmr.msrb.gmra.mxu1 %v6698_v57 }
 0x201   : > { %1771 = vmatmul.bf16.vlgmr.msrb.gmra.mxu2 %v6696_v56  ;;  %1820 = vmatmul.bf16.vlgmr.msrb.gmra.mxu3 %v6698_v57  ;;  %v1139_v0 = vpop.f32.mrf.mxu2  ;;  %v1188_v1 = vpop.f32.mrf.mxu3 }
 0x202   : > { %v1140_v9 = vadd.f32 %v1139_v0, %v6688_v38  ;;  %v1189_v10 = vadd.f32 %v1188_v1, %v6690_v39  ;;  %2011 = vmatpush.bf16.msra.mxu3 %v4578_v53  ;;  %v5497_v53 = vld [vmem:[#allocation11 + $0x54] sm:$0xf0] }
 0x204   : > { %v1227_v14 = vmax.f32 %v1140_v9, 0.0  ;;  %v1228_v15 = vmax.f32 %v1189_v10, 0.0 }
 0x209   : > { %v1141_v11 = vpop.f32.mrf.mxu2  ;;  %v1190_v12 = vpop.f32.mrf.mxu3 }
 0x20a   : > { %v1142_v13 = vadd.f32 %v1141_v11, %v6688_v38  ;;  %v1191_v26 = vadd.f32 %v1190_v12, %v6690_v39 }
 0x20c   : > { %v1229_v16 = vmax.f32 %v1142_v13, 0.0  ;;  %v1230_v17 = vmax.f32 %v1191_v26, 0.0  ;;  %v5499_v13 = vld [vmem:[#allocation11 + $0x6c] sm:$0xf]  ;;  %v4431_v26 = vld [vmem:[#allocation11 + $0x78] sm:$0xf0] }
 0x20e   : > { %v6708_v18 = vpack.c.bf16 %v1229_v16, %v1227_v14  ;;  %v6710_v19 = vpack.c.bf16 %v1230_v17, %v1228_v15  ;;  %v5531_v14 = vld [vmem:[#allocation11 + $0x16c] sm:$0xf]  ;;  %v4434_v15 = vor.u32 %v5499_v13, %v4431_v26  ;;  %v4559_v16 = vld [vmem:[#allocation11 + $0x178] sm:$0xf0] }
 0x20f   : > { %v4562_v17 = vor.u32 %v5531_v14, %v4559_v16  ;;  %v5523_v13 = vld [vmem:[#allocation11 + $0x12c] sm:$0xf]  ;;  %v4527_v14 = vld [vmem:[#allocation11 + $0x138] sm:$0xf0] }
 0x210   : > { %1678 = vmatmul.bf16.gmra.mxu0 %v6708_v18  ;;  %1727 = vmatmul.bf16.gmra.mxu1 %v6710_v19 }
 0x211   : > { %1776 = vmatmul.bf16.gmra.mxu2 %v6708_v18  ;;  %1825 = vmatmul.bf16.gmra.mxu3 %v6710_v19  ;;  %v1144_v27 = vpop.f32.mrf.mxu2  ;;  %v1193_v28 = vpop.f32.mrf.mxu3 }
 0x212   : > { %v1145_v34 = vadd.f32 %v1144_v27, %v6688_v38  ;;  %v1194_v35 = vadd.f32 %v1193_v28, %v6690_v39  ;;  %1963 = vmatpush.bf16.msra.mxu2 %v4434_v15  ;;  %2012 = vmatpush.bf16.msra.mxu3 %v4562_v17  ;;  %v5533_v27 = vld [vmem:[#allocation11 + $0x174] sm:$0xf0]  ;;  %v4530_v15 = vor.u32 %v5523_v13, %v4527_v14 }
 0x213   : > { %v4558_v28 = vor.u32 %v5533_v27, %v4557_v25  ;;  %v5487_v25 = vld [vmem:[#allocation11 + $0xc] sm:$0xf]  ;;  %v4383_v27 = vld [vmem:[#allocation11 + $0x18] sm:$0xf0] }
 0x214   : > { %v1231_v42 = vmax.f32 %v1145_v34, 0.0  ;;  %v1232_v43 = vmax.f32 %v1194_v35, 0.0 }
 0x215   : > { %1914 = vmatpush.bf16.msra.mxu1 %v4558_v28  ;;  %v4526_v28 = vor.u32 %v5525_v24, %v4525_v22 }
 0x219   : > { %v1146_v36 = vpop.f32.mrf.mxu2  ;;  %v1195_v37 = vpop.f32.mrf.mxu3 }
 0x21a   : > { %v1147_v40 = vadd.f32 %v1146_v36, %v6688_v38  ;;  %v1196_v41 = vadd.f32 %v1195_v37, %v6690_v39 }
 0x21c   : > { %v1233_v44 = vmax.f32 %v1147_v40, 0.0  ;;  %v1234_v45 = vmax.f32 %v1196_v41, 0.0 }
 0x21e   : > { %v6720_v46 = vpack.c.bf16 %v1233_v44, %v1231_v42  ;;  %v6722_v47 = vpack.c.bf16 %v1234_v45, %v1232_v43  ;;  %v5495_v42 = vld [vmem:[#allocation11 + $0x4c] sm:$0xf]  ;;  %v4415_v43 = vld [vmem:[#allocation11 + $0x58] sm:$0xf0] }
 0x21f   : > { %v5527_v44 = vld [vmem:[#allocation11 + $0x14c] sm:$0xf]  ;;  %v4418_v45 = vor.u32 %v5495_v42, %v4415_v43  ;;  %v5489_v42 = vld [vmem:[#allocation11 + $0x14] sm:$0xf0]  ;;  %v4509_v43 = vld [vmem:[#allocation11 + $0x108] sm:$0xf] }
 0x220   : > { %1683 = vmatmul.bf16.gmra.mxu0 %v6720_v46  ;;  %1732 = vmatmul.bf16.gmra.mxu1 %v6722_v47  ;;  %v4546_v49 = vor.u32 %v5527_v44, %v4543_v48 }
 0x221   : > { %1781 = vmatmul.bf16.gmra.mxu2 %v6720_v46  ;;  %1830 = vmatmul.bf16.gmra.mxu3 %v6722_v47  ;;  %v1149_v54 = vpop.f32.mrf.mxu2  ;;  %v1198_v55 = vpop.f32.mrf.mxu3 }
 0x222   : > { %v1150_v0 = vadd.f32 %v1149_v54, %v6688_v38  ;;  %v1199_v1 = vadd.f32 %v1198_v55, %v6690_v39  ;;  %1964 = vmatpush.bf16.msra.mxu2 %v4418_v45  ;;  %2013 = vmatpush.bf16.msra.mxu3 %v4546_v49  ;;  %v4414_v54 = vor.u32 %v5497_v53, %v4413_v52  ;;  %v4541_v55 = vld [vmem:[#allocation11 + $0x148] sm:$0xf]  ;;  %v5521_v49 = vld [vmem:[#allocation11 + $0x114] sm:$0xf0]  ;;  %v4511_v52 = vld [vmem:[#allocation11 + $0x118] sm:$0xf0] }
 0x223   : > { %v4542_v59 = vor.u32 %v5529_v58, %v4541_v55 }
 0x224   : > { %v1235_v7 = vmax.f32 %v1150_v0, 0.0  ;;  %v1236_v8 = vmax.f32 %v1199_v1, 0.0  ;;  %1866 = vmatpush.bf16.msra.mxu0 %v4414_v54 }
 0x225   : > { %1915 = vmatpush.bf16.msra.mxu1 %v4542_v59 }
 0x226   : > { %2014 = vmatpush.bf16.msra.mxu3 %v4530_v15 }
 0x229   : > { %v1151_v2 = vpop.f32.mrf.mxu2  ;;  %v1200_v3 = vpop.f32.mrf.mxu3  ;;  %1916 = vmatpush.bf16.msra.mxu1 %v4526_v28 }
 0x22a   : > { %v1152_v5 = vadd.f32 %v1151_v2, %v6688_v38  ;;  %v1201_v6 = vadd.f32 %v1200_v3, %v6690_v39 }
 0x22c   : > { %v1237_v9 = vmax.f32 %v1152_v5, 0.0  ;;  %v1238_v10 = vmax.f32 %v1201_v6, 0.0 }
 0x22e   : > { %v6732_v11 = vpack.c.bf16 %v1237_v9, %v1235_v7  ;;  %v6734_v12 = vpack.c.bf16 %v1238_v10, %v1236_v8  ;;  %v5491_v9 = vld [vmem:[#allocation11 + $0x2c] sm:$0xf]  ;;  %v4399_v10 = vld [vmem:[#allocation11 + $0x38] sm:$0xf0] }
 0x22f   : > { %v4402_v26 = vor.u32 %v5491_v9, %v4399_v10 }
 0x230   : > { %1688 = vmatmul.bf16.gmra.mxu0 %v6732_v11  ;;  %1737 = vmatmul.bf16.gmra.mxu1 %v6734_v12 }
 0x231   : > { %1786 = vmatmul.bf16.gmra.mxu2 %v6732_v11  ;;  %1835 = vmatmul.bf16.gmra.mxu3 %v6734_v12  ;;  %v1154_v20 = vpop.f32.mrf.mxu2  ;;  %v1203_v21 = vpop.f32.mrf.mxu3 }
 0x232   : > { %v1155_v29 = vadd.f32 %v1154_v20, %v6688_v38  ;;  %v1204_v4 = vadd.f32 %v1203_v21, %v6690_v39  ;;  %v4397_v20 = vld [vmem:[#allocation11 + $0x28] sm:$0xf]  ;;  %v5493_v21 = vld [vmem:[#allocation11 + $0x34] sm:$0xf0]  ;;  %1965 = vmatpush.bf16.msra.mxu2 %v4402_v26 }
 0x233   : > { %v4398_v23 = vor.u32 %v5493_v21, %v4397_v20 }
 0x234   : > { %v1239_v34 = vmax.f32 %v1155_v29, 0.0  ;;  %v1240_v35 = vmax.f32 %v1204_v4, 0.0  ;;  %v4386_v29 = vor.u32 %v5487_v25, %v4383_v27 }
 0x235   : > { %1867 = vmatpush.bf16.msra.mxu0 %v4398_v23 }
 0x236   : > { %1966 = vmatpush.bf16.msra.mxu2 %v4386_v29 }
 0x239   : > { %v1156_v30 = vpop.f32.mrf.mxu2  ;;  %v1205_v31 = vpop.f32.mrf.mxu3 }
 0x23a   : > { %v1157_v32 = vadd.f32 %v1156_v30, %v6688_v38  ;;  %v1206_v33 = vadd.f32 %v1205_v31, %v6690_v39 }
 0x23c   : > { %v1241_v36 = vmax.f32 %v1157_v32, 0.0  ;;  %v1242_v37 = vmax.f32 %v1206_v33, 0.0 }
 0x23e   : > { %v6744_v40 = vpack.c.bf16 %v1241_v36, %v1239_v34  ;;  %v6746_v41 = vpack.c.bf16 %v1242_v37, %v1240_v35  ;;  %v4381_v37 = vld [vmem:[#allocation11 + $0x8] sm:$0xf] }
 0x23f   : > { %v4382_v48 = vor.u32 %v5489_v42, %v4381_v37 }
 0x240   : > { %1693 = vmatmul.bf16.gmra.mxu0 %v6744_v40  ;;  %1742 = vmatmul.bf16.gmra.mxu1 %v6746_v41 }
 0x241   : > { %1791 = vmatmul.bf16.gmra.mxu2 %v6744_v40  ;;  %1840 = vmatmul.bf16.gmra.mxu3 %v6746_v41  ;;  %v1159_v50 = vpop.f32.mrf.mxu2  ;;  %v1208_v51 = vpop.f32.mrf.mxu3 }
 0x242   : > { %v1160_v60 = vadd.f32 %v1159_v50, %v6688_v38  ;;  %v1209_v61 = vadd.f32 %v1208_v51, %v6690_v39  ;;  %v5519_v50 = vld [vmem:[#allocation11 + $0x10c] sm:$0xf]  ;;  %v4510_v51 = vor.u32 %v5521_v49, %v4509_v43  ;;  %1868 = vmatpush.bf16.msra.mxu0 %v4382_v48 }
 0x243   : > { %v4514_v55 = vor.u32 %v5519_v50, %v4511_v52 }
 0x244   : > { %v1243_v2 = vmax.f32 %v1160_v60, 0.0  ;;  %v1244_v3 = vmax.f32 %v1209_v61, 0.0  ;;  %1917 = vmatpush.bf16.msra.mxu1 %v4510_v51 }
 0x245   : > { %2015 = vmatpush.bf16.msra.mxu3 %v4514_v55 }
 0x249   : > { %v1161_v62 = vpop.f32.mrf.mxu2  ;;  %v1210_v63 = vpop.f32.mrf.mxu3 }
 0x24a   : > { %v1162_v0 = vadd.f32 %v1161_v62, %v6688_v38  ;;  %v1211_v1 = vadd.f32 %v1210_v63, %v6690_v39 }
 0x24c   : > { %v1245_v5 = vmax.f32 %v1162_v0, 0.0  ;;  %v1246_v6 = vmax.f32 %v1211_v1, 0.0 }
 0x24e   : > { %v6756_v7 = vpack.c.bf16 %v1245_v5, %v1243_v2  ;;  %v6758_v8 = vpack.c.bf16 %v1246_v6, %v1244_v3 }
 0x250   : > { %1698 = vmatmul.bf16.gmra.mxu0 %v6756_v7  ;;  %1747 = vmatmul.bf16.gmra.mxu1 %v6758_v8 }
 0x251   : > { %1796 = vmatmul.bf16.gmra.mxu2 %v6756_v7  ;;  %1845 = vmatmul.bf16.gmra.mxu3 %v6758_v8  ;;  %v1164_v16 = vpop.f32.mrf.mxu2  ;;  %v1213_v17 = vpop.f32.mrf.mxu3 }
 0x252   : > { %v1165_v4 = vadd.f32 %v1164_v16, %v6688_v38  ;;  %v1214_v30 = vadd.f32 %v1213_v17, %v6690_v39 }
 0x254   : > { %v1247_v33 = vmax.f32 %v1165_v4, 0.0  ;;  %v1248_v34 = vmax.f32 %v1214_v30, 0.0 }
 0x259   : > { %v1166_v31 = vpop.f32.mrf.mxu2  ;;  %v1215_v32 = vpop.f32.mrf.mxu3 }
 0x25a   : > { %v1167_v35 = vadd.f32 %v1166_v31, %v6688_v38  ;;  %v1216_v36 = vadd.f32 %v1215_v32, %v6690_v39 }
 0x25c   : > { %v1249_v44 = vmax.f32 %v1167_v35, 0.0  ;;  %v1250_v45 = vmax.f32 %v1216_v36, 0.0 }
 0x25e   : > { %v6768_v53 = vpack.c.bf16 %v1249_v44, %v1247_v33  ;;  %v6770_v54 = vpack.c.bf16 %v1250_v45, %v1248_v34 }
 0x260   : > { %1703 = vmatmul.bf16.gmra.mxu0 %v6768_v53  ;;  %1752 = vmatmul.bf16.gmra.mxu1 %v6770_v54 }
 0x261   : > { %1801 = vmatmul.bf16.gmra.mxu2 %v6768_v53  ;;  %1850 = vmatmul.bf16.gmra.mxu3 %v6770_v54  ;;  %v1169_v58 = vpop.f32.mrf.mxu2  ;;  %v1218_v59 = vpop.f32.mrf.mxu3 }
 0x262   : > { %v1170_v60 = vadd.f32 %v1169_v58, %v6688_v38  ;;  %v1219_v61 = vadd.f32 %v1218_v59, %v6690_v39 }
 0x264   : > { %v1251_v2 = vmax.f32 %v1170_v60, 0.0  ;;  %v1252_v3 = vmax.f32 %v1219_v61, 0.0 }
 0x269   : > { %v1171_v62 = vpop.f32.mrf.mxu2  ;;  %v1220_v63 = vpop.f32.mrf.mxu3 }
 0x26a   : > { %v1172_v0 = vadd.f32 %v1171_v62, %v6688_v38  ;;  %v1221_v1 = vadd.f32 %v1220_v63, %v6690_v39  ;;  %v6791_v38 = vld [vmem:[%s7255_s9] sm:$0xf]  ;;  %s4082_s9 = sshll.u32 %s4078_s21, 4  ;;  %s4083_s9 = int_to_ptr.hbm [resolvable:$true] %s4082_s9 }
 0x26b   : > { %v6794_v39 = vperm.slane %v6791_v38, 0  ;;  %v6802_v16 = vperm.slane %v6791_v38, 1 }
 0x26c   : > { %v1253_v5 = vmax.f32 %v1172_v0, 0.0  ;;  %v1254_v6 = vmax.f32 %v1221_v1, 0.0 }
 0x26e   : > { %v6780_v9 = vpack.c.bf16 %v1253_v5, %v1251_v2  ;;  %v6782_v10 = vpack.c.bf16 %v1254_v6, %v1252_v3 }
 0x270   : > { %1708 = vmatmul.bf16.gmra.mxu0 %v6780_v9  ;;  %1757 = vmatmul.bf16.gmra.mxu1 %v6782_v10 }
 0x271   : > { %1806 = vmatmul.bf16.gmra.mxu2 %v6780_v9  ;;  %1855 = vmatmul.bf16.gmra.mxu3 %v6782_v10 }
 0x27d   : > { %v1674_v13 = vpop.f32.mrf.mxu0  ;;  %v1723_v26 = vpop.f32.mrf.mxu1 }
 0x27e   : > { %v1675_v14 = vadd.f32 %v1674_v13, %v6794_v39 }
 0x280   : > { %v1724_v15 = vadd.f32 %v1723_v26, %v1675_v14  ;;  %1869 = vmatmul.bf16.vlgmr.msra.gmra.mxu0 %v6696_v56  ;;  %1918 = vmatmul.bf16.vlgmr.msra.gmra.mxu1 %v6698_v57 }
 0x281   : > { %1967 = vmatmul.bf16.vlgmr.msra.gmra.mxu2 %v6696_v56  ;;  %2016 = vmatmul.bf16.vlgmr.msra.gmra.mxu3 %v6698_v57 }
 0x282   : > { %v2057_v28 = vmax.f32 %v1724_v15, 0.0 }
 0x284   : > { %v1772_v17 = vpop.f32.mrf.mxu2  ;;  %v1821_v20 = vpop.f32.mrf.mxu3 }
 0x285   : > { %v1773_v21 = vadd.f32 %v1772_v17, %v6802_v16  ;;  %v1676_v22 = vpop.f32.mrf.mxu0  ;;  %v1725_v23 = vpop.f32.mrf.mxu1 }
 0x286   : > { %v1677_v24 = vadd.f32 %v1676_v22, %v6794_v39 }
 0x287   : > { %v1822_v25 = vadd.f32 %v1821_v20, %v1773_v21 }
 0x288   : > { %v1726_v27 = vadd.f32 %v1725_v23, %v1677_v24 }
 0x289   : > { %v2058_v29 = vmax.f32 %v1822_v25, 0.0 }
 0x28a   : > { %v2061_v36 = vmax.f32 %v1726_v27, 0.0 }
 0x28b   : > { %v2121_v4 = vpack.c.bf16 %v2058_v29, %v2057_v28 }
 0x28c   : > { %v1774_v30 = vpop.f32.mrf.mxu2  ;;  %v1823_v56 = vpop.f32.mrf.mxu3 }
 0x28d   : > { %v1775_v57 = vadd.f32 %v1774_v30, %v6802_v16  ;;  %v1679_v31 = vpop.f32.mrf.mxu0  ;;  %v1728_v32 = vpop.f32.mrf.mxu1  ;;  %v2153_v43 = vunpack.c.l.bf16 %v2121_v4  ;;  %v2154_v48 = vunpack.c.h.bf16 %v2121_v4 }
 0x28e   : > { %v1680_v33 = vadd.f32 %v1679_v31, %v6794_v39 }
 0x28f   : > { %v1824_v34 = vadd.f32 %v1823_v56, %v1775_v57 }
 0x290   : > { %v1729_v35 = vadd.f32 %v1728_v32, %v1680_v33  ;;  %1874 = vmatmul.bf16.gmra.mxu0 %v6708_v18  ;;  %1923 = vmatmul.bf16.gmra.mxu1 %v6710_v19 }
 0x291   : > { %v2062_v37 = vmax.f32 %v1824_v34, 0.0  ;;  %1972 = vmatmul.bf16.gmra.mxu2 %v6708_v18  ;;  %2021 = vmatmul.bf16.gmra.mxu3 %v6710_v19 }
 0x292   : > { %v2065_v18 = vmax.f32 %v1729_v35, 0.0 }
 0x293   : > { %v2123_v42 = vpack.c.bf16 %v2062_v37, %v2061_v36 }
 0x294   : > { %v1777_v44 = vpop.f32.mrf.mxu2  ;;  %v1826_v45 = vpop.f32.mrf.mxu3 }
 0x295   : > { %v2157_v49 = vunpack.c.l.bf16 %v2123_v42  ;;  %v2158_v50 = vunpack.c.h.bf16 %v2123_v42  ;;  %v1778_v51 = vadd.f32 %v1777_v44, %v6802_v16  ;;  %v1681_v52 = vpop.f32.mrf.mxu0  ;;  %v1730_v55 = vpop.f32.mrf.mxu1 }
 0x296   : > { %v1682_v58 = vadd.f32 %v1681_v52, %v6794_v39 }
 0x297   : > { %v2217_v59 = vmax.f32 %v2153_v43, %v2157_v49  ;;  %v2238_v60 = vmax.f32 %v2154_v48, %v2158_v50  ;;  %v1827_v61 = vadd.f32 %v1826_v45, %v1778_v51 }
 0x298   : > { %v1731_v62 = vadd.f32 %v1730_v55, %v1682_v58 }
 0x299   : > { %v2066_v63 = vmax.f32 %v1827_v61, 0.0 }
 0x29a   : > { %v2069_v21 = vmax.f32 %v1731_v62, 0.0 }
 0x29b   : > { %v2125_v19 = vpack.c.bf16 %v2066_v63, %v2065_v18 }
 0x29c   : > { %v1779_v0 = vpop.f32.mrf.mxu2  ;;  %v1828_v1 = vpop.f32.mrf.mxu3 }
 0x29d   : > { %v2161_v2 = vunpack.c.l.bf16 %v2125_v19  ;;  %v2162_v3 = vunpack.c.h.bf16 %v2125_v19  ;;  %v1780_v5 = vadd.f32 %v1779_v0, %v6802_v16  ;;  %v1684_v6 = vpop.f32.mrf.mxu0  ;;  %v1733_v13 = vpop.f32.mrf.mxu1 }
 0x29e   : > { %v1685_v26 = vadd.f32 %v1684_v6, %v6794_v39 }
 0x29f   : > { %v2218_v14 = vmax.f32 %v2217_v59, %v2161_v2  ;;  %v2239_v15 = vmax.f32 %v2238_v60, %v2162_v3  ;;  %v1829_v17 = vadd.f32 %v1828_v1, %v1780_v5 }
 0x2a0   : > { %v1734_v20 = vadd.f32 %v1733_v13, %v1685_v26  ;;  %1879 = vmatmul.bf16.gmra.mxu0 %v6720_v46  ;;  %1928 = vmatmul.bf16.gmra.mxu1 %v6722_v47 }
 0x2a1   : > { %v2070_v22 = vmax.f32 %v1829_v17, 0.0  ;;  %1977 = vmatmul.bf16.gmra.mxu2 %v6720_v46  ;;  %2026 = vmatmul.bf16.gmra.mxu3 %v6722_v47 }
 0x2a2   : > { %v2073_v34 = vmax.f32 %v1734_v20, 0.0 }
 0x2a3   : > { %v2127_v23 = vpack.c.bf16 %v2070_v22, %v2069_v21 }
 0x2a4   : > { %v1782_v24 = vpop.f32.mrf.mxu2  ;;  %v1831_v25 = vpop.f32.mrf.mxu3 }
 0x2a5   : > { %v2165_v27 = vunpack.c.l.bf16 %v2127_v23  ;;  %v2166_v28 = vunpack.c.h.bf16 %v2127_v23  ;;  %v1783_v29 = vadd.f32 %v1782_v24, %v6802_v16  ;;  %v1686_v4 = vpop.f32.mrf.mxu0  ;;  %v1735_v30 = vpop.f32.mrf.mxu1 }
 0x2a6   : > { %v1687_v56 = vadd.f32 %v1686_v4, %v6794_v39 }
 0x2a7   : > { %v2219_v57 = vmax.f32 %v2218_v14, %v2165_v27  ;;  %v2240_v31 = vmax.f32 %v2239_v15, %v2166_v28  ;;  %v1832_v32 = vadd.f32 %v1831_v25, %v1783_v29 }
 0x2a8   : > { %v1736_v33 = vadd.f32 %v1735_v30, %v1687_v56 }
 0x2a9   : > { %v2074_v35 = vmax.f32 %v1832_v32, 0.0 }
 0x2aa   : > { %v2077_v55 = vmax.f32 %v1736_v33, 0.0 }
 0x2ab   : > { %v2129_v46 = vpack.c.bf16 %v2074_v35, %v2073_v34 }
 0x2ac   : > { %v1784_v36 = vpop.f32.mrf.mxu2  ;;  %v1833_v47 = vpop.f32.mrf.mxu3 }
 0x2ad   : > { %v2169_v37 = vunpack.c.l.bf16 %v2129_v46  ;;  %v2170_v42 = vunpack.c.h.bf16 %v2129_v46  ;;  %v1785_v43 = vadd.f32 %v1784_v36, %v6802_v16  ;;  %v1689_v44 = vpop.f32.mrf.mxu0  ;;  %v1738_v45 = vpop.f32.mrf.mxu1 }
 0x2ae   : > { %v1690_v48 = vadd.f32 %v1689_v44, %v6794_v39 }
 0x2af   : > { %v2220_v49 = vmax.f32 %v2219_v57, %v2169_v37  ;;  %v2241_v50 = vmax.f32 %v2240_v31, %v2170_v42  ;;  %v1834_v51 = vadd.f32 %v1833_v47, %v1785_v43 }
 0x2b0   : > { %v1739_v52 = vadd.f32 %v1738_v45, %v1690_v48  ;;  %1884 = vmatmul.bf16.gmra.mxu0 %v6732_v11  ;;  %1933 = vmatmul.bf16.gmra.mxu1 %v6734_v12 }
 0x2b1   : > { %v2078_v58 = vmax.f32 %v1834_v51, 0.0  ;;  %1982 = vmatmul.bf16.gmra.mxu2 %v6732_v11  ;;  %2031 = vmatmul.bf16.gmra.mxu3 %v6734_v12 }
 0x2b2   : > { %v2081_v13 = vmax.f32 %v1739_v52, 0.0 }
 0x2b3   : > { %v2131_v59 = vpack.c.bf16 %v2078_v58, %v2077_v55 }
 0x2b4   : > { %v1787_v60 = vpop.f32.mrf.mxu2  ;;  %v1836_v61 = vpop.f32.mrf.mxu3 }
 0x2b5   : > { %v2173_v62 = vunpack.c.l.bf16 %v2131_v59  ;;  %v2174_v18 = vunpack.c.h.bf16 %v2131_v59  ;;  %v1788_v63 = vadd.f32 %v1787_v60, %v6802_v16  ;;  %v1691_v19 = vpop.f32.mrf.mxu0  ;;  %v1740_v0 = vpop.f32.mrf.mxu1 }
 0x2b6   : > { %v1692_v1 = vadd.f32 %v1691_v19, %v6794_v39 }
 0x2b7   : > { %v2221_v2 = vmax.f32 %v2220_v49, %v2173_v62  ;;  %v2242_v3 = vmax.f32 %v2241_v50, %v2174_v18  ;;  %v1837_v5 = vadd.f32 %v1836_v61, %v1788_v63 }
 0x2b8   : > { %v1741_v6 = vadd.f32 %v1740_v0, %v1692_v1 }
 0x2b9   : > { %v2082_v26 = vmax.f32 %v1837_v5, 0.0 }
 0x2ba   : > { %v2085_v29 = vmax.f32 %v1741_v6, 0.0 }
 0x2bb   : > { %v2133_v11 = vpack.c.bf16 %v2082_v26, %v2081_v13 }
 0x2bc   : > { %v1789_v14 = vpop.f32.mrf.mxu2  ;;  %v1838_v12 = vpop.f32.mrf.mxu3 }
 0x2bd   : > { %v2177_v15 = vunpack.c.l.bf16 %v2133_v11  ;;  %v2178_v17 = vunpack.c.h.bf16 %v2133_v11  ;;  %v1790_v20 = vadd.f32 %v1789_v14, %v6802_v16  ;;  %v1694_v21 = vpop.f32.mrf.mxu0  ;;  %v1743_v22 = vpop.f32.mrf.mxu1 }
 0x2be   : > { %v1695_v23 = vadd.f32 %v1694_v21, %v6794_v39 }
 0x2bf   : > { %v2222_v24 = vmax.f32 %v2221_v2, %v2177_v15  ;;  %v2243_v25 = vmax.f32 %v2242_v3, %v2178_v17  ;;  %v1839_v27 = vadd.f32 %v1838_v12, %v1790_v20 }
 0x2c0   : > { %v1744_v28 = vadd.f32 %v1743_v22, %v1695_v23  ;;  %1889 = vmatmul.bf16.gmra.mxu0 %v6744_v40  ;;  %1938 = vmatmul.bf16.gmra.mxu1 %v6746_v41 }
 0x2c1   : > { %v2086_v4 = vmax.f32 %v1839_v27, 0.0  ;;  %1987 = vmatmul.bf16.gmra.mxu2 %v6744_v40  ;;  %2036 = vmatmul.bf16.gmra.mxu3 %v6746_v41 }
 0x2c2   : > { %v2089_v37 = vmax.f32 %v1744_v28, 0.0 }
 0x2c3   : > { %v2135_v30 = vpack.c.bf16 %v2086_v4, %v2085_v29 }
 0x2c4   : > { %v1792_v56 = vpop.f32.mrf.mxu2  ;;  %v1841_v57 = vpop.f32.mrf.mxu3 }
 0x2c5   : > { %v2181_v31 = vunpack.c.l.bf16 %v2135_v30  ;;  %v2182_v32 = vunpack.c.h.bf16 %v2135_v30  ;;  %v1793_v33 = vadd.f32 %v1792_v56, %v6802_v16  ;;  %v1696_v34 = vpop.f32.mrf.mxu0  ;;  %v1745_v35 = vpop.f32.mrf.mxu1 }
 0x2c6   : > { %v1697_v43 = vadd.f32 %v1696_v34, %v6794_v39 }
 0x2c7   : > { %v2223_v46 = vmax.f32 %v2222_v24, %v2181_v31  ;;  %v2244_v36 = vmax.f32 %v2243_v25, %v2182_v32  ;;  %v1842_v47 = vadd.f32 %v1841_v57, %v1793_v33 }
 0x2c8   : > { %v1746_v52 = vadd.f32 %v1745_v35, %v1697_v43 }
 0x2c9   : > { %v2090_v42 = vmax.f32 %v1842_v47, 0.0 }
 0x2ca   : > { %v2093_v18 = vmax.f32 %v1746_v52, 0.0 }
 0x2cb   : > { %v2137_v44 = vpack.c.bf16 %v2090_v42, %v2089_v37 }
 0x2cc   : > { %v1794_v40 = vpop.f32.mrf.mxu2  ;;  %v1843_v45 = vpop.f32.mrf.mxu3 }
 0x2cd   : > { %v2185_v41 = vunpack.c.l.bf16 %v2137_v44  ;;  %v2186_v48 = vunpack.c.h.bf16 %v2137_v44  ;;  %v1795_v49 = vadd.f32 %v1794_v40, %v6802_v16  ;;  %v1699_v50 = vpop.f32.mrf.mxu0  ;;  %v1748_v51 = vpop.f32.mrf.mxu1 }
 0x2ce   : > { %v1700_v55 = vadd.f32 %v1699_v50, %v6794_v39 }
 0x2cf   : > { %v2224_v58 = vmax.f32 %v2223_v46, %v2185_v41  ;;  %v2245_v59 = vmax.f32 %v2244_v36, %v2186_v48  ;;  %v1844_v60 = vadd.f32 %v1843_v45, %v1795_v49 }
 0x2d0   : > { %v1749_v61 = vadd.f32 %v1748_v51, %v1700_v55  ;;  %1894 = vmatmul.bf16.gmra.mxu0 %v6756_v7  ;;  %1943 = vmatmul.bf16.gmra.mxu1 %v6758_v8 }
 0x2d1   : > { %v2094_v62 = vmax.f32 %v1844_v60, 0.0  ;;  %1992 = vmatmul.bf16.gmra.mxu2 %v6756_v7  ;;  %2041 = vmatmul.bf16.gmra.mxu3 %v6758_v8 }
 0x2d2   : > { %v2097_v26 = vmax.f32 %v1749_v61, 0.0 }
 0x2d3   : > { %v2139_v63 = vpack.c.bf16 %v2094_v62, %v2093_v18 }
 0x2d4   : > { %v1797_v19 = vpop.f32.mrf.mxu2  ;;  %v1846_v0 = vpop.f32.mrf.mxu3 }
 0x2d5   : > { %v1798_v1 = vadd.f32 %v1797_v19, %v6802_v16  ;;  %v1701_v2 = vpop.f32.mrf.mxu0  ;;  %v1750_v3 = vpop.f32.mrf.mxu1  ;;  %v2189_v6 = vunpack.c.l.bf16 %v2139_v63  ;;  %v2190_v13 = vunpack.c.h.bf16 %v2139_v63 }
 0x2d6   : > { %v1702_v14 = vadd.f32 %v1701_v2, %v6794_v39 }
 0x2d7   : > { %v1847_v5 = vadd.f32 %v1846_v0, %v1798_v1  ;;  %v2225_v15 = vmax.f32 %v2224_v58, %v2189_v6  ;;  %v2246_v8 = vmax.f32 %v2245_v59, %v2190_v13 }
 0x2d8   : > { %v1751_v25 = vadd.f32 %v1750_v3, %v1702_v14 }
 0x2d9   : > { %v2098_v11 = vmax.f32 %v1847_v5, 0.0 }
 0x2da   : > { %v2101_v57 = vmax.f32 %v1751_v25, 0.0 }
 0x2db   : > { %v2141_v12 = vpack.c.bf16 %v2098_v11, %v2097_v26 }
 0x2dc   : > { %v1799_v7 = vpop.f32.mrf.mxu2  ;;  %v1848_v17 = vpop.f32.mrf.mxu3 }
 0x2dd   : > { %v2193_v20 = vunpack.c.l.bf16 %v2141_v12  ;;  %v2194_v21 = vunpack.c.h.bf16 %v2141_v12  ;;  %v1800_v22 = vadd.f32 %v1799_v7, %v6802_v16  ;;  %v1704_v23 = vpop.f32.mrf.mxu0  ;;  %v1753_v24 = vpop.f32.mrf.mxu1 }
 0x2de   : > { %v1705_v27 = vadd.f32 %v1704_v23, %v6794_v39 }
 0x2df   : > { %v2226_v28 = vmax.f32 %v2225_v15, %v2193_v20  ;;  %v2247_v29 = vmax.f32 %v2246_v8, %v2194_v21  ;;  %v1849_v4 = vadd.f32 %v1848_v17, %v1800_v22  ;;  %v6863_v15 = vperm.slane %v6791_v38, 2 }
 0x2e0   : > { %v1754_v30 = vadd.f32 %v1753_v24, %v1705_v27  ;;  %1899 = vmatmul.bf16.gmra.mxu0 %v6768_v53  ;;  %1948 = vmatmul.bf16.gmra.mxu1 %v6770_v54 }
 0x2e1   : > { %v2102_v56 = vmax.f32 %v1849_v4, 0.0  ;;  %1997 = vmatmul.bf16.gmra.mxu2 %v6768_v53  ;;  %2046 = vmatmul.bf16.gmra.mxu3 %v6770_v54 }
 0x2e2   : > { %v2105_v42 = vmax.f32 %v1754_v30, 0.0 }
 0x2e3   : > { %v2143_v31 = vpack.c.bf16 %v2102_v56, %v2101_v57  ;;  %v6868_v57 = vperm.slane %v6791_v38, 3 }
 0x2e4   : > { %v1802_v32 = vpop.f32.mrf.mxu2  ;;  %v1851_v33 = vpop.f32.mrf.mxu3 }
 0x2e5   : > { %v1803_v34 = vadd.f32 %v1802_v32, %v6802_v16  ;;  %v1706_v35 = vpop.f32.mrf.mxu0  ;;  %v1755_v46 = vpop.f32.mrf.mxu1  ;;  %v2197_v47 = vunpack.c.l.bf16 %v2143_v31  ;;  %v2198_v37 = vunpack.c.h.bf16 %v2143_v31 }
 0x2e6   : > { %v1707_v44 = vadd.f32 %v1706_v35, %v6794_v39 }
 0x2e7   : > { %v1852_v36 = vadd.f32 %v1851_v33, %v1803_v34  ;;  %v2227_v45 = vmax.f32 %v2226_v28, %v2197_v47  ;;  %v2248_v54 = vmax.f32 %v2247_v29, %v2198_v37 }
 0x2e8   : > { %v1756_v55 = vadd.f32 %v1755_v46, %v1707_v44 }
 0x2e9   : > { %v2106_v43 = vmax.f32 %v1852_v36, 0.0 }
 0x2ea   : > { %v2109_v63 = vmax.f32 %v1756_v55, 0.0 }
 0x2eb   : > { %v2145_v40 = vpack.c.bf16 %v2106_v43, %v2105_v42 }
 0x2ec   : > { %v1804_v53 = vpop.f32.mrf.mxu2  ;;  %v1853_v41 = vpop.f32.mrf.mxu3 }
 0x2ed   : > { %v2201_v48 = vunpack.c.l.bf16 %v2145_v40  ;;  %v2202_v49 = vunpack.c.h.bf16 %v2145_v40  ;;  %v1805_v50 = vadd.f32 %v1804_v53, %v6802_v16  ;;  %v1709_v51 = vpop.f32.mrf.mxu0  ;;  %v1758_v52 = vpop.f32.mrf.mxu1 }
 0x2ee   : > { %v1710_v58 = vadd.f32 %v1709_v51, %v6794_v39 }
 0x2ef   : > { %v2228_v59 = vmax.f32 %v2227_v45, %v2201_v48  ;;  %v2249_v60 = vmax.f32 %v2248_v54, %v2202_v49  ;;  %v1854_v61 = vadd.f32 %v1853_v41, %v1805_v50 }
 0x2f0   : > { %v1759_v62 = vadd.f32 %v1758_v52, %v1710_v58  ;;  %1904 = vmatmul.bf16.gmra.mxu0 %v6780_v9  ;;  %1953 = vmatmul.bf16.gmra.mxu1 %v6782_v10 }
 0x2f1   : > { %v2110_v18 = vmax.f32 %v1854_v61, 0.0  ;;  %2002 = vmatmul.bf16.gmra.mxu2 %v6780_v9  ;;  %2051 = vmatmul.bf16.gmra.mxu3 %v6782_v10 }
 0x2f2   : > { %v2113_v11 = vmax.f32 %v1759_v62, 0.0 }
 0x2f3   : > { %v2147_v19 = vpack.c.bf16 %v2110_v18, %v2109_v63 }
 0x2f4   : > { %v1807_v0 = vpop.f32.mrf.mxu2  ;;  %v1856_v1 = vpop.f32.mrf.mxu3 }
 0x2f5   : > { %v1808_v2 = vadd.f32 %v1807_v0, %v6802_v16  ;;  %v1711_v3 = vpop.f32.mrf.mxu0  ;;  %v1760_v5 = vpop.f32.mrf.mxu1  ;;  %v2205_v13 = vunpack.c.l.bf16 %v2147_v19  ;;  %v2206_v26 = vunpack.c.h.bf16 %v2147_v19 }
 0x2f6   : > { %v1712_v12 = vadd.f32 %v1711_v3, %v6794_v39 }
 0x2f7   : > { %v1857_v6 = vadd.f32 %v1856_v1, %v1808_v2  ;;  %v2229_v10 = vmax.f32 %v2228_v59, %v2205_v13  ;;  %v2250_v7 = vmax.f32 %v2249_v60, %v2206_v26 }
 0x2f8   : > { %v1761_v22 = vadd.f32 %v1760_v5, %v1712_v12 }
 0x2f9   : > { %v2114_v14 = vmax.f32 %v1857_v6, 0.0 }
 0x2fa   : > { %v2117_v30 = vmax.f32 %v1761_v22, 0.0 }
 0x2fb   : > { %v2149_v9 = vpack.c.bf16 %v2114_v14, %v2113_v11 }
 0x2fc   : > { %v1809_v17 = vpop.f32.mrf.mxu2  ;;  %v1858_v8 = vpop.f32.mrf.mxu3 }
 0x2fd   : > { %v2209_v20 = vunpack.c.l.bf16 %v2149_v9  ;;  %v2210_v21 = vunpack.c.h.bf16 %v2149_v9  ;;  %v1810_v23 = vadd.f32 %v1809_v17, %v6802_v16  ;;  %v1870_v24 = vpop.f32.mrf.mxu0  ;;  %v1919_v25 = vpop.f32.mrf.mxu1 }
 0x2fe   : > { %v1871_v27 = vadd.f32 %v1870_v24, %v6863_v15 }
 0x2ff   : > { %v2230_v28 = vmax.f32 %v2229_v10, %v2209_v20  ;;  %v2251_v29 = vmax.f32 %v2250_v7, %v2210_v21  ;;  %v1859_v39 = vadd.f32 %v1858_v8, %v1810_v23 }
 0x300   : > { %v1920_v4 = vadd.f32 %v1919_v25, %v1871_v27 }
 0x301   : > { %v2118_v56 = vmax.f32 %v1859_v39, 0.0 }
 0x302   : > { %v2059_v40 = vmax.f32 %v1920_v4, 0.0 }
 0x303   : > { %v2151_v31 = vpack.c.bf16 %v2118_v56, %v2117_v30 }
 0x304   : > { %v1968_v32 = vpop.f32.mrf.mxu2  ;;  %v2017_v33 = vpop.f32.mrf.mxu3 }
 0x305   : > { %v2213_v34 = vunpack.c.l.bf16 %v2151_v31  ;;  %v2214_v35 = vunpack.c.h.bf16 %v2151_v31  ;;  %v1969_v16 = vadd.f32 %v1968_v32, %v6868_v57  ;;  %v1872_v46 = vpop.f32.mrf.mxu0  ;;  %v1921_v36 = vpop.f32.mrf.mxu1 }
 0x306   : > { %v1873_v53 = vadd.f32 %v1872_v46, %v6863_v15  ;;  %v4997_v46 = vld [vmem:[#allocation12 + $0x2e0] sm:$0xf] }
 0x307   : > { %v2231_v47 = vmax.f32 %v2230_v28, %v2213_v34  ;;  %v2252_v37 = vmax.f32 %v2251_v29, %v2214_v35  ;;  %v2018_v42 = vadd.f32 %v2017_v33, %v1969_v16 }
 0x308   : > { %v1922_v58 = vadd.f32 %v1921_v36, %v1873_v53  ;;  %v5644_v36 = vld [vmem:[#allocation12 + $0x2ec] sm:$0xf0] }
 0x309   : > { %v2232_v43 = vrot.slane %v2231_v47, 4  ;;  %v2253_v44 = vrot.slane %v2252_v37, 4  ;;  %v2060_v45 = vmax.f32 %v2018_v42, 0.0  ;;  %v4998_v42 = vor.u32 %v5644_v36, %v4997_v46  ;;  %v5572_v46 = vld [vmem:[#allocation12 + $0xac] sm:$0xf0] }
 0x30a   : > { %v2063_v1 = vmax.f32 %v1922_v58, 0.0  ;;  %v5093_v36 = vld [vmem:[#allocation12 + $0x3a0] sm:$0xf] }
 0x30b   : > { %v2233_v38 = vmax.f32 %v2231_v47, %v2232_v43  ;;  %v2254_v41 = vmax.f32 %v2252_v37, %v2253_v44  ;;  %v2122_v54 = vpack.c.bf16 %v2060_v45, %v2059_v40  ;;  %v4741_v47 = vld [vmem:[#allocation12 + $0xe0] sm:$0xf]  ;;  %v5580_v43 = vld [vmem:[#allocation12 + $0xec] sm:$0xf0]  ;;  %3169 = vmatpush.bf16.msrb.mxu2 %v4998_v42 }
 0x30c   : > { %v1970_v48 = vpop.f32.mrf.mxu2  ;;  %v2019_v49 = vpop.f32.mrf.mxu3  ;;  %v5125_v44 = vld [vmem:[#allocation12 + $0x3e0] sm:$0xf]  ;;  %v5676_v40 = vld [vmem:[#allocation12 + $0x3ec] sm:$0xf0]  ;;  %v4742_v53 = vor.u32 %v5580_v43, %v4741_v47 }
 0x30d   : > { %v2234_v50 = vrot.slane %v2233_v38, 2  ;;  %v2255_v51 = vrot.slane %v2254_v41, 2  ;;  %v1875_v52 = vpop.f32.mrf.mxu0  ;;  %v1924_v55 = vpop.f32.mrf.mxu1  ;;  %v1971_v59 = vadd.f32 %v1970_v48, %v6868_v57  ;;  %v2155_v21 = vunpack.c.l.bf16 %v2122_v54  ;;  %v5668_v47 = vld [vmem:[#allocation12 + $0x3ac] sm:$0xf0]  ;;  %v4837_v43 = vld [vmem:[#allocation12 + $0x1a0] sm:$0xf] }
 0x30e   : > { %v1876_v60 = vadd.f32 %v1875_v52, %v6863_v15  ;;  %v2156_v22 = vunpack.c.h.bf16 %v2122_v54  ;;  %v5612_v54 = vld [vmem:[#allocation12 + $0x1ec] sm:$0xf0]  ;;  %3143 = vmatpush.bf16.msrb.mxu0 %v4742_v53  ;;  %v5094_v42 = vor.u32 %v5668_v47, %v5093_v36 }
 0x30f   : > { %v2235_v61 = vmax.f32 %v2233_v38, %v2234_v50  ;;  %v2256_v62 = vmax.f32 %v2254_v41, %v2255_v51  ;;  %v2020_v18 = vadd.f32 %v2019_v49, %v1971_v59  ;;  %v5126_v38 = vor.u32 %v5676_v40, %v5125_v44  ;;  %v4869_v41 = vld [vmem:[#allocation12 + $0x1e0] sm:$0xf]  ;;  %v5604_v44 = vld [vmem:[#allocation12 + $0x1ac] sm:$0xf0] }
 0x310   : > { %v1925_v63 = vadd.f32 %v1924_v55, %v1876_v60  ;;  %v4870_v48 = vor.u32 %v5612_v54, %v4869_v41  ;;  %v4838_v40 = vor.u32 %v5604_v44, %v4837_v43  ;;  %v4677_v43 = vld [vmem:[#allocation12 + $0x60] sm:$0xf] }
 0x311   : > { %v2236_v19 = vrot.slane %v2235_v61, 1  ;;  %v2257_v0 = vrot.slane %v2256_v62, 1  ;;  %v2064_v2 = vmax.f32 %v2020_v18, 0.0  ;;  %3182 = vmatpush.bf16.msrb.mxu3 %v5126_v38 }
 0x312   : > { %v2067_v8 = vmax.f32 %v1925_v63, 0.0  ;;  %3156 = vmatpush.bf16.msrb.mxu1 %v4870_v48 }
 0x313   : > { %v2237_v3 = vmax.f32 %v2235_v61, %v2236_v19  ;;  %v2258_v5 = vmax.f32 %v2256_v62, %v2257_v0  ;;  %v2124_v6 = vpack.c.bf16 %v2064_v2, %v2063_v1 }
 0x314   : > { %v1973_v13 = vpop.f32.mrf.mxu2  ;;  %v2022_v26 = vpop.f32.mrf.mxu3 }
 0x315   : > { %v6874_v11 = vpack.c.bf16 %v2258_v5, %v2237_v3  ;;  %v1974_v14 = vadd.f32 %v1973_v13, %v6868_v57  ;;  %v1877_v12 = vpop.f32.mrf.mxu0  ;;  %v1926_v9 = vpop.f32.mrf.mxu1  ;;  %v2159_v7 = vunpack.c.l.bf16 %v2124_v6  ;;  %v2160_v17 = vunpack.c.h.bf16 %v2124_v6 }
 0x316   : > { %v1878_v24 = vadd.f32 %v1877_v12, %v6863_v15 }
 0x317   : > { %v2023_v10 = vadd.f32 %v2022_v26, %v1974_v14  ;;  %v2259_v25 = vmax.f32 %v2155_v21, %v2159_v7  ;;  %v2280_v29 = vmax.f32 %v2156_v22, %v2160_v17  ;;  %v4725_v7 = vld [vmem:[#allocation12 + $0xc0] sm:$0xf]  ;;  %v5672_v21 = vld [vmem:[#allocation12 + $0x3cc] sm:$0xf0] }
 0x318   : > { %v1927_v35 = vadd.f32 %v1926_v9, %v1878_v24  ;;  %v4981_v9 = vld [vmem:[#allocation12 + $0x2c0] sm:$0xf] }
 0x319   : > { %v2068_v20 = vmax.f32 %v2023_v10, 0.0  ;;  %v5640_v10 = vld [vmem:[#allocation12 + $0x2cc] sm:$0xf0]  ;;  %v4853_v24 = vld [vmem:[#allocation12 + $0x1c0] sm:$0xf] }
 0x31a   : > { %v2071_v49 = vmax.f32 %v1927_v35, 0.0  ;;  %v4982_v17 = vor.u32 %v5640_v10, %v4981_v9  ;;  %v4709_v35 = vld [vmem:[#allocation12 + $0xa0] sm:$0xf] }
 0x31b   : > { %v2126_v23 = vpack.c.bf16 %v2068_v20, %v2067_v8  ;;  %v5576_v8 = vld [vmem:[#allocation12 + $0xcc] sm:$0xf0]  ;;  %v5109_v20 = vld [vmem:[#allocation12 + $0x3c0] sm:$0xf] }
 0x31c   : > { %v1975_v27 = vpop.f32.mrf.mxu2  ;;  %v2024_v28 = vpop.f32.mrf.mxu3  ;;  %v4726_v22 = vor.u32 %v5576_v8, %v4725_v7  ;;  %3170 = vmatpush.bf16.msrb.mxu2 %v4982_v17 }
 0x31d   : > { %v2163_v39 = vunpack.c.l.bf16 %v2126_v23  ;;  %v2164_v4 = vunpack.c.h.bf16 %v2126_v23  ;;  %v1976_v30 = vadd.f32 %v1975_v27, %v6868_v57  ;;  %v1880_v56 = vpop.f32.mrf.mxu0  ;;  %v1929_v31 = vpop.f32.mrf.mxu1  ;;  %v5110_v23 = vor.u32 %v5672_v21, %v5109_v20 }
 0x31e   : > { %v1881_v32 = vadd.f32 %v1880_v56, %v6863_v15  ;;  %3144 = vmatpush.bf16.msrb.mxu0 %v4726_v22 }
 0x31f   : > { %v2260_v33 = vmax.f32 %v2259_v25, %v2163_v39  ;;  %v2281_v34 = vmax.f32 %v2280_v29, %v2164_v4  ;;  %v2025_v16 = vadd.f32 %v2024_v28, %v1976_v30  ;;  %v5608_v25 = vld [vmem:[#allocation12 + $0x1cc] sm:$0xf0]  ;;  %3183 = vmatpush.bf16.msrb.mxu3 %v5110_v23 }
 0x320   : > { %v1930_v37 = vadd.f32 %v1929_v31, %v1881_v32  ;;  %v4854_v27 = vor.u32 %v5608_v25, %v4853_v24 }
 0x321   : > { %v2072_v45 = vmax.f32 %v2025_v16, 0.0 }
 0x322   : > { %v2075_v18 = vmax.f32 %v1930_v37, 0.0  ;;  %3157 = vmatpush.bf16.msrb.mxu1 %v4854_v27  ;;  %v4710_v37 = vor.u32 %v5572_v46, %v4709_v35 }
 0x323   : > { %v2128_v52 = vpack.c.bf16 %v2072_v45, %v2071_v49  ;;  %3184 = vmatpush.bf16.msrb.mxu3 %v5094_v42  ;;  %v5628_v42 = vld [vmem:[#allocation12 + $0x26c] sm:$0xf0] }
 0x324   : > { %v1978_v50 = vpop.f32.mrf.mxu2  ;;  %v2027_v51 = vpop.f32.mrf.mxu3  ;;  %3145 = vmatpush.bf16.msrb.mxu0 %v4710_v37  ;;  %v4933_v37 = vld [vmem:[#allocation12 + $0x260] sm:$0xf] }
 0x325   : > { %v1979_v55 = vadd.f32 %v1978_v50, %v6868_v57  ;;  %v6881_v58 = vpop.f32.mrf.mxu0  ;;  %v6883_v59 = vpop.f32.mrf.mxu1  ;;  %v2167_v61 = vunpack.c.l.bf16 %v2128_v52  ;;  %v2168_v62 = vunpack.c.h.bf16 %v2128_v52  ;;  %v5632_v52 = vld [vmem:[#allocation12 + $0x28c] sm:$0xf0] }
 0x326   : > { %3158 = vmatpush.bf16.msrb.mxu1 %v4838_v40  ;;  %v1883_v7 = vadd.f32 %v6881_v58, %v6863_v15  ;;  %v4934_v40 = vor.u32 %v5628_v42, %v4933_v37  ;;  %v4901_v37 = vld [vmem:[#allocation12 + $0x220] sm:$0xf] }
 0x327   : > { %v2028_v60 = vadd.f32 %v2027_v51, %v1979_v55  ;;  %v2261_v2 = vmax.f32 %v2260_v33, %v2167_v61  ;;  %v2282_v3 = vmax.f32 %v2281_v34, %v2168_v62  ;;  %v4965_v33 = vld [vmem:[#allocation12 + $0x2a0] sm:$0xf]  ;;  %v5636_v34 = vld [vmem:[#allocation12 + $0x2ac] sm:$0xf0] }
 0x328   : > { %v4966_v16 = vor.u32 %v5636_v34, %v4965_v33  ;;  %v4949_v51 = vld [vmem:[#allocation12 + $0x280] sm:$0xf]  ;;  %v5568_v61 = vld [vmem:[#allocation12 + $0x8c] sm:$0xf0]  ;;  %v1932_v25 = vadd.f32 %v6883_v59, %v1883_v7 }
 0x329   : > { %v2076_v63 = vmax.f32 %v2028_v60, 0.0  ;;  %v4693_v55 = vld [vmem:[#allocation12 + $0x80] sm:$0xf]  ;;  %v4950_v60 = vor.u32 %v5632_v52, %v4949_v51  ;;  %v5660_v51 = vld [vmem:[#allocation12 + $0x36c] sm:$0xf0] }
 0x32a   : > { %3171 = vmatpush.bf16.msrb.mxu2 %v4966_v16  ;;  %v5077_v62 = vld [vmem:[#allocation12 + $0x380] sm:$0xf] }
 0x32b   : > { %v2130_v19 = vpack.c.bf16 %v2076_v63, %v2075_v18  ;;  %v5664_v18 = vld [vmem:[#allocation12 + $0x38c] sm:$0xf0]  ;;  %v4694_v63 = vor.u32 %v5568_v61, %v4693_v55  ;;  %v4805_v61 = vld [vmem:[#allocation12 + $0x160] sm:$0xf] }
 0x32c   : > { %v6885_v0 = vpop.f32.mrf.mxu2  ;;  %v6887_v1 = vpop.f32.mrf.mxu3 }
 0x32d   : > { %v2171_v5 = vunpack.c.l.bf16 %v2130_v19  ;;  %v2172_v6 = vunpack.c.h.bf16 %v2130_v19  ;;  %v6889_v13 = vpop.f32.mrf.mxu0  ;;  %v6891_v26 = vpop.f32.mrf.mxu1  ;;  %v5078_v19 = vor.u32 %v5664_v18, %v5077_v62  ;;  %3146 = vmatpush.bf16.msrb.mxu0 %v4694_v63 }
 0x32e   : > { %3172 = vmatpush.bf16.msrb.mxu2 %v4950_v60  ;;  %v1886_v17 = vadd.f32 %v6889_v13, %v6863_v15 }
 0x32f   : > { %v6893_v14 = vmax.f32 %v2261_v2, %v2171_v5  ;;  %v6895_v12 = vmax.f32 %v2282_v3, %v2172_v6  ;;  %v4821_v2 = vld [vmem:[#allocation12 + $0x180] sm:$0xf]  ;;  %v5600_v3 = vld [vmem:[#allocation12 + $0x18c] sm:$0xf0]  ;;  %v1981_v6 = vadd.f32 %v6885_v0, %v6868_v57  ;;  %3185 = vmatpush.bf16.msrb.mxu3 %v5078_v19 }
 0x330   : > { %v4822_v5 = vor.u32 %v5600_v3, %v4821_v2  ;;  %v1935_v58 = vadd.f32 %v6891_v26, %v1886_v17 }
 0x331   : > { %v2030_v24 = vadd.f32 %v6887_v1, %v1981_v6  ;;  %v4789_v6 = vld [vmem:[#allocation12 + $0x140] sm:$0xf] }
 0x332   : > { %3159 = vmatpush.bf16.msrb.mxu1 %v4822_v5  ;;  %v2083_v1 = vmax.f32 %v1935_v58, 0.0  ;;  %3173 = vmatpush.bf16.msrb.mxu2 %v4934_v40  ;;  %v5560_v5 = vld [vmem:[#allocation12 + $0x4c] sm:$0xf0] }
 0x333   : > { %v2080_v35 = vmax.f32 %v2030_v24, 0.0 }
 0x334   : > { %v1983_v28 = vpop.f32.mrf.mxu2  ;;  %v2032_v29 = vpop.f32.mrf.mxu3 }
 0x335   : > { %v1887_v39 = vpop.f32.mrf.mxu0  ;;  %v1936_v4 = vpop.f32.mrf.mxu1  ;;  %v1984_v8 = vadd.f32 %v1983_v28, %v6868_v57 }
 0x336   : > { %v1888_v22 = vadd.f32 %v1887_v39, %v6863_v15 }
 0x337   : > { %v2033_v27 = vadd.f32 %v2032_v29, %v1984_v8 }
 0x338   : > { %v1937_v33 = vadd.f32 %v1936_v4, %v1888_v22  ;;  %v4917_v22 = vld [vmem:[#allocation12 + $0x240] sm:$0xf] }
 0x339   : > { %v2084_v46 = vmax.f32 %v2033_v27, 0.0  ;;  %v5045_v27 = vld [vmem:[#allocation12 + $0x340] sm:$0xf] }
 0x33a   : > { %v2087_v29 = vmax.f32 %v1937_v33, 0.0  ;;  %v5656_v33 = vld [vmem:[#allocation12 + $0x34c] sm:$0xf0] }
 0x33b   : > { %v2134_v3 = vpack.c.bf16 %v2084_v46, %v2083_v1  ;;  %v4645_v46 = vld [vmem:[#allocation12 + $0x20] sm:$0xf] }
 0x33c   : > { %v1985_v30 = vpop.f32.mrf.mxu2  ;;  %v2034_v56 = vpop.f32.mrf.mxu3 }
 0x33d   : > { %v1890_v31 = vpop.f32.mrf.mxu0  ;;  %v1939_v32 = vpop.f32.mrf.mxu1  ;;  %v1986_v0 = vadd.f32 %v1985_v30, %v6868_v57  ;;  %v2179_v1 = vunpack.c.l.bf16 %v2134_v3 }
 0x33e   : > { %v1891_v23 = vadd.f32 %v1890_v31, %v6863_v15  ;;  %v2079_v31 = vmax.f32 %v1932_v25, 0.0 }
 0x33f   : > { %v2035_v13 = vadd.f32 %v2034_v56, %v1986_v0 }
 0x340   : > { %v6916_v34 = vadd.f32 %v1939_v32, %v1891_v23  ;;  %v2132_v47 = vpack.c.bf16 %v2080_v35, %v2079_v31  ;;  %v5046_v35 = vor.u32 %v5656_v33, %v5045_v27  ;;  %v4743_v33 = vld [vmem:[#allocation12 + $0xf0] sm:$0xf0] }
 0x341   : > { %v2088_v4 = vmax.f32 %v2035_v13, 0.0 }
 0x342   : > { %v2091_v56 = vmax.f32 %v6916_v34, 0.0  ;;  %v2175_v19 = vunpack.c.l.bf16 %v2132_v47  ;;  %v2176_v2 = vunpack.c.h.bf16 %v2132_v47 }
 0x344   : > { %v1988_v45 = vpop.f32.mrf.mxu2  ;;  %v2037_v53 = vpop.f32.mrf.mxu3  ;;  %v2284_v31 = vmax.f32 %v6895_v12, %v2176_v2  ;;  %v5620_v12 = vld [vmem:[#allocation12 + $0x22c] sm:$0xf0] }
 0x345   : > { %v1892_v38 = vpop.f32.mrf.mxu0  ;;  %v1941_v41 = vpop.f32.mrf.mxu1  ;;  %v1989_v28 = vadd.f32 %v1988_v45, %v6868_v57  ;;  %v5564_v45 = vld [vmem:[#allocation12 + $0x6c] sm:$0xf0]  ;;  %v4902_v40 = vor.u32 %v5620_v12, %v4901_v37  ;;  %v5606_v12 = vld [vmem:[#allocation12 + $0x1c4] sm:$0xf] }
 0x346   : > { %v1893_v39 = vadd.f32 %v1892_v38, %v6863_v15  ;;  %v5061_v38 = vld [vmem:[#allocation12 + $0x360] sm:$0xf]  ;;  %v4678_v55 = vor.u32 %v5564_v45, %v4677_v43 }
 0x347   : > { %v2038_v32 = vadd.f32 %v2037_v53, %v1989_v28  ;;  %v5062_v60 = vor.u32 %v5660_v51, %v5061_v38  ;;  %v5596_v53 = vld [vmem:[#allocation12 + $0x16c] sm:$0xf0]  ;;  %v5029_v45 = vld [vmem:[#allocation12 + $0x320] sm:$0xf] }
 0x348   : > { %v6930_v44 = vadd.f32 %v1941_v41, %v1893_v39  ;;  %v4806_v41 = vor.u32 %v5596_v53, %v4805_v61  ;;  %3147 = vmatpush.bf16.msrb.mxu0 %v4678_v55  ;;  %v2263_v39 = vmax.f32 %v6893_v14, %v2175_v19  ;;  %v5588_v14 = vld [vmem:[#allocation12 + $0x12c] sm:$0xf0]  ;;  %v4629_v53 = vld [vmem:[#allocation12] sm:$0xf] }
 0x349   : > { %v2092_v62 = vmax.f32 %v2038_v32, 0.0  ;;  %3186 = vmatpush.bf16.msrb.mxu3 %v5062_v60  ;;  %v5652_v38 = vld [vmem:[#allocation12 + $0x32c] sm:$0xf0] }
 0x34a   : > { %3160 = vmatpush.bf16.msrb.mxu1 %v4806_v41  ;;  %v2095_v0 = vmax.f32 %v6930_v44, 0.0  ;;  %v2264_v55 = vmax.f32 %v2263_v39, %v2179_v1  ;;  %v5642_v1 = vld [vmem:[#allocation12 + $0x2e4] sm:$0xf] }
 0x34b   : > { %v6958_v32 = vpack.c.bf16 %v2092_v62, %v2091_v56  ;;  %v4757_v62 = vld [vmem:[#allocation12 + $0x100] sm:$0xf] }
 0x34c   : > { %v1990_v54 = vpop.f32.mrf.mxu2  ;;  %v2039_v48 = vpop.f32.mrf.mxu3 }
 0x34d   : > { %v1895_v49 = vpop.f32.mrf.mxu0  ;;  %v6897_v50 = vpop.f32.mrf.mxu1  ;;  %v1991_v59 = vadd.f32 %v1990_v54, %v6868_v57  ;;  %3187 = vmatpush.bf16.msrb.mxu3 %v5046_v35  ;;  %v2188_v35 = vunpack.c.h.bf16 %v6958_v32 }
 0x34e   : > { %v1896_v52 = vadd.f32 %v1895_v49, %v6863_v15  ;;  %v6937_v49 = vpack.c.bf16 %v2088_v4, %v2087_v29  ;;  %v4773_v29 = vld [vmem:[#allocation12 + $0x120] sm:$0xf] }
 0x34f   : > { %v6932_v54 = vadd.f32 %v2039_v48, %v1991_v59  ;;  %v4661_v48 = vld [vmem:[#allocation12 + $0x40] sm:$0xf]  ;;  %v5556_v59 = vld [vmem:[#allocation12 + $0x2c] sm:$0xf0]  ;;  %v4774_v44 = vor.u32 %v5588_v14, %v4773_v29 }
 0x350   : > { %v4662_v8 = vor.u32 %v5560_v5, %v4661_v48  ;;  %v6944_v24 = vadd.f32 %v6897_v50, %v1896_v52  ;;  %v2180_v50 = vunpack.c.h.bf16 %v2134_v3  ;;  %v2183_v4 = vunpack.c.l.bf16 %v6937_v49  ;;  %v5584_v3 = vld [vmem:[#allocation12 + $0x10c] sm:$0xf0] }
 0x351   : > { %v2096_v23 = vmax.f32 %v6932_v54, 0.0  ;;  %v4646_v47 = vor.u32 %v5556_v59, %v4645_v46  ;;  %v5030_v52 = vor.u32 %v5652_v38, %v5029_v45  ;;  %v5616_v48 = vld [vmem:[#allocation12 + $0x20c] sm:$0xf0] }
 0x352   : > { %3148 = vmatpush.bf16.msrb.mxu0 %v4662_v8  ;;  %v2099_v42 = vmax.f32 %v6944_v24, 0.0  ;;  %v2285_v60 = vmax.f32 %v2284_v31, %v2180_v50  ;;  %v2265_v5 = vmax.f32 %v2264_v55, %v2183_v4  ;;  %v4758_v8 = vor.u32 %v5584_v3, %v4757_v62  ;;  %v5674_v50 = vld [vmem:[#allocation12 + $0x3e4] sm:$0xf]  ;;  %v4983_v55 = vld [vmem:[#allocation12 + $0x2d0] sm:$0xf0] }
 0x353   : > { %3188 = vmatpush.bf16.msrb.mxu3 %v5030_v52  ;;  %v5638_v52 = vld [vmem:[#allocation12 + $0x2c4] sm:$0xf]  ;;  %v5111_v24 = vld [vmem:[#allocation12 + $0x3d0] sm:$0xf0] }
 0x354   : > { %v1993_v9 = vpop.f32.mrf.mxu2  ;;  %v6901_v10 = vpop.f32.mrf.mxu3  ;;  %v5670_v62 = vld [vmem:[#allocation12 + $0x3c4] sm:$0xf] }
 0x355   : > { %v1897_v20 = vpop.f32.mrf.mxu0  ;;  %v6908_v21 = vpop.f32.mrf.mxu1  ;;  %v1994_v18 = vadd.f32 %v1993_v9, %v6868_v57  ;;  %v5592_v9 = vld [vmem:[#allocation12 + $0x14c] sm:$0xf0]  ;;  %v5570_v3 = vld [vmem:[#allocation12 + $0xa4] sm:$0xf] }
 0x356   : > { %v1898_v63 = vadd.f32 %v1897_v20, %v6863_v15  ;;  %v5624_v20 = vld [vmem:[#allocation12 + $0x24c] sm:$0xf0]  ;;  %v4790_v58 = vor.u32 %v5592_v9, %v4789_v6  ;;  %3149 = vmatpush.bf16.msrb.mxu0 %v4646_v47  ;;  %v5013_v9 = vld [vmem:[#allocation12 + $0x300] sm:$0xf]  ;;  %v4727_v47 = vld [vmem:[#allocation12 + $0xd0] sm:$0xf0] }
 0x357   : > { %v6949_v13 = vadd.f32 %v6901_v10, %v1994_v18  ;;  %v4918_v28 = vor.u32 %v5624_v20, %v4917_v22  ;;  %v2184_v10 = vunpack.c.h.bf16 %v6937_v49  ;;  %v2187_v18 = vunpack.c.l.bf16 %v6958_v32  ;;  %v5648_v22 = vld [vmem:[#allocation12 + $0x30c] sm:$0xf0]  ;;  %v5578_v20 = vld [vmem:[#allocation12 + $0xe4] sm:$0xf] }
 0x358   : > { %v6952_v34 = vadd.f32 %v6908_v21, %v1898_v63  ;;  %3161 = vmatpush.bf16.msrb.mxu1 %v4790_v58  ;;  %v6971_v63 = vpack.c.bf16 %v2096_v23, %v2095_v0  ;;  %v5014_v27 = vor.u32 %v5648_v22, %v5013_v9  ;;  %v4746_v31 = vor.u32 %v5578_v20, %v4743_v33  ;;  %v5574_v32 = vld [vmem:[#allocation12 + $0xc4] sm:$0xf] }
 0x359   : > { %3174 = vmatpush.bf16.msrb.mxu2 %v4918_v28  ;;  %v2100_v56 = vmax.f32 %v6949_v13, 0.0  ;;  %v2286_v6 = vmax.f32 %v2285_v60, %v2184_v10  ;;  %v5610_v13 = vld [vmem:[#allocation12 + $0x1e4] sm:$0xf]  ;;  %v4871_v28 = vld [vmem:[#allocation12 + $0x1f0] sm:$0xf0]  ;;  %v2266_v46 = vmax.f32 %v2265_v5, %v2187_v18  ;;  %v4730_v37 = vor.u32 %v5574_v32, %v4727_v47 }
 0x35a   : > { %v2103_v51 = vmax.f32 %v6952_v34, 0.0  ;;  %v2191_v59 = vunpack.c.l.bf16 %v6971_v63  ;;  %v4874_v29 = vor.u32 %v5610_v13, %v4871_v28  ;;  %v5127_v10 = vld [vmem:[#allocation12 + $0x3f0] sm:$0xf0]  ;;  %3189 = vmatpush.bf16.msrb.mxu3 %v5014_v27  ;;  %v5666_v34 = vld [vmem:[#allocation12 + $0x3a4] sm:$0xf]  ;;  %v6260_v33 = vmov 0.0  }
 0x35b   : > { %v5095_v13 = vld [vmem:[#allocation12 + $0x3b0] sm:$0xf0] }
 0x35c   : > { %v6920_v16 = vpop.f32.mrf.mxu2  ;;  %v6922_v30 = vpop.f32.mrf.mxu3  ;;  %3162 = vmatpush.bf16.msrb.mxu1 %v4774_v44  ;;  %v6991_v44 = vpack.c.bf16 %v2100_v56, %v2099_v42  ;;  %v2287_v42 = vmax.f32 %v2286_v6, %v2188_v35  ;;  %v2192_v56 = vunpack.c.h.bf16 %v6971_v63  ;;  %v2267_v18 = vmax.f32 %v2266_v46, %v2191_v59  ;;  %v4839_v63 = vld [vmem:[#allocation12 + $0x1b0] sm:$0xf0]  ;;  %v5634_v6 = vld [vmem:[#allocation12 + $0x2a4] sm:$0xf] }
 0x35d   : > { %v6925_v26 = vpop.f32.mrf.mxu0  ;;  %v6928_v36 = vpop.f32.mrf.mxu1  ;;  %v1996_v43 = vadd.f32 %v6920_v16, %v6868_v57  ;;  %v5552_v16 = vld [vmem:[#allocation12 + $0xc] sm:$0xf0]  ;;  %3175 = vmatpush.bf16.msrb.mxu2 %v4902_v40 }
 0x35e   : > { %v1901_v54 = vadd.f32 %v6925_v26, %v6863_v15  ;;  %v4630_v2 = vor.u32 %v5552_v16, %v4629_v53  ;;  %v4885_v26 = vld [vmem:[#allocation12 + $0x200] sm:$0xf]  ;;  %v2311_v53 = vlaneseq  ;;  %v4986_v16 = vor.u32 %v5638_v52, %v4983_v55 }
 0x35f   : > { %v6974_v49 = vadd.f32 %v6922_v30, %v1996_v43  ;;  %v4886_v58 = vor.u32 %v5616_v48, %v4885_v26  ;;  %v4855_v43 = vld [vmem:[#allocation12 + $0x1d0] sm:$0xf0]  ;;  %v5602_v48 = vld [vmem:[#allocation12 + $0x1a4] sm:$0xf]  ;;  %v2288_v28 = vmax.f32 %v2287_v42, %v2192_v56 }
 0x360   : > { %v6977_v0 = vadd.f32 %v6928_v36, %v1901_v54  ;;  %3150 = vmatpush.bf16.msrb.mxu0 %v4630_v2  ;;  %v4999_v36 = vld [vmem:[#allocation12 + $0x2f0] sm:$0xf0]  ;;  %3163 = vmatpush.bf16.msrb.mxu1 %v4758_v8  ;;  %v4858_v54 = vor.u32 %v5606_v12, %v4855_v43  ;;  %v5114_v2 = vor.u32 %v5670_v62, %v5111_v24  ;;  %vm7002_vm2 = vcmp.lt.s32.totalorder %v2311_v53, 512  ;;  %v5594_v53 = vld [vmem:[#allocation12 + $0x164] sm:$0xf] }
 0x361   : > { %3176 = vmatpush.bf16.msrb.mxu2 %v4886_v58  ;;  %v5002_v4 = vor.u32 %v5642_v1, %v4999_v36  ;;  %v4711_v26 = vld [vmem:[#allocation12 + $0xb0] sm:$0xf0]  ;;  %v4842_v20 = vor.u32 %v5602_v48, %v4839_v63  ;;  %2315 = vst.msk [vmem:[#allocation2] sm:$0xf] %vm7002_vm2, %v6260_v33  ;;  %v5598_v36 = vld [vmem:[#allocation12 + $0x184] sm:$0xf] }
 0x362   : > { %v2107_v40 = vmax.f32 %v6977_v0, 0.0  ;;  %v4714_v22 = vor.u32 %v5570_v3, %v4711_v26  ;;  %v4967_v0 = vld [vmem:[#allocation12 + $0x2b0] sm:$0xf0] }
 0x363   : > { %v4695_v1 = vld [vmem:[#allocation12 + $0x90] sm:$0xf0] }
 0x364   : > { %v1998_v7 = vpop.f32.mrf.mxu2  ;;  %v6939_v17 = vpop.f32.mrf.mxu3  ;;  %3195 = vmatpush.bf16.msra.mxu0 %v4746_v31  ;;  %3208 = vmatpush.bf16.msra.mxu1 %v4874_v29  ;;  %v5566_v31 = vld [vmem:[#allocation12 + $0x84] sm:$0xf]  ;;  %v4807_v56 = vld [vmem:[#allocation12 + $0x170] sm:$0xf0] }
 0x365   : > { %v6946_v25 = vpop.f32.mrf.mxu0  ;;  %v6960_v21 = vpop.f32.mrf.mxu1  ;;  %v1999_v61 = vadd.f32 %v1998_v7, %v6868_v57  ;;  %3221 = vmatpush.bf16.msra.mxu2 %v5002_v4  ;;  %v4698_v29 = vor.u32 %v5566_v31, %v4695_v1  ;;  %v4823_v4 = vld [vmem:[#allocation12 + $0x190] sm:$0xf0]  ;;  %v4810_v26 = vor.u32 %v5594_v53, %v4807_v56  ;;  %v5554_v1 = vld [vmem:[#allocation12 + $0x24] sm:$0xf] }
 0x366   : > { %v1903_v39 = vadd.f32 %v6946_v25, %v6863_v15  ;;  %v5130_v25 = vor.u32 %v5674_v50, %v5127_v10  ;;  %v5630_v10 = vld [vmem:[#allocation12 + $0x284] sm:$0xf]  ;;  %v4887_v53 = vld [vmem:[#allocation12 + $0x210] sm:$0xf0] }
 0x367   : > { %v6982_v30 = vadd.f32 %v6939_v17, %v1999_v61  ;;  %v2104_v17 = vmax.f32 %v6974_v49, 0.0 }
 0x368   : > { %v1952_v61 = vadd.f32 %v6960_v21, %v1903_v39  ;;  %3234 = vmatpush.bf16.msra.mxu3 %v5130_v25  ;;  %3196 = vmatpush.bf16.msra.mxu0 %v4730_v37  ;;  %v5098_v39 = vor.u32 %v5666_v34, %v5095_v13  ;;  %v4951_v25 = vld [vmem:[#allocation12 + $0x290] sm:$0xf0]  ;;  %v5662_v37 = vld [vmem:[#allocation12 + $0x384] sm:$0xf] }
 0x369   : > { %v2108_v60 = vmax.f32 %v6982_v30, 0.0  ;;  %v6999_v5 = vpack.c.bf16 %v2104_v17, %v2103_v51  ;;  %3209 = vmatpush.bf16.msra.mxu1 %v4858_v54  ;;  %3222 = vmatpush.bf16.msra.mxu2 %v4986_v16  ;;  %v2195_v51 = vunpack.c.l.bf16 %v6991_v44  ;;  %v4970_v30 = vor.u32 %v5634_v6, %v4967_v0  ;;  %v5558_v6 = vld [vmem:[#allocation12 + $0x44] sm:$0xf]  ;;  %v4791_v34 = vld [vmem:[#allocation12 + $0x150] sm:$0xf0] }
 0x36a   : > { %v2111_v58 = vmax.f32 %v1952_v61, 0.0  ;;  %v4679_v61 = vld [vmem:[#allocation12 + $0x70] sm:$0xf0] }
 0x36b   : > { %v2146_v35 = vpack.c.bf16 %v2108_v60, %v2107_v40  ;;  %v2199_v50 = vunpack.c.l.bf16 %v6999_v5  ;;  %v2200_v32 = vunpack.c.h.bf16 %v6999_v5  ;;  %v2268_v12 = vmax.f32 %v2267_v18, %v2195_v51  ;;  %v5079_v40 = vld [vmem:[#allocation12 + $0x390] sm:$0xf0]  ;;  %v5562_v60 = vld [vmem:[#allocation12 + $0x64] sm:$0xf] }
 0x36c   : > { %v2000_v41 = vpop.f32.mrf.mxu2  ;;  %v2049_v19 = vpop.f32.mrf.mxu3  ;;  %3235 = vmatpush.bf16.msra.mxu3 %v5114_v2  ;;  %3197 = vmatpush.bf16.msra.mxu0 %v4714_v22  ;;  %v5082_v55 = vor.u32 %v5662_v37, %v5079_v40  ;;  %v4682_v42 = vor.u32 %v5562_v60, %v4679_v61  ;;  %v5626_v18 = vld [vmem:[#allocation12 + $0x264] sm:$0xf]  ;;  %v4759_v60 = vld [vmem:[#allocation12 + $0x110] sm:$0xf0] }
 0x36d   : > { %v1905_v7 = vpop.f32.mrf.mxu0  ;;  %v2001_v23 = vadd.f32 %v2000_v41, %v6868_v57  ;;  %v1954_v38 = vpop.f32.mrf.mxu1  ;;  %3210 = vmatpush.bf16.msra.mxu1 %v4842_v20  ;;  %3223 = vmatpush.bf16.msra.mxu2 %v4970_v30  ;;  %v2269_v16 = vmax.f32 %v2268_v12, %v2199_v50  ;;  %v5658_v5 = vld [vmem:[#allocation12 + $0x364] sm:$0xf] }
 0x36e   : > { %v1906_v14 = vadd.f32 %v1905_v7, %v6863_v15  ;;  %v5622_v51 = vld [vmem:[#allocation12 + $0x244] sm:$0xf] }
 0x36f   : > { %v2050_v45 = vadd.f32 %v2049_v19, %v2001_v23  ;;  %v2196_v23 = vunpack.c.h.bf16 %v6991_v44  ;;  %v4954_v44 = vor.u32 %v5630_v10, %v4951_v25  ;;  %v5586_v50 = vld [vmem:[#allocation12 + $0x124] sm:$0xf] }
 0x370   : > { %v1955_v21 = vadd.f32 %v1954_v38, %v1906_v14  ;;  %v4826_v14 = vor.u32 %v5598_v36, %v4823_v4  ;;  %3236 = vmatpush.bf16.msra.mxu3 %v5098_v39  ;;  %3198 = vmatpush.bf16.msra.mxu0 %v4698_v29  ;;  %v4647_v36 = vld [vmem:[#allocation12 + $0x30] sm:$0xf0]  ;;  %v5618_v10 = vld [vmem:[#allocation12 + $0x224] sm:$0xf] }
 0x371   : > { %v2112_v8 = vmax.f32 %v2050_v45, 0.0  ;;  %v2289_v43 = vmax.f32 %v2288_v28, %v2196_v23  ;;  %v2204_v45 = vunpack.c.h.bf16 %v2146_v35  ;;  %3224 = vmatpush.bf16.msra.mxu2 %v4954_v44  ;;  %v4919_v23 = vld [vmem:[#allocation12 + $0x250] sm:$0xf0]  ;;  %v5654_v28 = vld [vmem:[#allocation12 + $0x344] sm:$0xf] }
 0x372   : > { %v2115_v17 = vmax.f32 %v1955_v21, 0.0  ;;  %3211 = vmatpush.bf16.msra.mxu1 %v4826_v14  ;;  %v5063_v21 = vld [vmem:[#allocation12 + $0x370] sm:$0xf0]  ;;  %v4922_v31 = vor.u32 %v5622_v51, %v4919_v23  ;;  %v5614_v61 = vld [vmem:[#allocation12 + $0x204] sm:$0xf]  ;;  %v2303_v23 = vunpack.c.l.bf16 %v6874_v11 }
 0x373   : > { %v7013_v47 = vpack.c.bf16 %v2112_v8, %v2111_v58  ;;  %v4663_v8 = vld [vmem:[#allocation12 + $0x50] sm:$0xf0] }
 0x374   : > { %v2003_v41 = vpop.f32.mrf.mxu2  ;;  %v2052_v19 = vpop.f32.mrf.mxu3  ;;  %3237 = vmatpush.bf16.msra.mxu3 %v5082_v55  ;;  %3199 = vmatpush.bf16.msra.mxu0 %v4682_v42  ;;  %v4666_v13 = vor.u32 %v5558_v6, %v4663_v8  ;;  %v4775_v4 = vld [vmem:[#allocation12 + $0x130] sm:$0xf0]  ;;  %v2304_v8 = vunpack.c.h.bf16 %v6874_v11  ;;  %v4877_v11 = vld [vmem:[#allocation12 + $0x1e8] sm:$0xf] }
 0x375   : > { %v2004_v49 = vadd.f32 %v2003_v41, %v6868_v57  ;;  %v1907_v9 = vpop.f32.mrf.mxu0  ;;  %v1956_v54 = vpop.f32.mrf.mxu1  ;;  %v4935_v41 = vld [vmem:[#allocation12 + $0x270] sm:$0xf0]  ;;  %v2207_v2 = vunpack.c.l.bf16 %v7013_v47  ;;  %v4778_v44 = vor.u32 %v5586_v50, %v4775_v4  ;;  %v5613_v50 = vld [vmem:[#allocation12 + $0x1f4] sm:$0xf0]  ;;  %v5133_v4 = vld [vmem:[#allocation12 + $0x3e8] sm:$0xf] }
 0x376   : > { %v1908_v59 = vadd.f32 %v1907_v9, %v6863_v15  ;;  %v2203_v15 = vunpack.c.l.bf16 %v2146_v35  ;;  %v4938_v48 = vor.u32 %v5626_v18, %v4935_v41  ;;  %v5590_v9 = vld [vmem:[#allocation12 + $0x144] sm:$0xf]  ;;  %v5047_v35 = vld [vmem:[#allocation12 + $0x350] sm:$0xf0]  ;;  %3212 = vmatpush.bf16.msra.mxu1 %v4810_v26  ;;  %v4890_v41 = vor.u32 %v5614_v61, %v4887_v53  ;;  %v5117_v61 = vld [vmem:[#allocation12 + $0x3c8] sm:$0xf] }
 0x377   : > { %v2053_v27 = vadd.f32 %v2052_v19, %v2004_v49  ;;  %v2290_v19 = vmax.f32 %v2289_v43, %v2200_v32  ;;  %v2208_v49 = vunpack.c.h.bf16 %v7013_v47  ;;  %v4794_v39 = vor.u32 %v5590_v9, %v4791_v34  ;;  %v4903_v32 = vld [vmem:[#allocation12 + $0x230] sm:$0xf0]  ;;  %v5673_v53 = vld [vmem:[#allocation12 + $0x3d4] sm:$0xf0] }
 0x378   : > { %v1957_v62 = vadd.f32 %v1956_v54, %v1908_v59  ;;  %v2270_v22 = vmax.f32 %v2269_v16, %v2203_v15  ;;  %3225 = vmatpush.bf16.msra.mxu2 %v4938_v48  ;;  %v5050_v29 = vor.u32 %v5654_v28, %v5047_v35  ;;  %v5031_v14 = vld [vmem:[#allocation12 + $0x330] sm:$0xf0]  ;;  %3200 = vmatpush.bf16.msra.mxu0 %v4666_v13  ;;  %v5550_v15 = vld [vmem:[#allocation12 + $0x4] sm:$0xf]  ;;  %v6262_v35 = vmov 1  }
 0x379   : > { %v2116_v46 = vmax.f32 %v2053_v27, 0.0  ;;  %v2291_v20 = vmax.f32 %v2290_v19, %v2204_v45  ;;  %v4650_v43 = vor.u32 %v5554_v1, %v4647_v36  ;;  %v4906_v40 = vor.u32 %v5618_v10, %v4903_v32  ;;  %v4631_v45 = vld [vmem:[#allocation12 + $0x10] sm:$0xf0]  ;;  %v5646_v16 = vld [vmem:[#allocation12 + $0x304] sm:$0xf] }
 0x37a   : > { %v2119_v27 = vmax.f32 %v1957_v62, 0.0  ;;  %v2271_v30 = vmax.f32 %v2270_v22, %v2207_v2  ;;  %3213 = vmatpush.bf16.msra.mxu1 %v4794_v39  ;;  %v5015_v62 = vld [vmem:[#allocation12 + $0x310] sm:$0xf0]  ;;  %v4634_v56 = vor.u32 %v5550_v15, %v4631_v45  ;;  %v4749_v1 = vld [vmem:[#allocation12 + $0xe8] sm:$0xf] }
 0x37b   : > { %v7015_v38 = vpack.c.bf16 %v2116_v46, %v2115_v17  ;;  %v2292_v46 = vmax.f32 %v2291_v20, %v2208_v49  ;;  %v5650_v17 = vld [vmem:[#allocation12 + $0x324] sm:$0xf]  ;;  %v6261_v49 = vmov 0   ;;  %v2482_v6 = vld [vmem:[%s615_s4] sm:$0x1]  ;;  %s4070_s4 = scalar_lea.sflag [#allocation5], %s6487_s14 }
 0x37c   : > { %v2005_v52 = vpop.f32.mrf.mxu2  ;;  %v2054_v3 = vpop.f32.mrf.mxu3  ;;  %3226 = vmatpush.bf16.msra.mxu2 %v4922_v31  ;;  %v5034_v55 = vor.u32 %v5650_v17, %v5031_v14  ;;  %3201 = vmatpush.bf16.msra.mxu0 %v4650_v43  ;;  %v5581_v36 = vld [vmem:[#allocation12 + $0xf4] sm:$0xf0] }
 0x37d   : > { %v2006_v24 = vadd.f32 %v2005_v52, %v6868_v57  ;;  %v5066_v57 = vor.u32 %v5658_v5, %v5063_v21  ;;  %v2211_v0 = vunpack.c.l.bf16 %v7015_v38  ;;  %v2212_v58 = vunpack.c.h.bf16 %v7015_v38  ;;  %v5582_v38 = vld [vmem:[#allocation12 + $0x104] sm:$0xf]  ;;  %5901 = vset.pattern.permute.xlu0 %v6261_v49  ;;  %v5677_v14 = vld [vmem:[#allocation12 + $0x3f4] sm:$0xf0]  ;;  %v4701_v49 = vld [vmem:[#allocation12 + $0x88] sm:$0xf] }
 0x37e   : > { %3214 = vmatpush.bf16.msra.mxu1 %v4778_v44  ;;  %v4762_v18 = vor.u32 %v5582_v38, %v4759_v60  ;;  %2487 = vperm.xlu0 %5901, %v2482_v6   ;;  %v5577_v15 = vld [vmem:[#allocation12 + $0xd4] sm:$0xf0]  ;;  %v5134_v38 = vor.u32 %v5677_v14, %v5133_v4  ;;  %v4797_v4 = vld [vmem:[#allocation12 + $0x148] sm:$0xf] }
 0x37f   : > { %v2055_v63 = vadd.f32 %v2054_v3, %v2006_v24  ;;  %3238 = vmatpush.bf16.msra.mxu3 %v5066_v57  ;;  %v2272_v47 = vmax.f32 %v2271_v30, %v2211_v0  ;;  %v2293_v25 = vmax.f32 %v2292_v46, %v2212_v58  ;;  %v5018_v3 = vor.u32 %v5646_v16, %v5015_v62  ;;  %v5005_v46 = vld [vmem:[#allocation12 + $0x2e8] sm:$0xf]  ;;  %v5641_v60 = vld [vmem:[#allocation12 + $0x2d4] sm:$0xf0] }
 0x380   : > { %3227 = vmatpush.bf16.msra.mxu2 %v4906_v40  ;;  %3202 = vmatpush.bf16.msra.mxu0 %v4634_v56  ;;  %v2321_v0 = vrot.slane %v2304_v8, 7  ;;  %v6263_v30 = vmov 2   ;;  %v4733_v40 = vld [vmem:[#allocation12 + $0xc8] sm:$0xf]  ;;  %v5657_v14 = vld [vmem:[#allocation12 + $0x354] sm:$0xf0] }
 0x381   : > { %v2120_v33 = vmax.f32 %v2055_v63, 0.0  ;;  %5903 = vset.pattern.permute.xlu1 %v6263_v30  ;;  %v4734_v16 = vor.u32 %v5577_v15, %v4733_v40  ;;  %v4829_v8 = vld [vmem:[#allocation12 + $0x188] sm:$0xf]  ;;  %v5557_v15 = vld [vmem:[#allocation12 + $0x34] sm:$0xf0] }
 0x382   : > { %3215 = vmatpush.bf16.msra.mxu1 %v4762_v18  ;;  %v2325_v13 = vsel %vm2324_vm3, %v2303_v23, %v2321_v0  ;;  %3373 = vperm.xlu1 %5903, %v2482_v6   ;;  %v5118_v18 = vor.u32 %v5673_v53, %v5117_v61  ;;  %v5085_v0 = vld [vmem:[#allocation12 + $0x388] sm:$0xf]  ;;  %v5653_v53 = vld [vmem:[#allocation12 + $0x334] sm:$0xf0] }
 0x383   : > { %v2152_v59 = vpack.c.bf16 %v2120_v33, %v2119_v27  ;;  %3239 = vmatpush.bf16.msra.mxu3 %v5050_v29  ;;  %v2316_v33 = vld [vmem:[#allocation2] sm:$0xf]  ;;  %v4653_v40 = vld [vmem:[#allocation12 + $0x28] sm:$0xf] }
 0x384   : > { %3228 = vmatpush.bf16.msra.mxu2 %v4890_v41  ;;  %v5645_v29 = vld [vmem:[#allocation12 + $0x2f4] sm:$0xf0]  ;;  %v4845_v41 = vld [vmem:[#allocation12 + $0x1a8] sm:$0xf] }
 0x385   : > { %v2215_v37 = vunpack.c.l.bf16 %v2152_v59  ;;  %v2216_v12 = vunpack.c.h.bf16 %v2152_v59  ;;  %v5006_v45 = vor.u32 %v5645_v29, %v5005_v46  ;;  %v5561_v46 = vld [vmem:[#allocation12 + $0x54] sm:$0xf0]  ;;  %v5037_v61 = vld [vmem:[#allocation12 + $0x328] sm:$0xf] }
 0x386   : > { %5902 = vset.pattern.permute.xlu0 %v6262_v35  ;;  %v5597_v35 = vld [vmem:[#allocation12 + $0x174] sm:$0xf0] }
 0x387   : > { %v2273_v54 = vmax.f32 %v2272_v47, %v2215_v37  ;;  %v2294_v52 = vmax.f32 %v2293_v25, %v2216_v12  ;;  %3240 = vmatpush.bf16.msra.mxu3 %v5034_v55  ;;  %3352 = vperm.xlu0 %5902, %v2482_v6   ;;  %v4750_v25 = vor.u32 %v5581_v36, %v4749_v1  ;;  %v4989_v55 = vld [vmem:[#allocation12 + $0x2c8] sm:$0xf]  ;;  %v5661_v1 = vld [vmem:[#allocation12 + $0x374] sm:$0xf0] }
 0x388   : > { %v4878_v37 = vor.u32 %v5613_v50, %v4877_v11  ;;  %v4990_v56 = vor.u32 %v5641_v60, %v4989_v55  ;;  %v4669_v50 = vld [vmem:[#allocation12 + $0x48] sm:$0xf]  ;;  %v5621_v60 = vld [vmem:[#allocation12 + $0x234] sm:$0xf0] }
 0x389   : > { %v2274_v24 = vrot.slane %v2273_v54, 4  ;;  %v2295_v42 = vrot.slane %v2294_v52, 4  ;;  %v4909_v55 = vld [vmem:[#allocation12 + $0x228] sm:$0xf] }
 0x38b   : > { %v2275_v19 = vmax.f32 %v2273_v54, %v2274_v24  ;;  %v2296_v2 = vmax.f32 %v2294_v52, %v2295_v42  ;;  %3241 = vmatpush.bf16.msra.mxu3 %v5018_v3  ;;  %v4861_v54 = vld [vmem:[#allocation12 + $0x1c8] sm:$0xf]  ;;  %v5609_v52 = vld [vmem:[#allocation12 + $0x1d4] sm:$0xf0] }
 0x38c   : > { %v4862_v62 = vor.u32 %v5609_v52, %v4861_v54  ;;  %v4717_v24 = vld [vmem:[#allocation12 + $0xa8] sm:$0xf]  ;;  %v5573_v42 = vld [vmem:[#allocation12 + $0xb4] sm:$0xf0] }
 0x38d   : > { %v2276_v26 = vrot.slane %v2275_v19, 2  ;;  %v2297_v48 = vrot.slane %v2296_v2, 2  ;;  %v5637_v3 = vld [vmem:[#allocation12 + $0x2b4] sm:$0xf0]  ;;  %v4781_v54 = vld [vmem:[#allocation12 + $0x128] sm:$0xf] }
 0x38e   : > { %v5589_v52 = vld [vmem:[#allocation12 + $0x134] sm:$0xf0] }
 0x38f   : > { %v2277_v5 = vmax.f32 %v2275_v19, %v2276_v26  ;;  %v2298_v21 = vmax.f32 %v2296_v2, %v2297_v48  ;;  %5904 = vset.pattern.permute.xlu0 %v6263_v30  ;;  %v5605_v19 = vld [vmem:[#allocation12 + $0x1b4] sm:$0xf0]  ;;  %v4973_v2 = vld [vmem:[#allocation12 + $0x2a8] sm:$0xf] }
 0x390   : > { %v5101_v26 = vld [vmem:[#allocation12 + $0x3a8] sm:$0xf]  ;;  %v5669_v48 = vld [vmem:[#allocation12 + $0x3b4] sm:$0xf0] }
 0x391   : > { %v2278_v63 = vrot.slane %v2277_v5, 1  ;;  %v2299_v57 = vrot.slane %v2298_v21, 1  ;;  %v5102_v6 = vor.u32 %v5669_v48, %v5101_v26  ;;  %v4941_v30 = vld [vmem:[#allocation12 + $0x268] sm:$0xf]  ;;  %v5649_v48 = vld [vmem:[#allocation12 + $0x314] sm:$0xf0] }
 0x392   : > { %v5021_v26 = vld [vmem:[#allocation12 + $0x308] sm:$0xf] }
 0x393   : > { %v2279_v9 = vmax.f32 %v2277_v5, %v2278_v63  ;;  %v2300_v22 = vmax.f32 %v2298_v21, %v2299_v57  ;;  %v4718_v5 = vor.u32 %v5573_v42, %v4717_v24  ;;  %v4846_v21 = vor.u32 %v5605_v19, %v4845_v41  ;;  %v5569_v63 = vld [vmem:[#allocation12 + $0x94] sm:$0xf0] }
 0x394   : > { %v4974_v57 = vor.u32 %v5637_v3, %v4973_v2  ;;  %v4782_v24 = vor.u32 %v5589_v52, %v4781_v54  ;;  %v5553_v42 = vld [vmem:[#allocation12 + $0x14] sm:$0xf0]  ;;  %v4910_v41 = vor.u32 %v5621_v60, %v4909_v55  ;;  %v5038_v19 = vor.u32 %v5653_v53, %v5037_v61  ;;  %v4893_v2 = vld [vmem:[#allocation12 + $0x208] sm:$0xf]  ;;  %v5599_v54 = vld [vmem:[#allocation12 + $0x18c] sm:$0xf] }
 0x395   : > { %v2302_v20 = vpack.c.bf16 %v2300_v22, %v2279_v9  ;;  %v5601_v9 = vld [vmem:[#allocation12 + $0x194] sm:$0xf0]  ;;  %v4957_v22 = vld [vmem:[#allocation12 + $0x288] sm:$0xf]  ;;  %v4831_v52 = vld [vmem:[#allocation12 + $0x198] sm:$0xf0] }
 0x396   : > { %v4830_v23 = vor.u32 %v5601_v9, %v4829_v8  ;;  %v5617_v3 = vld [vmem:[#allocation12 + $0x214] sm:$0xf0]  ;;  %v5007_v9 = vld [vmem:[#allocation12 + $0x2f8] sm:$0xf0]  ;;  %v5631_v55 = vld [vmem:[#allocation12 + $0x28c] sm:$0xf] }
 0x397   : > { %v2305_v34 = vunpack.c.l.bf16 %v2302_v20  ;;  %v2306_v51 = vunpack.c.h.bf16 %v2302_v20  ;;  %v5633_v20 = vld [vmem:[#allocation12 + $0x294] sm:$0xf0]  ;;  %v4959_v60 = vld [vmem:[#allocation12 + $0x298] sm:$0xf0]  ;;  %v5663_v61 = vld [vmem:[#allocation12 + $0x38c] sm:$0xf] }
 0x398   : > { %v5087_v53 = vld [vmem:[#allocation12 + $0x398] sm:$0xf0] }
 0x399   : > { %v2322_v58 = vrot.slane %v2305_v34, 6  ;;  %v2323_v27 = vrot.slane %v2306_v51, 5  ;;  %v5665_v34 = vld [vmem:[#allocation12 + $0x394] sm:$0xf0]  ;;  %v4702_v51 = vor.u32 %v5569_v63, %v4701_v49  ;;  %v5611_v49 = vld [vmem:[#allocation12 + $0x1ec] sm:$0xf] }
 0x39a   : > { %v4879_v63 = vld [vmem:[#allocation12 + $0x1f8] sm:$0xf0] }
 0x39b   : > { %v2327_v28 = vsel %vm2326_vm4, %v2322_v58, %v2323_v27  ;;  %v4685_v58 = vld [vmem:[#allocation12 + $0x68] sm:$0xf]  ;;  %v5565_v27 = vld [vmem:[#allocation12 + $0x74] sm:$0xf0] }
 0x39c   : > { %v2329_v39 = vsel %vm2328_vm5, %v2325_v13, %v2327_v28  ;;  %v5086_v13 = vor.u32 %v5665_v34, %v5085_v0  ;;  %v4813_v28 = vld [vmem:[#allocation12 + $0x168] sm:$0xf]  ;;  %v4686_v36 = vor.u32 %v5565_v27, %v4685_v58  ;;  %v4894_v0 = vor.u32 %v5617_v3, %v4893_v2  ;;  %v5575_v58 = vld [vmem:[#allocation12 + $0xcc] sm:$0xf]  ;;  %v4735_v27 = vld [vmem:[#allocation12 + $0xd8] sm:$0xf0] }
 0x39d   : > { %v2331_v31 = vmax.f32 %v2316_v33, %v2329_v39  ;;  %v4958_v33 = vor.u32 %v5633_v20, %v4957_v22  ;;  %v5629_v39 = vld [vmem:[#allocation12 + $0x274] sm:$0xf0]  ;;  %v4814_v11 = vor.u32 %v5597_v35, %v4813_v28  ;;  %v5675_v22 = vld [vmem:[#allocation12 + $0x3ec] sm:$0xf]  ;;  %v5135_v20 = vld [vmem:[#allocation12 + $0x3f8] sm:$0xf0]  ;;  %v5022_v34 = vor.u32 %v5649_v48, %v5021_v26 }
 0x39e   : > { %v5607_v28 = vld [vmem:[#allocation12 + $0x1cc] sm:$0xf]  ;;  %v4863_v35 = vld [vmem:[#allocation12 + $0x1d8] sm:$0xf0] }
 0x39f   : > { %2336 = vst.msk [vmem:[#allocation2] sm:$0xf] %vm7002_vm2, %v2331_v31  ;;  %v5069_v31 = vld [vmem:[#allocation12 + $0x368] sm:$0xf]  ;;  %v5627_v2 = vld [vmem:[#allocation12 + $0x26c] sm:$0xf] }
 0x3a0   : > { %v5070_v29 = vor.u32 %v5661_v1, %v5069_v31  ;;  %v5671_v31 = vld [vmem:[#allocation12 + $0x3cc] sm:$0xf]  ;;  %v5119_v1 = vld [vmem:[#allocation12 + $0x3d8] sm:$0xf0] }
 0x3a1   : > { %v4943_v3 = vld [vmem:[#allocation12 + $0x278] sm:$0xf0]  ;;  %v5659_v26 = vld [vmem:[#allocation12 + $0x36c] sm:$0xf] }
 0x3a2   : > { %v5071_v48 = vld [vmem:[#allocation12 + $0x378] sm:$0xf0] }
 0x3a6   : > { %v2340_v59 = vld [vmem:[#allocation2] sm:$0xf] }
 0x3a7   : > { %v2342_v10 = vperm.slane %v2340_v59, 0  ;;  %v2343_v32 = vperm.slane %v2340_v59, 1  ;;  %v2344_v47 = vperm.slane %v2340_v59, 2  ;;  %v2345_v17 = vperm.slane %v2340_v59, 3 }
 0x3a8   : > { %v4942_v59 = vor.u32 %v5629_v39, %v4941_v30  ;;  %v5639_v30 = vld [vmem:[#allocation12 + $0x2cc] sm:$0xf]  ;;  %v4991_v39 = vld [vmem:[#allocation12 + $0x2d8] sm:$0xf0] }
 0x3a9   : > { %v7028_v12 = vpack.c.bf16 %v2342_v10, %v2342_v10  ;;  %v7030_v7 = vpack.c.bf16 %v2343_v32, %v2343_v32  ;;  %v7032_v43 = vpack.c.bf16 %v2344_v47, %v2344_v47  ;;  %v7034_v44 = vpack.c.bf16 %v2345_v17, %v2345_v17  ;;  %v5593_v10 = vld [vmem:[#allocation12 + $0x154] sm:$0xf0]  ;;  %v4925_v32 = vld [vmem:[#allocation12 + $0x248] sm:$0xf] }
 0x3aa   : > { %v5625_v47 = vld [vmem:[#allocation12 + $0x254] sm:$0xf0]  ;;  %v5053_v17 = vld [vmem:[#allocation12 + $0x348] sm:$0xf] }
 0x3ab   : > { %3151 = vmatmul.bf16.vlgmr.msrb.gmra.mxu0 %v7028_v12  ;;  %3164 = vmatmul.bf16.vlgmr.msrb.gmra.mxu1 %v7030_v7 }
 0x3ac   : > { %3177 = vmatmul.bf16.vlgmr.msrb.gmra.mxu2 %v7032_v43  ;;  %3190 = vmatmul.bf16.vlgmr.msrb.gmra.mxu3 %v7034_v44 }
 0x3ad   : > { %3247 = vmatpush.bf16.msrb.mxu0 %v4750_v25  ;;  %3260 = vmatpush.bf16.msrb.mxu1 %v4878_v37  ;;  %v4670_v25 = vor.u32 %v5561_v46, %v4669_v50  ;;  %v4798_v37 = vor.u32 %v5593_v10, %v4797_v4  ;;  %v5571_v50 = vld [vmem:[#allocation12 + $0xac] sm:$0xf]  ;;  %v4719_v46 = vld [vmem:[#allocation12 + $0xb8] sm:$0xf0] }
 0x3ae   : > { %3273 = vmatpush.bf16.msrb.mxu2 %v5006_v45  ;;  %3286 = vmatpush.bf16.msrb.mxu3 %v5134_v38  ;;  %v4926_v45 = vor.u32 %v5625_v47, %v4925_v32  ;;  %v5054_v38 = vor.u32 %v5657_v14, %v5053_v17  ;;  %v5603_v4 = vld [vmem:[#allocation12 + $0x1ac] sm:$0xf]  ;;  %v4847_v10 = vld [vmem:[#allocation12 + $0x1b8] sm:$0xf0] }
 0x3af   : > { %v5635_v32 = vld [vmem:[#allocation12 + $0x2ac] sm:$0xf]  ;;  %v4975_v47 = vld [vmem:[#allocation12 + $0x2b8] sm:$0xf0] }
 0x3b0   : > { %v5667_v17 = vld [vmem:[#allocation12 + $0x3ac] sm:$0xf]  ;;  %v5103_v14 = vld [vmem:[#allocation12 + $0x3b8] sm:$0xf0] }
 0x3b1   : > { %3248 = vmatpush.bf16.msrb.mxu0 %v4734_v16  ;;  %3261 = vmatpush.bf16.msrb.mxu1 %v4862_v62  ;;  %v4637_v16 = vld [vmem:[#allocation12 + $0x8] sm:$0xf]  ;;  %v4654_v62 = vor.u32 %v5557_v15, %v4653_v40  ;;  %v5567_v40 = vld [vmem:[#allocation12 + $0x8c] sm:$0xf]  ;;  %v4703_v15 = vld [vmem:[#allocation12 + $0x98] sm:$0xf0] }
 0x3b2   : > { %3274 = vmatpush.bf16.msrb.mxu2 %v4990_v56  ;;  %3287 = vmatpush.bf16.msrb.mxu3 %v5118_v18  ;;  %v4765_v56 = vld [vmem:[#allocation12 + $0x108] sm:$0xf]  ;;  %v5585_v18 = vld [vmem:[#allocation12 + $0x114] sm:$0xf0] }
 0x3b3   : > { %v4766_v8 = vor.u32 %v5585_v18, %v4765_v56  ;;  %v4962_v56 = vor.u32 %v5631_v55, %v4959_v60  ;;  %v5090_v18 = vor.u32 %v5663_v61, %v5087_v53  ;;  %v5189_v61 = vld [vmem:[#allocation15 + $0x60] sm:$0xf]  ;;  %v5691_v53 = vld [vmem:[#allocation15 + $0x64] sm:$0xf0] }
 0x3b5   : > { %3249 = vmatpush.bf16.msrb.mxu0 %v4718_v5  ;;  %3262 = vmatpush.bf16.msrb.mxu1 %v4846_v21  ;;  %v5579_v5 = vld [vmem:[#allocation12 + $0xec] sm:$0xf]  ;;  %v4751_v21 = vld [vmem:[#allocation12 + $0xf8] sm:$0xf0] }
 0x3b6   : > { %3275 = vmatpush.bf16.msrb.mxu2 %v4974_v57  ;;  %3288 = vmatpush.bf16.msrb.mxu3 %v5102_v6  ;;  %v5643_v57 = vld [vmem:[#allocation12 + $0x2ec] sm:$0xf]  ;;  %v4638_v6 = vor.u32 %v5553_v42, %v4637_v16  ;;  %v4706_v16 = vor.u32 %v5567_v40, %v4703_v15  ;;  %v4687_v42 = vld [vmem:[#allocation12 + $0x78] sm:$0xf0]  ;;  %v5261_v40 = vld [vmem:[#allocation15 + $0xf0] sm:$0xf] }
 0x3b7   : > { %v5709_v15 = vld [vmem:[#allocation15 + $0xf4] sm:$0xf0] }
 0x3b8   : > { %v5262_v60 = vor.u32 %v5709_v15, %v5261_v40  ;;  %v5721_v40 = vld [vmem:[#allocation15 + $0x154] sm:$0xf0]  ;;  %v5686_v15 = vld [vmem:[#allocation15 + $0x44] sm:$0xf] }
 0x3b9   : > { %3250 = vmatpush.bf16.msrb.mxu0 %v4702_v51  ;;  %3263 = vmatpush.bf16.msrb.mxu1 %v4830_v23  ;;  %v4754_v51 = vor.u32 %v5579_v5, %v4751_v21  ;;  %v4882_v23 = vor.u32 %v5611_v49, %v4879_v63  ;;  %v5559_v49 = vld [vmem:[#allocation12 + $0x4c] sm:$0xf]  ;;  %v4671_v63 = vld [vmem:[#allocation12 + $0x58] sm:$0xf0] }
 0x3ba   : > { %3276 = vmatpush.bf16.msrb.mxu2 %v4958_v33  ;;  %3289 = vmatpush.bf16.msrb.mxu3 %v5086_v13  ;;  %v5010_v33 = vor.u32 %v5643_v57, %v5007_v9  ;;  %v5138_v13 = vor.u32 %v5675_v22, %v5135_v20  ;;  %v4946_v57 = vor.u32 %v5627_v2, %v4943_v3  ;;  %v4799_v9 = vld [vmem:[#allocation12 + $0x158] sm:$0xf0]  ;;  %v5623_v22 = vld [vmem:[#allocation12 + $0x24c] sm:$0xf]  ;;  %v5687_v2 = vld [vmem:[#allocation15 + $0x44] sm:$0xf0] }
 0x3bb   : > { %3203 = vmatmul.bf16.vlgmr.msra.gmra.mxu0 %v7028_v12  ;;  %3216 = vmatmul.bf16.vlgmr.msra.gmra.mxu1 %v7030_v7  ;;  %v4927_v20 = vld [vmem:[#allocation12 + $0x258] sm:$0xf0] }
 0x3bc   : > { %3229 = vmatmul.bf16.vlgmr.msra.gmra.mxu2 %v7032_v43  ;;  %3242 = vmatmul.bf16.vlgmr.msra.gmra.mxu3 %v7034_v44 }
 0x3bd   : > { %3251 = vmatpush.bf16.msrb.mxu0 %v4686_v36  ;;  %3264 = vmatpush.bf16.msrb.mxu1 %v4814_v11  ;;  %v4738_v36 = vor.u32 %v5575_v58, %v4735_v27  ;;  %v4866_v11 = vor.u32 %v5607_v28, %v4863_v35  ;;  %v5555_v58 = vld [vmem:[#allocation12 + $0x2c] sm:$0xf]  ;;  %v4655_v27 = vld [vmem:[#allocation12 + $0x38] sm:$0xf0] }
 0x3be   : > { %3277 = vmatpush.bf16.msrb.mxu2 %v4942_v59  ;;  %3290 = vmatpush.bf16.msrb.mxu3 %v5070_v29  ;;  %v4994_v59 = vor.u32 %v5639_v30, %v4991_v39  ;;  %v5122_v29 = vor.u32 %v5671_v31, %v5119_v1  ;;  %v5587_v28 = vld [vmem:[#allocation12 + $0x12c] sm:$0xf]  ;;  %v4783_v35 = vld [vmem:[#allocation12 + $0x138] sm:$0xf0] }
 0x3bf   : > { %v5619_v30 = vld [vmem:[#allocation12 + $0x22c] sm:$0xf]  ;;  %v4911_v39 = vld [vmem:[#allocation12 + $0x238] sm:$0xf0] }
 0x3c0   : > { %v5651_v31 = vld [vmem:[#allocation12 + $0x32c] sm:$0xf]  ;;  %v5039_v1 = vld [vmem:[#allocation12 + $0x338] sm:$0xf0] }
 0x3c1   : > { %3252 = vmatpush.bf16.msrb.mxu0 %v4670_v25  ;;  %3265 = vmatpush.bf16.msrb.mxu1 %v4798_v37  ;;  %v4722_v25 = vor.u32 %v5571_v50, %v4719_v46  ;;  %v4850_v37 = vor.u32 %v5603_v4, %v4847_v10  ;;  %v5551_v50 = vld [vmem:[#allocation12 + $0xc] sm:$0xf]  ;;  %v4639_v46 = vld [vmem:[#allocation12 + $0x18] sm:$0xf0]  ;;  %v5042_v4 = vor.u32 %v5651_v31, %v5039_v1 }
 0x3c2   : > { %3278 = vmatpush.bf16.msrb.mxu2 %v4926_v45  ;;  %3291 = vmatpush.bf16.msrb.mxu3 %v5054_v38  ;;  %v4978_v45 = vor.u32 %v5635_v32, %v4975_v47  ;;  %v5106_v38 = vor.u32 %v5667_v17, %v5103_v14  ;;  %v4767_v10 = vld [vmem:[#allocation12 + $0x118] sm:$0xf0]  ;;  %v5615_v32 = vld [vmem:[#allocation12 + $0x20c] sm:$0xf] }
 0x3c3   : > { %v4895_v47 = vld [vmem:[#allocation12 + $0x218] sm:$0xf0]  ;;  %v5647_v17 = vld [vmem:[#allocation12 + $0x30c] sm:$0xf] }
 0x3c4   : > { %v5023_v14 = vld [vmem:[#allocation12 + $0x318] sm:$0xf0] }
 0x3c5   : > { %3253 = vmatpush.bf16.msrb.mxu0 %v4654_v62  ;;  %3266 = vmatpush.bf16.msrb.mxu1 %v4782_v24  ;;  %v4834_v62 = vor.u32 %v5599_v54, %v4831_v52  ;;  %v5563_v24 = vld [vmem:[#allocation12 + $0x6c] sm:$0xf]  ;;  %v4898_v54 = vor.u32 %v5615_v32, %v4895_v47  ;;  %v5026_v52 = vor.u32 %v5647_v17, %v5023_v14  ;;  %v5191_v31 = vld [vmem:[#allocation15 + $0x68] sm:$0xf0]  ;;  %v5213_v17 = vld [vmem:[#allocation15 + $0x90] sm:$0xf] }
 0x3c6   : > { %3279 = vmatpush.bf16.msrb.mxu2 %v4910_v41  ;;  %3292 = vmatpush.bf16.msrb.mxu3 %v5038_v19  ;;  %v5595_v41 = vld [vmem:[#allocation12 + $0x16c] sm:$0xf]  ;;  %v4815_v19 = vld [vmem:[#allocation12 + $0x178] sm:$0xf0]  ;;  %v4690_v5 = vor.u32 %v5563_v24, %v4687_v42  ;;  %v5707_v24 = vld [vmem:[#allocation15 + $0xe4] sm:$0xf0] }
 0x3c7   : > { %v4818_v21 = vor.u32 %v5595_v41, %v4815_v19  ;;  %v5181_v42 = vld [vmem:[#allocation15 + $0x50] sm:$0xf]  ;;  %v5173_v19 = vld [vmem:[#allocation15 + $0x40] sm:$0xf]  ;;  %v5697_v14 = vld [vmem:[#allocation15 + $0x94] sm:$0xf0] }
 0x3c8   : > { %v5174_v3 = vor.u32 %v5687_v2, %v5173_v19  ;;  %v5263_v19 = vld [vmem:[#allocation15 + $0xf8] sm:$0xf0] }
 0x3c9   : > { %3254 = vmatpush.bf16.msrb.mxu0 %v4638_v6  ;;  %3267 = vmatpush.bf16.msrb.mxu1 %v4766_v8  ;;  %v5074_v6 = vor.u32 %v5659_v26, %v5071_v48  ;;  %v5591_v8 = vld [vmem:[#allocation12 + $0x14c] sm:$0xf]  ;;  %v5165_v26 = vld [vmem:[#allocation15 + $0x30] sm:$0xf]  ;;  %v5685_v48 = vld [vmem:[#allocation15 + $0x34] sm:$0xf0] }
 0x3ca   : > { %3280 = vmatpush.bf16.msrb.mxu2 %v4894_v0  ;;  %3293 = vmatpush.bf16.msrb.mxu3 %v5022_v34  ;;  %v5655_v0 = vld [vmem:[#allocation12 + $0x34c] sm:$0xf]  ;;  %v5055_v34 = vld [vmem:[#allocation12 + $0x358] sm:$0xf0] }
 0x3cc   : > { %3255 = vmatmul.bf16.vlgmr.msrb.gmra.mxu0 %v7028_v12  ;;  %3268 = vmatmul.bf16.vlgmr.msrb.gmra.mxu1 %v7030_v7 }
 0x3cd   : > { %3299 = vmatpush.bf16.msra.mxu0 %v4754_v51  ;;  %3312 = vmatpush.bf16.msra.mxu1 %v4882_v23  ;;  %v4674_v51 = vor.u32 %v5559_v49, %v4671_v63  ;;  %v4802_v23 = vor.u32 %v5591_v8, %v4799_v9  ;;  %v5149_v49 = vld [vmem:[#allocation15 + $0x10] sm:$0xf]  ;;  %v5679_v9 = vld [vmem:[#allocation15 + $0x4] sm:$0xf0] }
 0x3ce   : > { %3325 = vmatpush.bf16.msra.mxu2 %v5010_v33  ;;  %3338 = vmatpush.bf16.msra.mxu3 %v5138_v13  ;;  %v4930_v33 = vor.u32 %v5623_v22, %v4927_v20  ;;  %v5058_v13 = vor.u32 %v5655_v0, %v5055_v34  ;;  %v5237_v22 = vld [vmem:[#allocation15 + $0xc0] sm:$0xf]  ;;  %v5703_v20 = vld [vmem:[#allocation15 + $0xc4] sm:$0xf0] }
 0x3cf   : > { %3281 = vmatmul.bf16.vlgmr.msrb.gmra.mxu2 %v7032_v43  ;;  %3294 = vmatmul.bf16.vlgmr.msrb.gmra.mxu3 %v7034_v44  ;;  %v5238_v34 = vor.u32 %v5703_v20, %v5237_v22  ;;  %v5680_v20 = vld [vmem:[#allocation15 + $0x14] sm:$0xf] }
 0x3d1   : > { %3300 = vmatpush.bf16.msra.mxu0 %v4738_v36  ;;  %3313 = vmatpush.bf16.msra.mxu1 %v4866_v11  ;;  %v4658_v36 = vor.u32 %v5555_v58, %v4655_v27  ;;  %v4786_v11 = vor.u32 %v5587_v28, %v4783_v35  ;;  %v5229_v27 = vld [vmem:[#allocation15 + $0xb0] sm:$0xf]  ;;  %v5725_v28 = vld [vmem:[#allocation15 + $0x174] sm:$0xf0]  ;;  %v5690_v35 = vld [vmem:[#allocation15 + $0x64] sm:$0xf] }
 0x3d2   : > { %3326 = vmatpush.bf16.msra.mxu2 %v4994_v59  ;;  %3339 = vmatpush.bf16.msra.mxu3 %v5122_v29  ;;  %v5583_v59 = vld [vmem:[#allocation12 + $0x10c] sm:$0xf]  ;;  %v4914_v29 = vor.u32 %v5619_v30, %v4911_v39  ;;  %v5194_v1 = vor.u32 %v5690_v35, %v5191_v31 }
 0x3d5   : > { %3301 = vmatpush.bf16.msra.mxu0 %v4722_v25  ;;  %3314 = vmatpush.bf16.msra.mxu1 %v4850_v37  ;;  %v5197_v25 = vld [vmem:[#allocation15 + $0x70] sm:$0xf]  ;;  %v5693_v37 = vld [vmem:[#allocation15 + $0x74] sm:$0xf0] }
 0x3d6   : > { %3327 = vmatpush.bf16.msra.mxu2 %v4978_v45  ;;  %3340 = vmatpush.bf16.msra.mxu3 %v5106_v38  ;;  %v4642_v45 = vor.u32 %v5551_v50, %v4639_v46  ;;  %v4770_v38 = vor.u32 %v5583_v59, %v4767_v10  ;;  %v5198_v55 = vor.u32 %v5693_v37, %v5197_v25  ;;  %v5317_v46 = vld [vmem:[#allocation15 + $0x160] sm:$0xf]  ;;  %v5723_v59 = vld [vmem:[#allocation15 + $0x164] sm:$0xf0]  ;;  %v5183_v10 = vld [vmem:[#allocation15 + $0x58] sm:$0xf0] }
 0x3d7   : > { %v5309_v25 = vld [vmem:[#allocation15 + $0x150] sm:$0xf]  ;;  %v5214_v37 = vor.u32 %v5697_v14, %v5213_v17  ;;  %v5711_v17 = vld [vmem:[#allocation15 + $0x104] sm:$0xf0] }
 0x3d8   : > { %v5389_v14 = vld [vmem:[#allocation15 + $0x1f0] sm:$0xf] }
 0x3d9   : > { %3302 = vmatpush.bf16.msra.mxu0 %v4706_v16  ;;  %3315 = vmatpush.bf16.msra.mxu1 %v4834_v62  ;;  %v5253_v16 = vld [vmem:[#allocation15 + $0xe0] sm:$0xf]  ;;  %v5190_v62 = vor.u32 %v5691_v53, %v5189_v61  ;;  %v5695_v61 = vld [vmem:[#allocation15 + $0x84] sm:$0xf0] }
 0x3da   : > { %3328 = vmatpush.bf16.msra.mxu2 %v4962_v56  ;;  %3341 = vmatpush.bf16.msra.mxu3 %v5090_v18  ;;  %v5689_v56 = vld [vmem:[#allocation15 + $0x54] sm:$0xf0]  ;;  %v5254_v18 = vor.u32 %v5707_v24, %v5253_v16  ;;  %v5301_v53 = vld [vmem:[#allocation15 + $0x140] sm:$0xf]  ;;  %v5684_v24 = vld [vmem:[#allocation15 + $0x34] sm:$0xf] }
 0x3db   : > { %v5182_v41 = vor.u32 %v5689_v56, %v5181_v42  ;;  %v5167_v42 = vld [vmem:[#allocation15 + $0x38] sm:$0xf0] }
 0x3dd   : > { %3303 = vmatpush.bf16.msra.mxu0 %v4690_v5  ;;  %3316 = vmatpush.bf16.msra.mxu1 %v4818_v21  ;;  %v5157_v5 = vld [vmem:[#allocation15 + $0x20] sm:$0xf] }
 0x3de   : > { %3329 = vmatpush.bf16.msra.mxu2 %v4946_v57  ;;  %3342 = vmatpush.bf16.msra.mxu3 %v5074_v6  ;;  %v5705_v57 = vld [vmem:[#allocation15 + $0xd4] sm:$0xf0]  ;;  %v5141_v6 = vld [vmem:[#allocation15] sm:$0xf] }
 0x3df   : > { %v5142_v0 = vor.u32 %v5679_v9, %v5141_v6  ;;  %v5285_v6 = vld [vmem:[#allocation15 + $0x120] sm:$0xf] }
 0x3e1   : > { %3304 = vmatpush.bf16.msra.mxu0 %v4674_v51  ;;  %3317 = vmatpush.bf16.msra.mxu1 %v4802_v23  ;;  %v5692_v51 = vld [vmem:[#allocation15 + $0x74] sm:$0xf]  ;;  %v5199_v23 = vld [vmem:[#allocation15 + $0x78] sm:$0xf0] }
 0x3e2   : > { %3330 = vmatpush.bf16.msra.mxu2 %v4930_v33  ;;  %3343 = vmatpush.bf16.msra.mxu3 %v5058_v13  ;;  %v5202_v58 = vor.u32 %v5692_v51, %v5199_v23  ;;  %v5701_v33 = vld [vmem:[#allocation15 + $0xb4] sm:$0xf0]  ;;  %v5325_v13 = vld [vmem:[#allocation15 + $0x170] sm:$0xf] }
 0x3e3   : > { %v5230_v30 = vor.u32 %v5701_v33, %v5229_v27  ;;  %v5326_v39 = vor.u32 %v5725_v28, %v5325_v13  ;;  %v5247_v33 = vld [vmem:[#allocation15 + $0xd8] sm:$0xf0] }
 0x3e5   : > { %3305 = vmatpush.bf16.msra.mxu0 %v4658_v36  ;;  %3318 = vmatpush.bf16.msra.mxu1 %v4786_v11  ;;  %v5221_v36 = vld [vmem:[#allocation15 + $0xa0] sm:$0xf]  ;;  %v5699_v11 = vld [vmem:[#allocation15 + $0xa4] sm:$0xf0] }
 0x3e6   : > { %3331 = vmatpush.bf16.msra.mxu2 %v4914_v29  ;;  %3344 = vmatpush.bf16.msra.mxu3 %v5042_v4  ;;  %v5222_v50 = vor.u32 %v5699_v11, %v5221_v36  ;;  %v5318_v29 = vor.u32 %v5723_v59, %v5317_v46  ;;  %v5688_v4 = vld [vmem:[#allocation15 + $0x54] sm:$0xf]  ;;  %v5143_v36 = vld [vmem:[#allocation15 + $0x8] sm:$0xf0]  ;;  %v5702_v46 = vld [vmem:[#allocation15 + $0xc4] sm:$0xf] }
 0x3e7   : > { %v5186_v32 = vor.u32 %v5688_v4, %v5183_v10  ;;  %v5239_v59 = vld [vmem:[#allocation15 + $0xc8] sm:$0xf0] }
 0x3e9   : > { %3306 = vmatpush.bf16.msra.mxu0 %v4642_v45  ;;  %3319 = vmatpush.bf16.msra.mxu1 %v4770_v38  ;;  %v5310_v45 = vor.u32 %v5721_v40, %v5309_v25  ;;  %v5175_v38 = vld [vmem:[#allocation15 + $0x48] sm:$0xf0] }
 0x3ea   : > { %3332 = vmatpush.bf16.msra.mxu2 %v4898_v54  ;;  %3345 = vmatpush.bf16.msra.mxu3 %v5026_v52  ;;  %v7054_v54 = vld [vmem:[#allocation14] sm:$0x77] }
 0x3ec   : > { %3307 = vmatmul.bf16.vlgmr.msra.gmra.mxu0 %v7028_v12  ;;  %3320 = vmatmul.bf16.vlgmr.msra.gmra.mxu1 %v7030_v7  ;;  %v5166_v12 = vor.u32 %v5685_v48, %v5165_v26  ;;  %v5683_v7 = vld [vmem:[#allocation15 + $0x24] sm:$0xf0]  ;;  %v5293_v26 = vld [vmem:[#allocation15 + $0x130] sm:$0xf]  ;;  %v5717_v48 = vld [vmem:[#allocation15 + $0x134] sm:$0xf0] }
 0x3ed   : > { %3805 = vmatpush.bf16.msrb.mxu0 %v5198_v55  ;;  %3818 = vmatpush.bf16.msrb.mxu1 %v5262_v60  ;;  %v5158_v21 = vor.u32 %v5683_v7, %v5157_v5  ;;  %v5178_v55 = vor.u32 %v5686_v15, %v5175_v38  ;;  %v5205_v60 = vld [vmem:[#allocation15 + $0x80] sm:$0xf]  ;;  %v5682_v5 = vld [vmem:[#allocation15 + $0x24] sm:$0xf]  ;;  %v5159_v7 = vld [vmem:[#allocation15 + $0x28] sm:$0xf0] }
 0x3ee   : > { %3333 = vmatmul.bf16.vlgmr.msra.gmra.mxu2 %v7032_v43  ;;  %3346 = vmatmul.bf16.vlgmr.msra.gmra.mxu3 %v7034_v44  ;;  %v5681_v43 = vld [vmem:[#allocation15 + $0x14] sm:$0xf0]  ;;  %v5245_v44 = vld [vmem:[#allocation15 + $0xd0] sm:$0xf]  ;;  %v5206_v16 = vor.u32 %v5695_v61, %v5205_v60  ;;  %v5231_v38 = vld [vmem:[#allocation15 + $0xb8] sm:$0xf0] }
 0x3ef   : > { %v5150_v63 = vor.u32 %v5681_v43, %v5149_v49  ;;  %v5246_v8 = vor.u32 %v5705_v57, %v5245_v44  ;;  %3831 = vmatpush.bf16.msrb.mxu2 %v5326_v39  ;;  %v5162_v49 = vor.u32 %v5682_v5, %v5159_v7  ;;  %v5255_v43 = vld [vmem:[#allocation15 + $0xe8] sm:$0xf0]  ;;  %v5713_v39 = vld [vmem:[#allocation15 + $0x114] sm:$0xf0]  ;;  %v5722_v5 = vld [vmem:[#allocation15 + $0x164] sm:$0xf] }
 0x3f0   : > { %v7052_v47 = vpop.permute.xlu0 %2487  ;;  %v5741_v15 = vld [vmem:[#allocation15 + $0x1f4] sm:$0xf0] }
 0x3f1   : > { %3806 = vmatpush.bf16.msrb.mxu0 %v5190_v62  ;;  %3819 = vmatpush.bf16.msrb.mxu1 %v5254_v18  ;;  %v2490_v52 = vperm.slane %v7052_v47, 0  ;;  %v5719_v62 = vld [vmem:[#allocation15 + $0x144] sm:$0xf0]  ;;  %v5170_v18 = vor.u32 %v5684_v24, %v5167_v42  ;;  %v5327_v24 = vld [vmem:[#allocation15 + $0x178] sm:$0xf0] }
 0x3f2   : > { %v5302_v56 = vor.u32 %v5719_v62, %v5301_v53  ;;  %v5724_v62 = vld [vmem:[#allocation15 + $0x174] sm:$0xf]  ;;  %v7083_v42 = vld [vmem:[%s7258_s30] sm:$0xf] }
 0x3f3   : > { %3832 = vmatpush.bf16.msrb.mxu2 %v5318_v29  ;;  %v5242_v29 = vor.u32 %v5702_v46, %v5239_v59  ;;  %v5694_v59 = vld [vmem:[#allocation15 + $0x84] sm:$0xf] }
 0x3f4   : > { %v7065_v9 = vpop.permute.xlu1 %3373 }
 0x3f5   : > { %3807 = vmatpush.bf16.msrb.mxu0 %v5182_v41  ;;  %3820 = vmatpush.bf16.msrb.mxu1 %v5246_v8  ;;  %v5708_v41 = vld [vmem:[#allocation15 + $0xf4] sm:$0xf]  ;;  %v5715_v8 = vld [vmem:[#allocation15 + $0x124] sm:$0xf0]  ;;  %v3376_v35 = vperm.slane %v7065_v9, 0 }
 0x3f6   : > { %v5266_v2 = vor.u32 %v5708_v41, %v5263_v19  ;;  %v5286_v22 = vor.u32 %v5715_v8, %v5285_v6  ;;  %v5381_v19 = vld [vmem:[#allocation15 + $0x1e0] sm:$0xf]  ;;  %v5373_v8 = vld [vmem:[#allocation15 + $0x1d0] sm:$0xf] }
 0x3f7   : > { %3833 = vmatpush.bf16.msrb.mxu2 %v5310_v45  ;;  %v7077_v10 = vmul.f32 %v3376_v35, %v7054_v54  ;;  %v5700_v45 = vld [vmem:[#allocation15 + $0xb4] sm:$0xf] }
 0x3f9   : > { %3808 = vmatpush.bf16.msrb.mxu0 %v5174_v3  ;;  %3821 = vmatpush.bf16.msrb.mxu1 %v5238_v34  ;;  %v7060_v3 = vmul.f32 %v2490_v52, %v7054_v54  ;;  %v5704_v34 = vld [vmem:[#allocation15 + $0xd4] sm:$0xf] }
 0x3fa   : > { %v5250_v13 = vor.u32 %v5704_v34, %v5247_v33 }
 0x3fb   : > { %3834 = vmatpush.bf16.msrb.mxu2 %v5302_v56  ;;  %v3135_v57 = vperm.slane %v7060_v3, 0  ;;  %v5330_v56 = vor.u32 %v5724_v62, %v5327_v24  ;;  %v3136_v6 = vperm.slane %v7060_v3, 4  ;;  %v5365_v3 = vld [vmem:[#allocation15 + $0x1c0] sm:$0xf] }
 0x3fd   : > { %3809 = vmatpush.bf16.msrb.mxu0 %v5166_v12  ;;  %3822 = vmatpush.bf16.msrb.mxu1 %v5230_v30  ;;  %v5294_v12 = vor.u32 %v5717_v48, %v5293_v26  ;;  %v5277_v30 = vld [vmem:[#allocation15 + $0x110] sm:$0xf]  ;;  %v5698_v48 = vld [vmem:[#allocation15 + $0xa4] sm:$0xf] }
 0x3fe   : > { %v5278_v31 = vor.u32 %v5713_v39, %v5277_v30  ;;  %v5311_v39 = vld [vmem:[#allocation15 + $0x158] sm:$0xf0] }
 0x3ff   : > { %3835 = vmatpush.bf16.msrb.mxu2 %v5294_v12  ;;  %v5223_v12 = vld [vmem:[#allocation15 + $0xa8] sm:$0xf0] }
 0x401   : > { %3810 = vmatpush.bf16.msrb.mxu0 %v5158_v21  ;;  %3823 = vmatpush.bf16.msrb.mxu1 %v5222_v50  ;;  %v5706_v21 = vld [vmem:[#allocation15 + $0xe4] sm:$0xf] }
 0x402   : > { %v5258_v44 = vor.u32 %v5706_v21, %v5255_v43  ;;  %v3395_v21 = vperm.slane %v7083_v42, 0  ;;  %v5319_v43 = vld [vmem:[#allocation15 + $0x168] sm:$0xf0] }
 0x403   : > { %3836 = vmatpush.bf16.msrb.mxu2 %v5286_v22  ;;  %v5737_v22 = vld [vmem:[#allocation15 + $0x1d4] sm:$0xf0] }
 0x404   : > { %v5374_v34 = vor.u32 %v5737_v22, %v5373_v8  ;;  %v5279_v22 = vld [vmem:[#allocation15 + $0x118] sm:$0xf0] }
 0x405   : > { %3811 = vmatpush.bf16.msrb.mxu0 %v5150_v63  ;;  %3824 = vmatpush.bf16.msrb.mxu1 %v5214_v37  ;;  %v7062_v63 = vpop.permute.xlu0 %3352 }
 0x407   : > { %3837 = vmatpush.bf16.msrb.mxu2 %v5278_v31 }
 0x409   : > { %3812 = vmatpush.bf16.msrb.mxu0 %v5142_v0  ;;  %3825 = vmatpush.bf16.msrb.mxu1 %v5206_v16  ;;  %v5151_v0 = vld [vmem:[#allocation15 + $0x18] sm:$0xf0]  ;;  %v5390_v16 = vor.u32 %v5741_v15, %v5389_v14  ;;  %v5303_v14 = vld [vmem:[#allocation15 + $0x148] sm:$0xf0]  ;;  %v5733_v15 = vld [vmem:[#allocation15 + $0x1b4] sm:$0xf0] }
 0x40a   : > { %v5154_v27 = vor.u32 %v5680_v20, %v5151_v0 }
 0x40b   : > { %3844 = vmatpush.bf16.msrb.mxu3 %v5390_v16 }
 0x40d   : > { %3857 = vmatpush.bf16.msra.mxu0 %v5202_v58  ;;  %3870 = vmatpush.bf16.msra.mxu1 %v5266_v2  ;;  %v3355_v58 = vperm.slane %v7062_v63, 0  ;;  %v5739_v2 = vld [vmem:[#allocation15 + $0x1e4] sm:$0xf0] }
 0x40e   : > { %v5382_v26 = vor.u32 %v5739_v2, %v5381_v19  ;;  %v5714_v19 = vld [vmem:[#allocation15 + $0x124] sm:$0xf]  ;;  %v5287_v2 = vld [vmem:[#allocation15 + $0x128] sm:$0xf0] }
 0x40f   : > { %v7072_v11 = vmul.f32 %v3355_v58, %v7054_v54  ;;  %v5234_v54 = vor.u32 %v5700_v45, %v5231_v38 }
 0x410   : > { %3845 = vmatpush.bf16.msrb.mxu3 %v5382_v26  ;;  %v3382_v26 = vperm.slane %v7077_v10, 6 }
 0x411   : > { %3858 = vmatpush.bf16.msra.mxu0 %v5194_v1  ;;  %3871 = vmatpush.bf16.msra.mxu1 %v5258_v44  ;;  %v5678_v1 = vld [vmem:[#allocation15 + $0x4] sm:$0xf]  ;;  %v5322_v44 = vor.u32 %v5722_v5, %v5319_v43  ;;  %v5341_v43 = vld [vmem:[#allocation15 + $0x190] sm:$0xf] }
 0x412   : > { %v5146_v50 = vor.u32 %v5678_v1, %v5143_v36 }
 0x414   : > { %3846 = vmatpush.bf16.msrb.mxu3 %v5374_v34 }
 0x415   : > { %3859 = vmatpush.bf16.msra.mxu0 %v5186_v32  ;;  %3872 = vmatpush.bf16.msra.mxu1 %v5250_v13  ;;  %v5269_v32 = vld [vmem:[#allocation15 + $0x100] sm:$0xf] }
 0x416   : > { %v5270_v40 = vor.u32 %v5711_v17, %v5269_v32 }
 0x418   : > { %3838 = vmatpush.bf16.msrb.mxu2 %v5270_v40  ;;  %v5357_v40 = vld [vmem:[#allocation15 + $0x1b0] sm:$0xf] }
 0x419   : > { %3860 = vmatpush.bf16.msra.mxu0 %v5178_v55  ;;  %v3360_v55 = vperm.slane %v7072_v11, 1  ;;  %3873 = vmatpush.bf16.msra.mxu1 %v5242_v29  ;;  %v5207_v29 = vld [vmem:[#allocation15 + $0x88] sm:$0xf0] }
 0x41a   : > { %v5210_v17 = vor.u32 %v5694_v59, %v5207_v29  ;;  %v5383_v59 = vld [vmem:[#allocation15 + $0x1e8] sm:$0xf0] }
 0x41c   : > { %3883 = vmatpush.bf16.msra.mxu2 %v5330_v56  ;;  %v5349_v56 = vld [vmem:[#allocation15 + $0x1a0] sm:$0xf] }
 0x41d   : > { %3861 = vmatpush.bf16.msra.mxu0 %v5170_v18  ;;  %v3381_v18 = vperm.slane %v7077_v10, 2  ;;  %3874 = vmatpush.bf16.msra.mxu1 %v5234_v54  ;;  %v5712_v10 = vld [vmem:[#allocation15 + $0x114] sm:$0xf] }
 0x41e   : > { %v5282_v47 = vor.u32 %v5712_v10, %v5279_v22 }
 0x420   : > { %3884 = vmatpush.bf16.msra.mxu2 %v5322_v44  ;;  %v5729_v44 = vld [vmem:[#allocation15 + $0x194] sm:$0xf0] }
 0x421   : > { %3862 = vmatpush.bf16.msra.mxu0 %v5162_v49  ;;  %v5226_v49 = vor.u32 %v5698_v48, %v5223_v12  ;;  %v5342_v8 = vor.u32 %v5729_v44, %v5341_v43  ;;  %v5726_v43 = vld [vmem:[#allocation15 + $0x184] sm:$0xf]  ;;  %v5335_v44 = vld [vmem:[#allocation15 + $0x188] sm:$0xf0] }
 0x423   : > { %3875 = vmatpush.bf16.msra.mxu1 %v5226_v49 }
 0x425   : > { %3863 = vmatpush.bf16.msra.mxu0 %v5154_v27  ;;  %v5720_v27 = vld [vmem:[#allocation15 + $0x154] sm:$0xf] }
 0x426   : > { %v5314_v31 = vor.u32 %v5720_v27, %v5311_v39  ;;  %v5727_v27 = vld [vmem:[#allocation15 + $0x184] sm:$0xf0] }
 0x428   : > { %v3152_v51 = vpop.f32.mrf.mxu0  ;;  %v3165_v23 = vpop.f32.mrf.mxu1  ;;  %3885 = vmatpush.bf16.msra.mxu2 %v5314_v31 }
 0x429   : > { %v3153_v28 = vadd.f32 %v3152_v51, %v3135_v57  ;;  %3864 = vmatpush.bf16.msra.mxu0 %v5146_v50  ;;  %v5696_v51 = vld [vmem:[#allocation15 + $0x94] sm:$0xf]  ;;  %v5735_v50 = vld [vmem:[#allocation15 + $0x1c4] sm:$0xf0] }
 0x42a   : > { %v5366_v46 = vor.u32 %v5735_v50, %v5365_v3 }
 0x42b   : > { %v3166_v4 = vadd.f32 %v3165_v23, %v3153_v28  ;;  %v5215_v23 = vld [vmem:[#allocation15 + $0x98] sm:$0xf0] }
 0x42c   : > { %v5218_v30 = vor.u32 %v5696_v51, %v5215_v23  ;;  %3847 = vmatpush.bf16.msrb.mxu3 %v5366_v46  ;;  %v5333_v23 = vld [vmem:[#allocation15 + $0x180] sm:$0xf]  ;;  %v5738_v46 = vld [vmem:[#allocation15 + $0x1e4] sm:$0xf] }
 0x42e   : > { %3876 = vmatpush.bf16.msra.mxu1 %v5218_v30  ;;  %v5740_v30 = vld [vmem:[#allocation15 + $0x1f4] sm:$0xf] }
 0x42f   : > { %v3178_v25 = vpop.f32.mrf.mxu2  ;;  %v3191_v37 = vpop.f32.mrf.mxu3 }
 0x430   : > { %v3179_v60 = vadd.f32 %v3178_v25, %v3166_v4  ;;  %v3154_v61 = vpop.f32.mrf.mxu0  ;;  %v3167_v53 = vpop.f32.mrf.mxu1  ;;  %v5718_v4 = vld [vmem:[#allocation15 + $0x144] sm:$0xf] }
 0x431   : > { %v5306_v25 = vor.u32 %v5718_v4, %v5303_v14  ;;  %v5295_v61 = vld [vmem:[#allocation15 + $0x138] sm:$0xf0]  ;;  %v3361_v53 = vperm.slane %v7072_v11, 5 }
 0x432   : > { %v3192_v41 = vadd.f32 %v3191_v37, %v3179_v60  ;;  %v5716_v60 = vld [vmem:[#allocation15 + $0x134] sm:$0xf]  ;;  %3877 = vmatpush.bf16.msra.mxu1 %v5210_v17  ;;  %v5386_v17 = vor.u32 %v5738_v46, %v5383_v59 }
 0x433   : > { %3886 = vmatpush.bf16.msra.mxu2 %v5306_v25  ;;  %v5298_v24 = vor.u32 %v5716_v60, %v5295_v61  ;;  %v5734_v60 = vld [vmem:[#allocation15 + $0x1c4] sm:$0xf]  ;;  %v5367_v61 = vld [vmem:[#allocation15 + $0x1c8] sm:$0xf0]  ;;  %v5748_v46 = vld [vmem:[%s7259_s5 + $0x30] sm:$0xff] }
 0x434   : > { %v3368_v7 = vadd.f32 %v3360_v55, %v3192_v41  ;;  %v5358_v55 = vor.u32 %v5733_v15, %v5357_v40  ;;  %v2484_v41 = vld [vmem:[#allocation14 + $0x8] sm:$0x77]  ;;  %v5736_v15 = vld [vmem:[#allocation15 + $0x1d4] sm:$0xf] }
 0x435   : > { %v7095_v5 = vmul.f32 %v2490_v52, %v2484_v41  ;;  %v7101_v50 = vmul.f32 %v3355_v58, %v2484_v41  ;;  %v7106_v29 = vmul.f32 %v3376_v35, %v2484_v41 }
 0x436   : > { %v3389_v57 = vadd.f32 %v3381_v18, %v3368_v7  ;;  %v5731_v18 = vld [vmem:[#allocation15 + $0x1a4] sm:$0xf0]  ;;  %3848 = vmatpush.bf16.msrb.mxu3 %v5358_v55  ;;  %v3396_v7 = vperm.slane %v7083_v42, 1  ;;  %v3397_v55 = vperm.slane %v7083_v42, 2 }
 0x437   : > { %v3180_v20 = vpop.f32.mrf.mxu2  ;;  %v3193_v0 = vpop.f32.mrf.mxu3  ;;  %v5350_v12 = vor.u32 %v5731_v18, %v5349_v56  ;;  %3887 = vmatpush.bf16.msra.mxu2 %v5298_v24  ;;  %v3362_v63 = vperm.slane %v7101_v50, 1  ;;  %v5732_v56 = vld [vmem:[#allocation15 + $0x1b4] sm:$0xf]  ;;  %v5359_v18 = vld [vmem:[#allocation15 + $0x1b8] sm:$0xf0] }
 0x438   : > { %v3403_v33 = vadd.f32 %v3395_v21, %v3389_v57  ;;  %v3204_v13 = vpop.f32.mrf.mxu0  ;;  %v3217_v28 = vpop.f32.mrf.mxu1  ;;  %v5290_v21 = vor.u32 %v5714_v19, %v5287_v2  ;;  %v3137_v0 = vperm.slane %v7095_v5, 0  ;;  %v5362_v19 = vor.u32 %v5732_v56, %v5359_v18  ;;  %v5730_v2 = vld [vmem:[#allocation15 + $0x1a4] sm:$0xf] }
 0x439   : > { %v3205_v36 = vadd.f32 %v3204_v13, %v3136_v6  ;;  %v5710_v13 = vld [vmem:[#allocation15 + $0x104] sm:$0xf] }
 0x43a   : > { %v3407_v1 = vmax.f32 %v3403_v33, 0.0  ;;  %3849 = vmatpush.bf16.msrb.mxu3 %v5350_v12  ;;  %v5334_v33 = vor.u32 %v5727_v27, %v5333_v23 }
 0x43b   : > { %v3218_v37 = vadd.f32 %v3217_v28, %v3205_v36  ;;  %3888 = vmatpush.bf16.msra.mxu2 %v5290_v21  ;;  %v5271_v28 = vld [vmem:[#allocation15 + $0x108] sm:$0xf0]  ;;  %v5391_v36 = vld [vmem:[#allocation15 + $0x1f8] sm:$0xf0] }
 0x43c   : > { %v7088_v32 = vpack.c.bf16 %v3407_v1, %v3407_v1  ;;  %v5274_v1 = vor.u32 %v5710_v13, %v5271_v28  ;;  %v5394_v3 = vor.u32 %v5740_v30, %v5391_v36 }
 0x43e   : > { %3813 = vmatmul.bf16.vlgmr.msrb.gmra.mxu0 %v7088_v32  ;;  %3850 = vmatpush.bf16.msrb.mxu3 %v5342_v8  ;;  %v5338_v8 = vor.u32 %v5726_v43, %v5335_v44 }
 0x43f   : > { %v3230_v45 = vpop.f32.mrf.mxu2  ;;  %v3243_v38 = vpop.f32.mrf.mxu3  ;;  %3889 = vmatpush.bf16.msra.mxu2 %v5282_v47 }
 0x440   : > { %v3231_v16 = vadd.f32 %v3230_v45, %v3218_v37  ;;  %v3206_v54 = vpop.f32.mrf.mxu0  ;;  %v3219_v62 = vpop.f32.mrf.mxu1  ;;  %v3383_v45 = vperm.slane %v7106_v29, 2 }
 0x442   : > { %v3244_v48 = vadd.f32 %v3243_v38, %v3231_v16  ;;  %3851 = vmatpush.bf16.msrb.mxu3 %v5334_v33  ;;  %v5370_v16 = vor.u32 %v5734_v60, %v5367_v61  ;;  %v3398_v33 = vperm.slane %v7083_v42, 3  ;;  %v5752_v60 = vld [vmem:[%s7259_s5 + $0x50] sm:$0xff] }
 0x443   : > { %3890 = vmatpush.bf16.msra.mxu2 %v5274_v1 }
 0x444   : > { %v3369_v11 = vadd.f32 %v3361_v53, %v3244_v48 }
 0x446   : > { %v3390_v49 = vadd.f32 %v3382_v26, %v3369_v11  ;;  %3896 = vmatpush.bf16.msra.mxu3 %v5394_v3  ;;  %v5351_v26 = vld [vmem:[#allocation15 + $0x1a8] sm:$0xf0]  ;;  %v5728_v11 = vld [vmem:[#allocation15 + $0x194] sm:$0xf] }
 0x447   : > { %v3232_v57 = vpop.f32.mrf.mxu2  ;;  %v3245_v6 = vpop.f32.mrf.mxu3  ;;  %v5354_v12 = vor.u32 %v5730_v2, %v5351_v26 }
 0x448   : > { %v3404_v20 = vadd.f32 %v3396_v7, %v3390_v49  ;;  %v5343_v7 = vld [vmem:[#allocation15 + $0x198] sm:$0xf0]  ;;  %v3138_v49 = vperm.slane %v7095_v5, 4  ;;  %v3384_v5 = vperm.slane %v7106_v29, 6  ;;  %v5747_v29 = vld [vmem:[%s7259_s5 + $0x28] sm:$0xff] }
 0x449   : > { %v3256_v34 = vpop.f32.mrf.mxu0  ;;  %v3269_v51 = vpop.f32.mrf.mxu1  ;;  %v5346_v21 = vor.u32 %v5728_v11, %v5343_v7 }
 0x44a   : > { %v3408_v52 = vmax.f32 %v3404_v20, 0.0  ;;  %v3257_v31 = vadd.f32 %v3256_v34, %v3137_v0  ;;  %3897 = vmatpush.bf16.msra.mxu3 %v5386_v17 }
 0x44c   : > { %v3412_v39 = vpack.c.bf16 %v3408_v52, %v3408_v52  ;;  %v3270_v4 = vadd.f32 %v3269_v51, %v3257_v31  ;;  %v3363_v51 = vperm.slane %v7101_v50, 5  ;;  %v5749_v50 = vld [vmem:[%s7259_s5 + $0x38] sm:$0xff] }
 0x44d   : > { %4042 = vmatpush.bf16.msrb.mxu0 %v5749_v50 }
 0x44e   : > { %3826 = vmatmul.bf16.vlgmr.msrb.gmra.mxu1 %v3412_v39  ;;  %3865 = vmatmul.bf16.vlgmr.msra.gmra.mxu0 %v7088_v32  ;;  %v5375_v32 = vld [vmem:[#allocation15 + $0x1d8] sm:$0xf0] }
 0x44f   : > { %v5378_v9 = vor.u32 %v5736_v15, %v5375_v32  ;;  %v5743_v15 = vld [vmem:[%s7259_s5 + $0x8] sm:$0xff] }
 0x450   : > { %v5755_v32 = vld [vmem:[%s7259_s5 + $0x68] sm:$0xff] }
 0x451   : > { %v3258_v37 = vpop.f32.mrf.mxu0  ;;  %v3271_v40 = vpop.f32.mrf.mxu1  ;;  %3898 = vmatpush.bf16.msra.mxu3 %v5378_v9  ;;  %4043 = vmatpush.bf16.msrb.mxu0 %v5748_v46 }
 0x452   : > { %v3282_v14 = vpop.f32.mrf.mxu2  ;;  %v3295_v25 = vpop.f32.mrf.mxu3  ;;  %v5756_v37 = vld [vmem:[%s7259_s5 + $0x70] sm:$0xff] }
 0x453   : > { %v3283_v58 = vadd.f32 %v3282_v14, %v3270_v4  ;;  %v5746_v4 = vld [vmem:[%s7259_s5 + $0x20] sm:$0xff] }
 0x455   : > { %v3296_v38 = vadd.f32 %v3295_v25, %v3283_v58  ;;  %3899 = vmatpush.bf16.msra.mxu3 %v5370_v16  ;;  %4044 = vmatpush.bf16.msrb.mxu0 %v5747_v29  ;;  %v5745_v25 = vld [vmem:[%s7259_s5 + $0x18] sm:$0xff]  ;;  %v5744_v58 = vld [vmem:[%s7259_s5 + $0x10] sm:$0xff]  ;;  %v5750_v16 = vld [vmem:[%s7259_s5 + $0x40] sm:$0xff] }
 0x457   : > { %v3370_v35 = vadd.f32 %v3362_v63, %v3296_v38  ;;  %v5757_v63 = vld [vmem:[%s7259_s5 + $0x78] sm:$0xff]  ;;  %v5754_v38 = vld [vmem:[%s7259_s5 + $0x60] sm:$0xff] }
 0x458   : > { %4055 = vmatpush.bf16.msrb.mxu1 %v5757_v63 }
 0x459   : > { %v3391_v53 = vadd.f32 %v3383_v45, %v3370_v35  ;;  %3900 = vmatpush.bf16.msra.mxu3 %v5362_v19  ;;  %4045 = vmatpush.bf16.msrb.mxu0 %v5746_v4  ;;  %v5742_v45 = vld [vmem:[%s7259_s5] sm:$0xff] }
 0x45a   : > { %v3284_v54 = vpop.f32.mrf.mxu2  ;;  %v3297_v62 = vpop.f32.mrf.mxu3 }
 0x45b   : > { %v3405_v24 = vadd.f32 %v3397_v55, %v3391_v53  ;;  %v5753_v55 = vld [vmem:[%s7259_s5 + $0x58] sm:$0xff]  ;;  %v5751_v53 = vld [vmem:[%s7259_s5 + $0x48] sm:$0xff]  ;;  %v3479_v62 = vld [vmem:[%s7260_s19] sm:$0x3]  ;;  %s6161_s19 = sshra.s32 %s4083_s9, 4  ;;  %s6162_s19 = int_to_ptr.hbm [resolvable:$true] %s6161_s19 }
 0x45c   : > { %4056 = vmatpush.bf16.msrb.mxu1 %v5756_v37  ;;  %v3802_v11 = vperm.slane %v3479_v62, 1  ;;  %s6163_s2 = scalar_lea.hbm %s6162_s19, 1  ;;  %p6168_p11 = scmp.lt.s32.totalorder %s6162_s19, %s7261_s0 }
 0x45d   : > { %v3409_v41 = vmax.f32 %v3405_v24, 0.0  ;;  %3901 = vmatpush.bf16.msra.mxu3 %v5354_v12  ;;  %4046 = vmatpush.bf16.msrb.mxu0 %v5745_v25  ;;  %v3801_v24 = vperm.slane %v3479_v62, 0  ;;  %p6164_p1 = scmp.ne.s32.totalorder %s6162_s19, %s6163_s2  ;;  %p6169_p12 = scmp.lt.s32.totalorder %s6167_s22, %s6163_s2 }
 0x45e   : > { %3878 = vmatmul.bf16.vlgmr.msra.gmra.mxu1 %v3412_v39 }
 0x45f   : > { %v3413_v48 = vpack.c.bf16 %v3409_v41, %v3409_v41  ;;  %p6165_p9 = pnand %p6164_p1, %p6465_p5  ;;  %p6170_p13 = por %p6169_p12, %p6168_p11 }
 0x460   : > { %4057 = vmatpush.bf16.msrb.mxu1 %v5755_v32 }
 0x461   : > { %3839 = vmatmul.bf16.vlgmr.msrb.gmra.mxu2 %v3413_v48  ;;  %3902 = vmatpush.bf16.msra.mxu3 %v5346_v21  ;;  %p6166_p10 = pneg %p6165_p9 }
 0x462   : > { %4047 = vmatpush.bf16.msrb.mxu0 %v5744_v58 }
 0x463   : > { %p6171_p0 = pnand %p6170_p13, %p6166_p10 }
 0x464   : > { %4058 = vmatpush.bf16.msrb.mxu1 %v5754_v38 }
 0x465   : > { %3903 = vmatpush.bf16.msra.mxu3 %v5338_v8 }
 0x466   : > { %4048 = vmatpush.bf16.msrb.mxu0 %v5743_v15 }
 0x468   : > { %4059 = vmatpush.bf16.msrb.mxu1 %v5753_v55 }
 0x469   : > { %v3308_v57 = vpop.f32.mrf.mxu0  ;;  %v3321_v6 = vpop.f32.mrf.mxu1 }
 0x46a   : > { %v3309_v10 = vadd.f32 %v3308_v57, %v3138_v49  ;;  %4049 = vmatpush.bf16.msrb.mxu0 %v5742_v45 }
 0x46c   : > { %v3322_v22 = vadd.f32 %v3321_v6, %v3309_v10  ;;  %4060 = vmatpush.bf16.msrb.mxu1 %v5752_v60 }
 0x470   : > { %4061 = vmatpush.bf16.msrb.mxu1 %v5751_v53 }
 0x471   : > { %v3334_v20 = vpop.f32.mrf.mxu2  ;;  %v3347_v0 = vpop.f32.mrf.mxu3  ;;  %3891 = vmatmul.bf16.vlgmr.msra.gmra.mxu2 %v3413_v48 }
 0x472   : > { %v3335_v47 = vadd.f32 %v3334_v20, %v3322_v22  ;;  %v3310_v52 = vpop.f32.mrf.mxu0  ;;  %v3323_v34 = vpop.f32.mrf.mxu1 }
 0x474   : > { %v3348_v23 = vadd.f32 %v3347_v0, %v3335_v47  ;;  %4062 = vmatpush.bf16.msrb.mxu1 %v5750_v16  ;;  %v3945_v0 = vld [vmem:[%s7262_s15] sm:$0x1] }
 0x476   : > { %v3371_v27 = vadd.f32 %v3363_v51, %v3348_v23 }
 0x478   : > { %v3392_v13 = vadd.f32 %v3384_v5, %v3371_v27 }
 0x479   : > { %v3336_v28 = vpop.f32.mrf.mxu2  ;;  %v3349_v30 = vpop.f32.mrf.mxu3 }
 0x47a   : > { %v3406_v39 = vadd.f32 %v3398_v33, %v3392_v13 }
 0x47c   : > { %v3410_v31 = vmax.f32 %v3406_v39, 0.0 }
 0x47e   : > { %v3414_v1 = vpack.c.bf16 %v3410_v31, %v3410_v31 }
 0x480   : > { %3852 = vmatmul.bf16.vlgmr.msrb.gmra.mxu3 %v3414_v1 }
 0x490   : > { %3904 = vmatmul.bf16.vlgmr.msra.gmra.mxu3 %v3414_v1 }
 0x4bb   : > { %v3814_v36 = vpop.f32.mrf.mxu0 }
 0x4bc   : > { %v3815_v56 = vadd.f32 %v3814_v36, %v3801_v24 }
 0x4c3   : > { %v3816_v3 = vpop.f32.mrf.mxu0 }
 0x4cb   : > { %v3827_v42 = vpop.f32.mrf.mxu1  ;;  %v3866_v59 = vpop.f32.mrf.mxu0 }
 0x4cc   : > { %v3828_v41 = vadd.f32 %v3827_v42, %v3815_v56  ;;  %v3867_v21 = vadd.f32 %v3866_v59, %v3802_v11 }
 0x4d3   : > { %v3829_v17 = vpop.f32.mrf.mxu1  ;;  %v3868_v14 = vpop.f32.mrf.mxu0 }
 0x4db   : > { %v3879_v40 = vpop.f32.mrf.mxu1 }
 0x4dc   : > { %v3880_v49 = vadd.f32 %v3879_v40, %v3867_v21 }
 0x4e3   : > { %v3881_v35 = vpop.f32.mrf.mxu1 }
 0x4e4   : > { %v3840_v9 = vpop.f32.mrf.mxu2 }
 0x4e5   : > { %v3841_v19 = vadd.f32 %v3840_v9, %v3828_v41 }
 0x4ec   : > { %v3842_v61 = vpop.f32.mrf.mxu2 }
 0x4f4   : > { %v3892_v54 = vpop.f32.mrf.mxu2 }
 0x4f5   : > { %v3893_v43 = vadd.f32 %v3892_v54, %v3880_v49 }
 0x4fc   : > { %v3894_v18 = vpop.f32.mrf.mxu2 }
 0x503   : > { %v3853_v2 = vpop.f32.mrf.mxu3 }
 0x504   : > { %v3854_v26 = vadd.f32 %v3853_v2, %v3841_v19 }
 0x506   : > { %v3909_v48 = vmax.f32 %v3854_v26, 0.0 }
 0x508   : > { %v3911_v12 = vpack.c.bf16 %v3909_v48, %v3909_v48 }
 0x50a   : > { %4050 = vmatmul.bf16.vlgmr.msrb.gmra.mxu0 %v3911_v12 }
 0x50b   : > { %v3855_v7 = vpop.f32.mrf.mxu3 }
 0x513   : > { %v3905_v44 = vpop.f32.mrf.mxu3 }
 0x514   : > { %v3906_v57 = vadd.f32 %v3905_v44, %v3893_v43 }
 0x516   : > { %v3910_v6 = vmax.f32 %v3906_v57, 0.0 }
 0x518   : > { %v3912_v8 = vpack.c.bf16 %v3910_v6, %v3910_v6 }
 0x51a   : > { %4063 = vmatmul.bf16.vlgmr.msrb.gmra.mxu1 %v3912_v8 }
 0x51b   : > { %v3907_v10 = vpop.f32.mrf.mxu3 }
 0x587   : > { %v4051_v22 = vpop.f32.mrf.mxu0 }
 0x588   : > { %v4052_v47 = vadd.f32 %v4051_v22, %v3945_v0 }
 0x58f   : > { %v4053_v20 = vpop.f32.mrf.mxu0 }
 0x597   : > { %v4064_v52 = vpop.f32.mrf.mxu1 }
 0x598   : > { %v4065_v34 = vadd.f32 %v4064_v52, %v4052_v47 }
 0x59a   : > { %4068 = vst [vmem:[%s708_s18] sm:$0x1] %v4065_v34 }
 0x59b   : > { %6174 = shalt.err (!%p6171_p0)
}
 0x59c   : > { %5788 = dma.vmem_to_hbm [thread:$0]  (%p6465_p5), %s4081_s17, 16, %s4083_s9, %s4070_s4  }
 0x59f   : > { %v4066_v51 = vpop.f32.mrf.mxu1 }
 0x5a0 PF: > { %s4094_s14 = sand.u32 1, %s6225_s24   ;;  %p5817_p2 = pnand %p4247_p4, %p6473_p7 }
 0x5a1   : > { %s4095_s20 = scalar_lea.sflag [#allocation5], %s4094_s14 }
 0x5a2   : > { %p5818_p6 = pneg %p5817_p2 }
 0x5a4   : > { %6220 = dma.done.wait (%p5818_p6), %s4095_s20, 16  }
 0x5a5   : > { %6222 = vsyncadd (%p5818_p6), %s4095_s20, 4294967280  ;;  %s37_s29 = sadd.s32 1, %s6245_s29   ;;  %s7263_s24 = smov %s6229_s25 }
 0x5a6   : > { %p34_p8 = scmp.ge.s32.totalorder %s37_s29, 4   ;;  %s7264_s25 = smov %s6233_s26 }
 0x5a7   : > { %s7265_s26 = smov %s6471_s3  ;;  %s7266_s27 = smov %s6241_s28 }
 0x5a8   : > { %s7267_s28 = smov %s7269_s23  ;;  %36 = sbr.rel (!%p34_p8) target bundleno = 23 (0x17), region = 172 }
 0x5ad   :  { %4100 = vsyncpa [#allocation4], 1 }
 0x5ae   :  { %4102 = vsyncpa [#allocation4 + $0x1], 1 }
 0x5af   :  { %4103 = vsyncpa [#allocation7], 1 }
 0x5b0   :  { %4104 = vsyncpa [#allocation10], 1 }
 0x5b1   :  { %4105 = vsyncpa [#allocation13], 1 }
 0x5b2   :  { %4106 = vsyncpa [#allocation16], 1 }
 0x5b3   :  { %4107 = vsyncpa [#allocation5], 1 }
 0x5b4   :  { %4109 = vsyncpa [#allocation5 + $0x1], 1 }

</bundles_post_ra>
